<compile_context>
chip_gen: v7x
topology: tpu7x:2x2x1
jax: 0.10.0
libtpu: 0.0.40
codegen_flags: <defaults>
</compile_context>

<pallas_src>
import functools

import jax
import jax.numpy as jnp
from jax.experimental import pallas as pl
from jax.experimental.pallas import tpu as pltpu  # noqa: F401  (kept for future tiling)

# ----------------------------- model config (small, ViT-shaped) --------------
BATCH = 2
IN_CH = 3
IMG = 32          # image size (real module uses 384; scaled down)
PATCH = 16        # patch size (matches B_16)
DIM = 32          # hidden size
HEADS = 4
DH = DIM // HEADS
FF = 64           # MLP hidden size
LAYERS = 2
NUM_CLASSES = 10
PAD_CLASSES = 128  # lane-dense head output; sliced to NUM_CLASSES outside
LN_EPS = 1e-6

NUM_PATCHES = (IMG // PATCH) ** 2   # 4
SEQ = NUM_PATCHES + 1               # 5 (CLS + patches)
CPP = IN_CH * PATCH * PATCH         # 768 (flattened conv-patch vector)
TOKENS = BATCH * SEQ                # 10


# ----------------------------- fused Pallas kernel ----------------------------
def _vit_fused_kernel(
    xp_ref, base_ref, patch_w_ref,
    ln1_g_ref, ln1_b_ref, wqkv_ref, bqkv_ref, wo_ref, bo_ref,
    ln2_g_ref, ln2_b_ref, w1_ref, b1_ref, w2_ref, b2_ref,
    lnf_g_ref, lnf_b_ref, head_w_ref, head_b_ref,
    out_ref,
):
    """Single invocation: whole (B=2) forward stays resident in VMEM/vregs."""
    f32 = jnp.float32

    def layer_norm(x, g, b):
        # one-pass mean / mean-of-squares (independent XLU reductions)
        mu = jnp.mean(x, axis=-1, keepdims=True)
        ms = jnp.mean(x * x, axis=-1, keepdims=True)
        var = ms - mu * mu
        return (x - mu) * jax.lax.rsqrt(var + LN_EPS) * g + b

    def softmax_rows(s):
        m = jnp.max(s, axis=-1, keepdims=True)
        e = jnp.exp(s - m)
        return e * pl.reciprocal(jnp.sum(e, axis=-1, keepdims=True), approx=True)

    # ---- patch embedding: CLS + pos + patch-bias folded into `base` host-side;
    #      xp has a zero row at each image's CLS slot -> one 2-D matmul. ----
    tok = base_ref[...] + jnp.dot(
        xp_ref[...], patch_w_ref[...], preferred_element_type=f32)     # (B*S, D)

    scale = 1.0 / (DH ** 0.5)

    for l in range(LAYERS):                  # static unroll, 2 layers
        # -------- pre-norm MHSA: fused (B*S, D) @ (D, 3D) QKV matmul --------
        hn = layer_norm(tok, ln1_g_ref[l], ln1_b_ref[l])                # (B*S, D)
        qkv = (jnp.dot(hn, wqkv_ref[l], preferred_element_type=f32)
               + bqkv_ref[l])                                           # (B*S, 3D)

        # attention blocked per (b, h): images never mix in the score matmul
        per_image_ctx = []
        for b in range(BATCH):               # static unroll
            r = b * SEQ
            heads = []
            for h in range(HEADS):           # static unroll
                c = h * DH
                q = qkv[r:r + SEQ, c:c + DH]                            # (S, DH)
                k = qkv[r:r + SEQ, DIM + c:DIM + c + DH]
                v = qkv[r:r + SEQ, 2 * DIM + c:2 * DIM + c + DH]
                s = jnp.einsum("qd,kd->qk", q, k,
                               preferred_element_type=f32) * scale      # (S, S)
                heads.append(jnp.dot(softmax_rows(s), v,
                                     preferred_element_type=f32))       # (S, DH)
            per_image_ctx.append(jnp.concatenate(heads, axis=-1))       # (S, D)
        ctx = jnp.concatenate(per_image_ctx, axis=0)                    # (B*S, D)

        # head-merge folded into ONE (B*S, D) @ (D, D) output projection
        tok = tok + jnp.dot(ctx, wo_ref[l],
                            preferred_element_type=f32) + bo_ref[l]     # residual

        # -------- pre-norm MLP: fc1 -> tanh GELU (EUP) -> fc2 --------
        hn = layer_norm(tok, ln2_g_ref[l], ln2_b_ref[l])
        h1 = jnp.dot(hn, w1_ref[l], preferred_element_type=f32) + b1_ref[l]
        h1 = jax.nn.gelu(h1, approximate=True)
        tok = tok + jnp.dot(h1, w2_ref[l],
                            preferred_element_type=f32) + b2_ref[l]     # residual

    # -------- final LN on CLS rows only + lane-padded classification head ----
    cls = jnp.concatenate([tok[b * SEQ:b * SEQ + 1, :] for b in range(BATCH)],
                          axis=0)                                       # (B, D)
    hf = layer_norm(cls, lnf_g_ref[...], lnf_b_ref[...])
    out_ref[...] = (jnp.dot(hf, head_w_ref[...], preferred_element_type=f32)
                    + head_b_ref[...]).astype(out_ref.dtype)            # (B, 128)


# ----------------------------- wrapper -----------------------------------------
def vit_forward_pallas(x, packed):
    B, C, H, W = x.shape
    assert B == BATCH and C == IN_CH and H == IMG and W == IMG
    p = PATCH
    # TODO(synk): fold this NCHW patchify into the kernel via strided DMA at
    #             real image sizes; negligible at IMG=32.
    xp = (x.reshape(B, C, H // p, p, W // p, p)
            .transpose(0, 2, 4, 1, 3, 5)
            .reshape(B, NUM_PATCHES, CPP))
    # zero row at each image's CLS slot so patch embed is one stacked matmul
    xp_pad = jnp.concatenate([jnp.zeros((B, 1, CPP), xp.dtype), xp],
                             axis=1).reshape(B * SEQ, CPP)              # (B*S, CPP)

    logits_pad = pl.pallas_call(
        _vit_fused_kernel,
        out_shape=jax.ShapeDtypeStruct((BATCH, PAD_CLASSES), jnp.float32),
        # no grid: single invocation, all operands whole-array resident in VMEM
    )(
        xp_pad, packed["base"], packed["patch_w"],
        packed["ln1_g"], packed["ln1_b"], packed["wqkv"], packed["bqkv"],
        packed["wo"], packed["bo"], packed["ln2_g"], packed["ln2_b"],
        packed["w1"], packed["b1"], packed["w2"], packed["b2"],
        packed["lnf_g"], packed["lnf_b"], packed["head_w"], packed["head_b"],
    )
    return logits_pad[:, :NUM_CLASSES]


# ----------------------------- parameter init / packing ------------------------
def init_params(key):
    def nrm(k, shape, scale=0.02):
        return (scale * jax.random.normal(k, shape)).astype(jnp.float32)

    keys = iter(jax.random.split(key, 8 + LAYERS * 16))
    params = {
        "patch_w": nrm(next(keys), (CPP, DIM)),           # (C*p*p, D)
        "patch_b": jnp.zeros((DIM,), jnp.float32),
        "cls": nrm(next(keys), (1, 1, DIM)),
        "pos": nrm(next(keys), (1, SEQ, DIM)),
        "lnf_g": jnp.ones((DIM,), jnp.float32),
        "lnf_b": jnp.zeros((DIM,), jnp.float32),
        "head_w": nrm(next(keys), (DIM, NUM_CLASSES)),
        "head_b": jnp.zeros((NUM_CLASSES,), jnp.float32),
        "blocks": [],
    }
    for _ in range(LAYERS):
        blk = {
            "ln1_g": jnp.ones((DIM,), jnp.float32),
            "ln1_b": jnp.zeros((DIM,), jnp.float32),
            "wq": nrm(next(keys), (DIM, DIM)), "bq": jnp.zeros((DIM,), jnp.float32),
            "wk": nrm(next(keys), (DIM, DIM)), "bk": jnp.zeros((DIM,), jnp.float32),
            "wv": nrm(next(keys), (DIM, DIM)), "bv": jnp.zeros((DIM,), jnp.float32),
            "wo": nrm(next(keys), (DIM, DIM)), "bo": jnp.zeros((DIM,), jnp.float32),
            "ln2_g": jnp.ones((DIM,), jnp.float32),
            "ln2_b": jnp.zeros((DIM,), jnp.float32),
            "w1": nrm(next(keys), (DIM, FF)), "b1": jnp.zeros((FF,), jnp.float32),
            "w2": nrm(next(keys), (FF, DIM)), "b2": jnp.zeros((DIM,), jnp.float32),
        }
        params["blocks"].append(blk)
    return params


def pack_params(params):
    """Host-side weight re-packing: fused 2-D QKV, stacked layers, padded head."""
    blocks = params["blocks"]

    def cat_qkv_w(b):   # (D, 3D), columns = [wq | wk | wv] in natural head order
        return jnp.concatenate([b["wq"], b["wk"], b["wv"]], axis=1)

    def cat_qkv_b(b):   # (1, 3D)
        return jnp.concatenate([b["bq"], b["bk"], b["bv"]], axis=0).reshape(1, 3 * DIM)

    # base tokens per image: row 0 = CLS + pos[0]; rows 1.. = pos + patch bias
    base_img = params["pos"][0] + jnp.concatenate(
        [params["cls"][0],
         jnp.broadcast_to(params["patch_b"][None, :], (NUM_PATCHES, DIM))], axis=0)
    base = jnp.tile(base_img, (BATCH, 1))                                # (B*S, D)

    head_w_pad = jnp.zeros((DIM, PAD_CLASSES), jnp.float32
                           ).at[:, :NUM_CLASSES].set(params["head_w"])
    head_b_pad = jnp.zeros((1, PAD_CLASSES), jnp.float32
                           ).at[0, :NUM_CLASSES].set(params["head_b"])

    return {
        "base": base,
        "patch_w": params["patch_w"],
        "ln1_g": jnp.stack([b["ln1_g"].reshape(1, DIM) for b in blocks]),
        "ln1_b": jnp.stack([b["ln1_b"].reshape(1, DIM) for b in blocks]),
        "wqkv": jnp.stack([cat_qkv_w(b) for b in blocks]),               # (L, D, 3D)
        "bqkv": jnp.stack([cat_qkv_b(b) for b in blocks]),               # (L, 1, 3D)
        "wo": jnp.stack([b["wo"] for b in blocks]),                      # (L, D, D)
        "bo": jnp.stack([b["bo"].reshape(1, DIM) for b in blocks]),
        "ln2_g": jnp.stack([b["ln2_g"].reshape(1, DIM) for b in blocks]),
        "ln2_b": jnp.stack([b["ln2_b"].reshape(1, DIM) for b in blocks]),
        "w1": jnp.stack([b["w1"] for b in blocks]),
        "b1": jnp.stack([b["b1"].reshape(1, FF) for b in blocks]),
        "w2": jnp.stack([b["w2"] for b in blocks]),
        "b2": jnp.stack([b["b2"].reshape(1, DIM) for b in blocks]),
        "lnf_g": params["lnf_g"].reshape(1, DIM),
        "lnf_b": params["lnf_b"].reshape(1, DIM),
        "head_w": head_w_pad,
        "head_b": head_b_pad,
    }


# ----------------------------- plain-JAX reference (for validation) -------------
def vit_reference(x, params):
    hp = jax.lax.Precision.HIGHEST
    B, C, H, W = x.shape
    p = PATCH
    xp = (x.reshape(B, C, H // p, p, W // p, p)
            .transpose(0, 2, 4, 1, 3, 5)
            .reshape(B, NUM_PATCHES, CPP))
    tok = jnp.einsum("bnk,kd->bnd", xp, params["patch_w"], precision=hp) + params["patch_b"]
    cls = jnp.broadcast_to(params["cls"], (B, 1, DIM))
    tok = jnp.concatenate([cls, tok], axis=1) + params["pos"]

    def ln(x, g, b):
        mu = jnp.mean(x, axis=-1, keepdims=True)
        var = jnp.mean((x - mu) ** 2, axis=-1, keepdims=True)
        return (x - mu) * jax.lax.rsqrt(var + LN_EPS) * g + b

    def split(t):
        return t.reshape(B, SEQ, HEADS, DH).transpose(0, 2, 1, 3)

    for blk in params["blocks"]:
        h = ln(tok, blk["ln1_g"], blk["ln1_b"])
        q = split(jnp.einsum("bsd,de->bse", h, blk["wq"], precision=hp) + blk["bq"])
        k = split(jnp.einsum("bsd,de->bse", h, blk["wk"], precision=hp) + blk["bk"])
        v = split(jnp.einsum("bsd,de->bse", h, blk["wv"], precision=hp) + blk["bv"])
        s = jnp.einsum("bhqd,bhkd->bhqk", q, k, precision=hp) / (DH ** 0.5)
        pattn = jax.nn.softmax(s, axis=-1)
        o = jnp.einsum("bhqk,bhkd->bhqd", pattn, v, precision=hp)
        o = o.transpose(0, 2, 1, 3).reshape(B, SEQ, DIM)
        o = jnp.einsum("bsd,de->bse", o, blk["wo"], precision=hp) + blk["bo"]
        tok = tok + o
        h = ln(tok, blk["ln2_g"], blk["ln2_b"])
        h = jnp.einsum("bsd,df->bsf", h, blk["w1"], precision=hp) + blk["b1"]
        h = jax.nn.gelu(h, approximate=False)
        h = jnp.einsum("bsf,fd->bsd", h, blk["w2"], precision=hp) + blk["b2"]
        tok = tok + h

    h = ln(tok, params["lnf_g"], params["lnf_b"])
    return jnp.einsum("bd,dc->bc", h[:, 0, :], params["head_w"], precision=hp) + params["head_b"]


# ----------------------------- main ---------------------------------------------
if __name__ == "__main__":
    key = jax.random.PRNGKey(0)
    pkey, xkey = jax.random.split(key)
    params = init_params(pkey)
    packed = pack_params(params)
    x = jax.random.normal(xkey, (BATCH, IN_CH, IMG, IMG), dtype=jnp.float32)

    fwd = jax.jit(functools.partial(vit_forward_pallas, packed=packed))
    logits = fwd(x)
    jax.block_until_ready(logits)
    assert logits.shape == (BATCH, NUM_CLASSES)

    ref = jax.jit(functools.partial(vit_reference, params=params))(x)
    jax.block_until_ready(ref)
    assert bool(jnp.allclose(logits, ref, atol=1e-2, rtol=1e-2)), (logits, ref)

    print("KERNEL_OK")
</pallas_src>

<mosaic_0001>
module attributes {stable_mosaic.version = 11 : i64} {
  func.func @_vit_fused_kernel(%arg0: memref<10x768xf32, #tpu.memory_space<vmem>>, %arg1: memref<10x32xf32, #tpu.memory_space<vmem>>, %arg2: memref<768x32xf32, #tpu.memory_space<vmem>>, %arg3: memref<2x1x32xf32, #tpu.memory_space<vmem>>, %arg4: memref<2x1x32xf32, #tpu.memory_space<vmem>>, %arg5: memref<2x32x96xf32, #tpu.memory_space<vmem>>, %arg6: memref<2x1x96xf32, #tpu.memory_space<vmem>>, %arg7: memref<2x32x32xf32, #tpu.memory_space<vmem>>, %arg8: memref<2x1x32xf32, #tpu.memory_space<vmem>>, %arg9: memref<2x1x32xf32, #tpu.memory_space<vmem>>, %arg10: memref<2x1x32xf32, #tpu.memory_space<vmem>>, %arg11: memref<2x32x64xf32, #tpu.memory_space<vmem>>, %arg12: memref<2x1x64xf32, #tpu.memory_space<vmem>>, %arg13: memref<2x64x32xf32, #tpu.memory_space<vmem>>, %arg14: memref<2x1x32xf32, #tpu.memory_space<vmem>>, %arg15: memref<1x32xf32, #tpu.memory_space<vmem>>, %arg16: memref<1x32xf32, #tpu.memory_space<vmem>>, %arg17: memref<32x128xf32, #tpu.memory_space<vmem>>, %arg18: memref<1x128xf32, #tpu.memory_space<vmem>>, %arg19: memref<2x128xf32, #tpu.memory_space<vmem>>) attributes {dimension_semantics = [], scalar_prefetch = 0 : i64, scratch_operands = 0 : i64, tpu.core_type = #tpu.core_type<tc>} {
    %c0 = arith.constant 0 : index
    %c0_0 = arith.constant 0 : index
    %0 = vector.load %arg1[%c0, %c0_0] : memref<10x32xf32, #tpu.memory_space<vmem>>, vector<10x32xf32>
    %c0_1 = arith.constant 0 : index
    %c0_2 = arith.constant 0 : index
    %1 = vector.load %arg0[%c0_1, %c0_2] : memref<10x768xf32, #tpu.memory_space<vmem>>, vector<10x768xf32>
    %c0_3 = arith.constant 0 : index
    %c0_4 = arith.constant 0 : index
    %2 = vector.load %arg2[%c0_3, %c0_4] : memref<768x32xf32, #tpu.memory_space<vmem>>, vector<768x32xf32>
    %cst = arith.constant dense<0.000000e+00> : vector<10x32xf32>
    %3 = tpu.matmul %1, %2, %cst {dimension_numbers = #tpu.dot_dimension_numbers<[1], [0], [0], [1], [0, 0, 1, 1], [], []>} : vector<10x768xf32>, vector<768x32xf32>, vector<10x32xf32> -> vector<10x32xf32>
    %4 = arith.addf %0, %3 : vector<10x32xf32>
    %c0_5 = arith.constant 0 : index
    %c0_6 = arith.constant 0 : index
    %c0_7 = arith.constant 0 : index
    %5 = vector.load %arg3[%c0_5, %c0_6, %c0_7] : memref<2x1x32xf32, #tpu.memory_space<vmem>>, vector<1x1x32xf32>
    %6 = vector.shape_cast %5 : vector<1x1x32xf32> to vector<1x32xf32>
    %c0_8 = arith.constant 0 : index
    %c0_9 = arith.constant 0 : index
    %c0_10 = arith.constant 0 : index
    %7 = vector.load %arg4[%c0_8, %c0_9, %c0_10] : memref<2x1x32xf32, #tpu.memory_space<vmem>>, vector<1x1x32xf32>
    %8 = vector.shape_cast %7 : vector<1x1x32xf32> to vector<1x32xf32>
    %cst_11 = arith.constant dense<0.000000e+00> : vector<10xf32>
    %9 = vector.multi_reduction <add>, %4, %cst_11 [1] : vector<10x32xf32> to vector<10xf32>
    %10 = vector.shape_cast %9 : vector<10xf32> to vector<10x1xf32>
    %cst_12 = arith.constant 3.200000e+01 : f32
    %11 = vector.broadcast %cst_12 : f32 to vector<10x1xf32>
    %12 = arith.divf %10, %11 : vector<10x1xf32>
    %13 = arith.mulf %4, %4 : vector<10x32xf32>
    %cst_13 = arith.constant dense<0.000000e+00> : vector<10xf32>
    %14 = vector.multi_reduction <add>, %13, %cst_13 [1] : vector<10x32xf32> to vector<10xf32>
    %15 = vector.shape_cast %14 : vector<10xf32> to vector<10x1xf32>
    %cst_14 = arith.constant 3.200000e+01 : f32
    %16 = vector.broadcast %cst_14 : f32 to vector<10x1xf32>
    %17 = arith.divf %15, %16 : vector<10x1xf32>
    %18 = arith.mulf %12, %12 : vector<10x1xf32>
    %19 = arith.subf %17, %18 : vector<10x1xf32>
    %20 = vector.broadcast %12 : vector<10x1xf32> to vector<10x32xf32>
    %21 = arith.subf %4, %20 : vector<10x32xf32>
    %cst_15 = arith.constant 9.99999997E-7 : f32
    %22 = vector.broadcast %cst_15 : f32 to vector<10x1xf32>
    %23 = arith.addf %19, %22 : vector<10x1xf32>
    %24 = math.rsqrt %23 : vector<10x1xf32>
    %25 = vector.broadcast %24 : vector<10x1xf32> to vector<10x32xf32>
    %26 = arith.mulf %21, %25 : vector<10x32xf32>
    %27 = vector.broadcast %6 : vector<1x32xf32> to vector<10x32xf32>
    %28 = arith.mulf %26, %27 : vector<10x32xf32>
    %29 = vector.broadcast %8 : vector<1x32xf32> to vector<10x32xf32>
    %30 = arith.addf %28, %29 : vector<10x32xf32>
    %c0_16 = arith.constant 0 : index
    %c0_17 = arith.constant 0 : index
    %c0_18 = arith.constant 0 : index
    %31 = vector.load %arg5[%c0_16, %c0_17, %c0_18] : memref<2x32x96xf32, #tpu.memory_space<vmem>>, vector<1x32x96xf32>
    %32 = vector.shape_cast %31 : vector<1x32x96xf32> to vector<32x96xf32>
    %cst_19 = arith.constant dense<0.000000e+00> : vector<10x96xf32>
    %33 = tpu.matmul %30, %32, %cst_19 {dimension_numbers = #tpu.dot_dimension_numbers<[1], [0], [0], [1], [0, 0, 1, 1], [], []>} : vector<10x32xf32>, vector<32x96xf32>, vector<10x96xf32> -> vector<10x96xf32>
    %c0_20 = arith.constant 0 : index
    %c0_21 = arith.constant 0 : index
    %c0_22 = arith.constant 0 : index
    %34 = vector.load %arg6[%c0_20, %c0_21, %c0_22] : memref<2x1x96xf32, #tpu.memory_space<vmem>>, vector<1x1x96xf32>
    %35 = vector.shape_cast %34 : vector<1x1x96xf32> to vector<1x96xf32>
    %36 = vector.broadcast %35 : vector<1x96xf32> to vector<10x96xf32>
    %37 = arith.addf %33, %36 : vector<10x96xf32>
    %38 = vector.extract_strided_slice %37 {offsets = [0, 0], sizes = [5, 8], strides = [1, 1]} : vector<10x96xf32> to vector<5x8xf32>
    %39 = vector.extract_strided_slice %37 {offsets = [0, 32], sizes = [5, 8], strides = [1, 1]} : vector<10x96xf32> to vector<5x8xf32>
    %40 = vector.extract_strided_slice %37 {offsets = [0, 64], sizes = [5, 8], strides = [1, 1]} : vector<10x96xf32> to vector<5x8xf32>
    "tpu.trace_start"() <{level = 10 : i32, message = "qd,kd->qk"}> : () -> ()
    %cst_23 = arith.constant dense<0.000000e+00> : vector<5x5xf32>
    %41 = tpu.matmul %38, %39, %cst_23 {dimension_numbers = #tpu.dot_dimension_numbers<[1], [1], [0], [0], [0, 0, 1, 0], [], []>} : vector<5x8xf32>, vector<5x8xf32>, vector<5x5xf32> -> vector<5x5xf32>
    "tpu.trace_stop"() : () -> ()
    %cst_24 = arith.constant 0.353553385 : f32
    %42 = vector.broadcast %cst_24 : f32 to vector<5x5xf32>
    %43 = arith.mulf %41, %42 : vector<5x5xf32>
    %cst_25 = arith.constant dense<0xFF800000> : vector<5xf32>
    %44 = vector.multi_reduction <maximumf>, %43, %cst_25 [1] : vector<5x5xf32> to vector<5xf32>
    %45 = vector.shape_cast %44 : vector<5xf32> to vector<5x1xf32>
    %46 = vector.broadcast %45 : vector<5x1xf32> to vector<5x5xf32>
    %47 = arith.subf %43, %46 : vector<5x5xf32>
    %48 = math.exp %47 : vector<5x5xf32>
    %cst_26 = arith.constant dense<0.000000e+00> : vector<5xf32>
    %49 = vector.multi_reduction <add>, %48, %cst_26 [1] : vector<5x5xf32> to vector<5xf32>
    %50 = vector.shape_cast %49 : vector<5xf32> to vector<5x1xf32>
    %51 = tpu.reciprocal %50 {approx = true} : vector<5x1xf32> -> vector<5x1xf32>
    %52 = vector.broadcast %51 : vector<5x1xf32> to vector<5x5xf32>
    %53 = arith.mulf %48, %52 : vector<5x5xf32>
    %cst_27 = arith.constant dense<0.000000e+00> : vector<5x8xf32>
    %54 = tpu.matmul %53, %40, %cst_27 {dimension_numbers = #tpu.dot_dimension_numbers<[1], [0], [0], [1], [0, 0, 1, 1], [], []>} : vector<5x5xf32>, vector<5x8xf32>, vector<5x8xf32> -> vector<5x8xf32>
    %55 = vector.extract_strided_slice %37 {offsets = [0, 8], sizes = [5, 8], strides = [1, 1]} : vector<10x96xf32> to vector<5x8xf32>
    %56 = vector.extract_strided_slice %37 {offsets = [0, 40], sizes = [5, 8], strides = [1, 1]} : vector<10x96xf32> to vector<5x8xf32>
    %57 = vector.extract_strided_slice %37 {offsets = [0, 72], sizes = [5, 8], strides = [1, 1]} : vector<10x96xf32> to vector<5x8xf32>
    "tpu.trace_start"() <{level = 10 : i32, message = "qd,kd->qk"}> : () -> ()
    %cst_28 = arith.constant dense<0.000000e+00> : vector<5x5xf32>
    %58 = tpu.matmul %55, %56, %cst_28 {dimension_numbers = #tpu.dot_dimension_numbers<[1], [1], [0], [0], [0, 0, 1, 0], [], []>} : vector<5x8xf32>, vector<5x8xf32>, vector<5x5xf32> -> vector<5x5xf32>
    "tpu.trace_stop"() : () -> ()
    %cst_29 = arith.constant 0.353553385 : f32
    %59 = vector.broadcast %cst_29 : f32 to vector<5x5xf32>
    %60 = arith.mulf %58, %59 : vector<5x5xf32>
    %cst_30 = arith.constant dense<0xFF800000> : vector<5xf32>
    %61 = vector.multi_reduction <maximumf>, %60, %cst_30 [1] : vector<5x5xf32> to vector<5xf32>
    %62 = vector.shape_cast %61 : vector<5xf32> to vector<5x1xf32>
    %63 = vector.broadcast %62 : vector<5x1xf32> to vector<5x5xf32>
    %64 = arith.subf %60, %63 : vector<5x5xf32>
    %65 = math.exp %64 : vector<5x5xf32>
    %cst_31 = arith.constant dense<0.000000e+00> : vector<5xf32>
    %66 = vector.multi_reduction <add>, %65, %cst_31 [1] : vector<5x5xf32> to vector<5xf32>
    %67 = vector.shape_cast %66 : vector<5xf32> to vector<5x1xf32>
    %68 = tpu.reciprocal %67 {approx = true} : vector<5x1xf32> -> vector<5x1xf32>
    %69 = vector.broadcast %68 : vector<5x1xf32> to vector<5x5xf32>
    %70 = arith.mulf %65, %69 : vector<5x5xf32>
    %cst_32 = arith.constant dense<0.000000e+00> : vector<5x8xf32>
    %71 = tpu.matmul %70, %57, %cst_32 {dimension_numbers = #tpu.dot_dimension_numbers<[1], [0], [0], [1], [0, 0, 1, 1], [], []>} : vector<5x5xf32>, vector<5x8xf32>, vector<5x8xf32> -> vector<5x8xf32>
    %72 = vector.extract_strided_slice %37 {offsets = [0, 16], sizes = [5, 8], strides = [1, 1]} : vector<10x96xf32> to vector<5x8xf32>
    %73 = vector.extract_strided_slice %37 {offsets = [0, 48], sizes = [5, 8], strides = [1, 1]} : vector<10x96xf32> to vector<5x8xf32>
    %74 = vector.extract_strided_slice %37 {offsets = [0, 80], sizes = [5, 8], strides = [1, 1]} : vector<10x96xf32> to vector<5x8xf32>
    "tpu.trace_start"() <{level = 10 : i32, message = "qd,kd->qk"}> : () -> ()
    %cst_33 = arith.constant dense<0.000000e+00> : vector<5x5xf32>
    %75 = tpu.matmul %72, %73, %cst_33 {dimension_numbers = #tpu.dot_dimension_numbers<[1], [1], [0], [0], [0, 0, 1, 0], [], []>} : vector<5x8xf32>, vector<5x8xf32>, vector<5x5xf32> -> vector<5x5xf32>
    "tpu.trace_stop"() : () -> ()
    %cst_34 = arith.constant 0.353553385 : f32
    %76 = vector.broadcast %cst_34 : f32 to vector<5x5xf32>
    %77 = arith.mulf %75, %76 : vector<5x5xf32>
    %cst_35 = arith.constant dense<0xFF800000> : vector<5xf32>
    %78 = vector.multi_reduction <maximumf>, %77, %cst_35 [1] : vector<5x5xf32> to vector<5xf32>
    %79 = vector.shape_cast %78 : vector<5xf32> to vector<5x1xf32>
    %80 = vector.broadcast %79 : vector<5x1xf32> to vector<5x5xf32>
    %81 = arith.subf %77, %80 : vector<5x5xf32>
    %82 = math.exp %81 : vector<5x5xf32>
    %cst_36 = arith.constant dense<0.000000e+00> : vector<5xf32>
    %83 = vector.multi_reduction <add>, %82, %cst_36 [1] : vector<5x5xf32> to vector<5xf32>
    %84 = vector.shape_cast %83 : vector<5xf32> to vector<5x1xf32>
    %85 = tpu.reciprocal %84 {approx = true} : vector<5x1xf32> -> vector<5x1xf32>
    %86 = vector.broadcast %85 : vector<5x1xf32> to vector<5x5xf32>
    %87 = arith.mulf %82, %86 : vector<5x5xf32>
    %cst_37 = arith.constant dense<0.000000e+00> : vector<5x8xf32>
    %88 = tpu.matmul %87, %74, %cst_37 {dimension_numbers = #tpu.dot_dimension_numbers<[1], [0], [0], [1], [0, 0, 1, 1], [], []>} : vector<5x5xf32>, vector<5x8xf32>, vector<5x8xf32> -> vector<5x8xf32>
    %89 = vector.extract_strided_slice %37 {offsets = [0, 24], sizes = [5, 8], strides = [1, 1]} : vector<10x96xf32> to vector<5x8xf32>
    %90 = vector.extract_strided_slice %37 {offsets = [0, 56], sizes = [5, 8], strides = [1, 1]} : vector<10x96xf32> to vector<5x8xf32>
    %91 = vector.extract_strided_slice %37 {offsets = [0, 88], sizes = [5, 8], strides = [1, 1]} : vector<10x96xf32> to vector<5x8xf32>
    "tpu.trace_start"() <{level = 10 : i32, message = "qd,kd->qk"}> : () -> ()
    %cst_38 = arith.constant dense<0.000000e+00> : vector<5x5xf32>
    %92 = tpu.matmul %89, %90, %cst_38 {dimension_numbers = #tpu.dot_dimension_numbers<[1], [1], [0], [0], [0, 0, 1, 0], [], []>} : vector<5x8xf32>, vector<5x8xf32>, vector<5x5xf32> -> vector<5x5xf32>
    "tpu.trace_stop"() : () -> ()
    %cst_39 = arith.constant 0.353553385 : f32
    %93 = vector.broadcast %cst_39 : f32 to vector<5x5xf32>
    %94 = arith.mulf %92, %93 : vector<5x5xf32>
    %cst_40 = arith.constant dense<0xFF800000> : vector<5xf32>
    %95 = vector.multi_reduction <maximumf>, %94, %cst_40 [1] : vector<5x5xf32> to vector<5xf32>
    %96 = vector.shape_cast %95 : vector<5xf32> to vector<5x1xf32>
    %97 = vector.broadcast %96 : vector<5x1xf32> to vector<5x5xf32>
    %98 = arith.subf %94, %97 : vector<5x5xf32>
    %99 = math.exp %98 : vector<5x5xf32>
    %cst_41 = arith.constant dense<0.000000e+00> : vector<5xf32>
    %100 = vector.multi_reduction <add>, %99, %cst_41 [1] : vector<5x5xf32> to vector<5xf32>
    %101 = vector.shape_cast %100 : vector<5xf32> to vector<5x1xf32>
    %102 = tpu.reciprocal %101 {approx = true} : vector<5x1xf32> -> vector<5x1xf32>
    %103 = vector.broadcast %102 : vector<5x1xf32> to vector<5x5xf32>
    %104 = arith.mulf %99, %103 : vector<5x5xf32>
    %cst_42 = arith.constant dense<0.000000e+00> : vector<5x8xf32>
    %105 = tpu.matmul %104, %91, %cst_42 {dimension_numbers = #tpu.dot_dimension_numbers<[1], [0], [0], [1], [0, 0, 1, 1], [], []>} : vector<5x5xf32>, vector<5x8xf32>, vector<5x8xf32> -> vector<5x8xf32>
    %106 = tpu.concatenate %54, %71, %88, %105 in 1 : vector<5x8xf32>, vector<5x8xf32>, vector<5x8xf32>, vector<5x8xf32> -> vector<5x32xf32>
    %107 = vector.extract_strided_slice %37 {offsets = [5, 0], sizes = [5, 8], strides = [1, 1]} : vector<10x96xf32> to vector<5x8xf32>
    %108 = vector.extract_strided_slice %37 {offsets = [5, 32], sizes = [5, 8], strides = [1, 1]} : vector<10x96xf32> to vector<5x8xf32>
    %109 = vector.extract_strided_slice %37 {offsets = [5, 64], sizes = [5, 8], strides = [1, 1]} : vector<10x96xf32> to vector<5x8xf32>
    "tpu.trace_start"() <{level = 10 : i32, message = "qd,kd->qk"}> : () -> ()
    %cst_43 = arith.constant dense<0.000000e+00> : vector<5x5xf32>
    %110 = tpu.matmul %107, %108, %cst_43 {dimension_numbers = #tpu.dot_dimension_numbers<[1], [1], [0], [0], [0, 0, 1, 0], [], []>} : vector<5x8xf32>, vector<5x8xf32>, vector<5x5xf32> -> vector<5x5xf32>
    "tpu.trace_stop"() : () -> ()
    %cst_44 = arith.constant 0.353553385 : f32
    %111 = vector.broadcast %cst_44 : f32 to vector<5x5xf32>
    %112 = arith.mulf %110, %111 : vector<5x5xf32>
    %cst_45 = arith.constant dense<0xFF800000> : vector<5xf32>
    %113 = vector.multi_reduction <maximumf>, %112, %cst_45 [1] : vector<5x5xf32> to vector<5xf32>
    %114 = vector.shape_cast %113 : vector<5xf32> to vector<5x1xf32>
    %115 = vector.broadcast %114 : vector<5x1xf32> to vector<5x5xf32>
    %116 = arith.subf %112, %115 : vector<5x5xf32>
    %117 = math.exp %116 : vector<5x5xf32>
    %cst_46 = arith.constant dense<0.000000e+00> : vector<5xf32>
    %118 = vector.multi_reduction <add>, %117, %cst_46 [1] : vector<5x5xf32> to vector<5xf32>
    %119 = vector.shape_cast %118 : vector<5xf32> to vector<5x1xf32>
    %120 = tpu.reciprocal %119 {approx = true} : vector<5x1xf32> -> vector<5x1xf32>
    %121 = vector.broadcast %120 : vector<5x1xf32> to vector<5x5xf32>
    %122 = arith.mulf %117, %121 : vector<5x5xf32>
    %cst_47 = arith.constant dense<0.000000e+00> : vector<5x8xf32>
    %123 = tpu.matmul %122, %109, %cst_47 {dimension_numbers = #tpu.dot_dimension_numbers<[1], [0], [0], [1], [0, 0, 1, 1], [], []>} : vector<5x5xf32>, vector<5x8xf32>, vector<5x8xf32> -> vector<5x8xf32>
    %124 = vector.extract_strided_slice %37 {offsets = [5, 8], sizes = [5, 8], strides = [1, 1]} : vector<10x96xf32> to vector<5x8xf32>
    %125 = vector.extract_strided_slice %37 {offsets = [5, 40], sizes = [5, 8], strides = [1, 1]} : vector<10x96xf32> to vector<5x8xf32>
    %126 = vector.extract_strided_slice %37 {offsets = [5, 72], sizes = [5, 8], strides = [1, 1]} : vector<10x96xf32> to vector<5x8xf32>
    "tpu.trace_start"() <{level = 10 : i32, message = "qd,kd->qk"}> : () -> ()
    %cst_48 = arith.constant dense<0.000000e+00> : vector<5x5xf32>
    %127 = tpu.matmul %124, %125, %cst_48 {dimension_numbers = #tpu.dot_dimension_numbers<[1], [1], [0], [0], [0, 0, 1, 0], [], []>} : vector<5x8xf32>, vector<5x8xf32>, vector<5x5xf32> -> vector<5x5xf32>
    "tpu.trace_stop"() : () -> ()
    %cst_49 = arith.constant 0.353553385 : f32
    %128 = vector.broadcast %cst_49 : f32 to vector<5x5xf32>
    %129 = arith.mulf %127, %128 : vector<5x5xf32>
    %cst_50 = arith.constant dense<0xFF800000> : vector<5xf32>
    %130 = vector.multi_reduction <maximumf>, %129, %cst_50 [1] : vector<5x5xf32> to vector<5xf32>
    %131 = vector.shape_cast %130 : vector<5xf32> to vector<5x1xf32>
    %132 = vector.broadcast %131 : vector<5x1xf32> to vector<5x5xf32>
    %133 = arith.subf %129, %132 : vector<5x5xf32>
    %134 = math.exp %133 : vector<5x5xf32>
    %cst_51 = arith.constant dense<0.000000e+00> : vector<5xf32>
    %135 = vector.multi_reduction <add>, %134, %cst_51 [1] : vector<5x5xf32> to vector<5xf32>
    %136 = vector.shape_cast %135 : vector<5xf32> to vector<5x1xf32>
    %137 = tpu.reciprocal %136 {approx = true} : vector<5x1xf32> -> vector<5x1xf32>
    %138 = vector.broadcast %137 : vector<5x1xf32> to vector<5x5xf32>
    %139 = arith.mulf %134, %138 : vector<5x5xf32>
    %cst_52 = arith.constant dense<0.000000e+00> : vector<5x8xf32>
    %140 = tpu.matmul %139, %126, %cst_52 {dimension_numbers = #tpu.dot_dimension_numbers<[1], [0], [0], [1], [0, 0, 1, 1], [], []>} : vector<5x5xf32>, vector<5x8xf32>, vector<5x8xf32> -> vector<5x8xf32>
    %141 = vector.extract_strided_slice %37 {offsets = [5, 16], sizes = [5, 8], strides = [1, 1]} : vector<10x96xf32> to vector<5x8xf32>
    %142 = vector.extract_strided_slice %37 {offsets = [5, 48], sizes = [5, 8], strides = [1, 1]} : vector<10x96xf32> to vector<5x8xf32>
    %143 = vector.extract_strided_slice %37 {offsets = [5, 80], sizes = [5, 8], strides = [1, 1]} : vector<10x96xf32> to vector<5x8xf32>
    "tpu.trace_start"() <{level = 10 : i32, message = "qd,kd->qk"}> : () -> ()
    %cst_53 = arith.constant dense<0.000000e+00> : vector<5x5xf32>
    %144 = tpu.matmul %141, %142, %cst_53 {dimension_numbers = #tpu.dot_dimension_numbers<[1], [1], [0], [0], [0, 0, 1, 0], [], []>} : vector<5x8xf32>, vector<5x8xf32>, vector<5x5xf32> -> vector<5x5xf32>
    "tpu.trace_stop"() : () -> ()
    %cst_54 = arith.constant 0.353553385 : f32
    %145 = vector.broadcast %cst_54 : f32 to vector<5x5xf32>
    %146 = arith.mulf %144, %145 : vector<5x5xf32>
    %cst_55 = arith.constant dense<0xFF800000> : vector<5xf32>
    %147 = vector.multi_reduction <maximumf>, %146, %cst_55 [1] : vector<5x5xf32> to vector<5xf32>
    %148 = vector.shape_cast %147 : vector<5xf32> to vector<5x1xf32>
    %149 = vector.broadcast %148 : vector<5x1xf32> to vector<5x5xf32>
    %150 = arith.subf %146, %149 : vector<5x5xf32>
    %151 = math.exp %150 : vector<5x5xf32>
    %cst_56 = arith.constant dense<0.000000e+00> : vector<5xf32>
    %152 = vector.multi_reduction <add>, %151, %cst_56 [1] : vector<5x5xf32> to vector<5xf32>
    %153 = vector.shape_cast %152 : vector<5xf32> to vector<5x1xf32>
    %154 = tpu.reciprocal %153 {approx = true} : vector<5x1xf32> -> vector<5x1xf32>
    %155 = vector.broadcast %154 : vector<5x1xf32> to vector<5x5xf32>
    %156 = arith.mulf %151, %155 : vector<5x5xf32>
    %cst_57 = arith.constant dense<0.000000e+00> : vector<5x8xf32>
    %157 = tpu.matmul %156, %143, %cst_57 {dimension_numbers = #tpu.dot_dimension_numbers<[1], [0], [0], [1], [0, 0, 1, 1], [], []>} : vector<5x5xf32>, vector<5x8xf32>, vector<5x8xf32> -> vector<5x8xf32>
    %158 = vector.extract_strided_slice %37 {offsets = [5, 24], sizes = [5, 8], strides = [1, 1]} : vector<10x96xf32> to vector<5x8xf32>
    %159 = vector.extract_strided_slice %37 {offsets = [5, 56], sizes = [5, 8], strides = [1, 1]} : vector<10x96xf32> to vector<5x8xf32>
    %160 = vector.extract_strided_slice %37 {offsets = [5, 88], sizes = [5, 8], strides = [1, 1]} : vector<10x96xf32> to vector<5x8xf32>
    "tpu.trace_start"() <{level = 10 : i32, message = "qd,kd->qk"}> : () -> ()
    %cst_58 = arith.constant dense<0.000000e+00> : vector<5x5xf32>
    %161 = tpu.matmul %158, %159, %cst_58 {dimension_numbers = #tpu.dot_dimension_numbers<[1], [1], [0], [0], [0, 0, 1, 0], [], []>} : vector<5x8xf32>, vector<5x8xf32>, vector<5x5xf32> -> vector<5x5xf32>
    "tpu.trace_stop"() : () -> ()
    %cst_59 = arith.constant 0.353553385 : f32
    %162 = vector.broadcast %cst_59 : f32 to vector<5x5xf32>
    %163 = arith.mulf %161, %162 : vector<5x5xf32>
    %cst_60 = arith.constant dense<0xFF800000> : vector<5xf32>
    %164 = vector.multi_reduction <maximumf>, %163, %cst_60 [1] : vector<5x5xf32> to vector<5xf32>
    %165 = vector.shape_cast %164 : vector<5xf32> to vector<5x1xf32>
    %166 = vector.broadcast %165 : vector<5x1xf32> to vector<5x5xf32>
    %167 = arith.subf %163, %166 : vector<5x5xf32>
    %168 = math.exp %167 : vector<5x5xf32>
    %cst_61 = arith.constant dense<0.000000e+00> : vector<5xf32>
    %169 = vector.multi_reduction <add>, %168, %cst_61 [1] : vector<5x5xf32> to vector<5xf32>
    %170 = vector.shape_cast %169 : vector<5xf32> to vector<5x1xf32>
    %171 = tpu.reciprocal %170 {approx = true} : vector<5x1xf32> -> vector<5x1xf32>
    %172 = vector.broadcast %171 : vector<5x1xf32> to vector<5x5xf32>
    %173 = arith.mulf %168, %172 : vector<5x5xf32>
    %cst_62 = arith.constant dense<0.000000e+00> : vector<5x8xf32>
    %174 = tpu.matmul %173, %160, %cst_62 {dimension_numbers = #tpu.dot_dimension_numbers<[1], [0], [0], [1], [0, 0, 1, 1], [], []>} : vector<5x5xf32>, vector<5x8xf32>, vector<5x8xf32> -> vector<5x8xf32>
    %175 = tpu.concatenate %123, %140, %157, %174 in 1 : vector<5x8xf32>, vector<5x8xf32>, vector<5x8xf32>, vector<5x8xf32> -> vector<5x32xf32>
    %176 = tpu.concatenate %106, %175 in 0 : vector<5x32xf32>, vector<5x32xf32> -> vector<10x32xf32>
    %c0_63 = arith.constant 0 : index
    %c0_64 = arith.constant 0 : index
    %c0_65 = arith.constant 0 : index
    %177 = vector.load %arg7[%c0_63, %c0_64, %c0_65] : memref<2x32x32xf32, #tpu.memory_space<vmem>>, vector<1x32x32xf32>
    %178 = vector.shape_cast %177 : vector<1x32x32xf32> to vector<32x32xf32>
    %cst_66 = arith.constant dense<0.000000e+00> : vector<10x32xf32>
    %179 = tpu.matmul %176, %178, %cst_66 {dimension_numbers = #tpu.dot_dimension_numbers<[1], [0], [0], [1], [0, 0, 1, 1], [], []>} : vector<10x32xf32>, vector<32x32xf32>, vector<10x32xf32> -> vector<10x32xf32>
    %180 = arith.addf %4, %179 : vector<10x32xf32>
    %c0_67 = arith.constant 0 : index
    %c0_68 = arith.constant 0 : index
    %c0_69 = arith.constant 0 : index
    %181 = vector.load %arg8[%c0_67, %c0_68, %c0_69] : memref<2x1x32xf32, #tpu.memory_space<vmem>>, vector<1x1x32xf32>
    %182 = vector.shape_cast %181 : vector<1x1x32xf32> to vector<1x32xf32>
    %183 = vector.broadcast %182 : vector<1x32xf32> to vector<10x32xf32>
    %184 = arith.addf %180, %183 : vector<10x32xf32>
    %c0_70 = arith.constant 0 : index
    %c0_71 = arith.constant 0 : index
    %c0_72 = arith.constant 0 : index
    %185 = vector.load %arg9[%c0_70, %c0_71, %c0_72] : memref<2x1x32xf32, #tpu.memory_space<vmem>>, vector<1x1x32xf32>
    %186 = vector.shape_cast %185 : vector<1x1x32xf32> to vector<1x32xf32>
    %c0_73 = arith.constant 0 : index
    %c0_74 = arith.constant 0 : index
    %c0_75 = arith.constant 0 : index
    %187 = vector.load %arg10[%c0_73, %c0_74, %c0_75] : memref<2x1x32xf32, #tpu.memory_space<vmem>>, vector<1x1x32xf32>
    %188 = vector.shape_cast %187 : vector<1x1x32xf32> to vector<1x32xf32>
    %cst_76 = arith.constant dense<0.000000e+00> : vector<10xf32>
    %189 = vector.multi_reduction <add>, %184, %cst_76 [1] : vector<10x32xf32> to vector<10xf32>
    %190 = vector.shape_cast %189 : vector<10xf32> to vector<10x1xf32>
    %cst_77 = arith.constant 3.200000e+01 : f32
    %191 = vector.broadcast %cst_77 : f32 to vector<10x1xf32>
    %192 = arith.divf %190, %191 : vector<10x1xf32>
    %193 = arith.mulf %184, %184 : vector<10x32xf32>
    %cst_78 = arith.constant dense<0.000000e+00> : vector<10xf32>
    %194 = vector.multi_reduction <add>, %193, %cst_78 [1] : vector<10x32xf32> to vector<10xf32>
    %195 = vector.shape_cast %194 : vector<10xf32> to vector<10x1xf32>
    %cst_79 = arith.constant 3.200000e+01 : f32
    %196 = vector.broadcast %cst_79 : f32 to vector<10x1xf32>
    %197 = arith.divf %195, %196 : vector<10x1xf32>
    %198 = arith.mulf %192, %192 : vector<10x1xf32>
    %199 = arith.subf %197, %198 : vector<10x1xf32>
    %200 = vector.broadcast %192 : vector<10x1xf32> to vector<10x32xf32>
    %201 = arith.subf %184, %200 : vector<10x32xf32>
    %cst_80 = arith.constant 9.99999997E-7 : f32
    %202 = vector.broadcast %cst_80 : f32 to vector<10x1xf32>
    %203 = arith.addf %199, %202 : vector<10x1xf32>
    %204 = math.rsqrt %203 : vector<10x1xf32>
    %205 = vector.broadcast %204 : vector<10x1xf32> to vector<10x32xf32>
    %206 = arith.mulf %201, %205 : vector<10x32xf32>
    %207 = vector.broadcast %186 : vector<1x32xf32> to vector<10x32xf32>
    %208 = arith.mulf %206, %207 : vector<10x32xf32>
    %209 = vector.broadcast %188 : vector<1x32xf32> to vector<10x32xf32>
    %210 = arith.addf %208, %209 : vector<10x32xf32>
    %c0_81 = arith.constant 0 : index
    %c0_82 = arith.constant 0 : index
    %c0_83 = arith.constant 0 : index
    %211 = vector.load %arg11[%c0_81, %c0_82, %c0_83] : memref<2x32x64xf32, #tpu.memory_space<vmem>>, vector<1x32x64xf32>
    %212 = vector.shape_cast %211 : vector<1x32x64xf32> to vector<32x64xf32>
    %cst_84 = arith.constant dense<0.000000e+00> : vector<10x64xf32>
    %213 = tpu.matmul %210, %212, %cst_84 {dimension_numbers = #tpu.dot_dimension_numbers<[1], [0], [0], [1], [0, 0, 1, 1], [], []>} : vector<10x32xf32>, vector<32x64xf32>, vector<10x64xf32> -> vector<10x64xf32>
    %c0_85 = arith.constant 0 : index
    %c0_86 = arith.constant 0 : index
    %c0_87 = arith.constant 0 : index
    %214 = vector.load %arg12[%c0_85, %c0_86, %c0_87] : memref<2x1x64xf32, #tpu.memory_space<vmem>>, vector<1x1x64xf32>
    %215 = vector.shape_cast %214 : vector<1x1x64xf32> to vector<1x64xf32>
    %216 = vector.broadcast %215 : vector<1x64xf32> to vector<10x64xf32>
    %217 = arith.addf %213, %216 : vector<10x64xf32>
    %218 = arith.mulf %217, %217 : vector<10x64xf32>
    %219 = arith.mulf %217, %218 : vector<10x64xf32>
    %cst_88 = arith.constant 4.471500e-02 : f32
    %220 = vector.broadcast %cst_88 : f32 to vector<10x64xf32>
    %221 = arith.mulf %220, %219 : vector<10x64xf32>
    %222 = arith.addf %217, %221 : vector<10x64xf32>
    %cst_89 = arith.constant 0.797884583 : f32
    %223 = vector.broadcast %cst_89 : f32 to vector<10x64xf32>
    %224 = arith.mulf %223, %222 : vector<10x64xf32>
    %225 = math.tanh %224 : vector<10x64xf32>
    %cst_90 = arith.constant 1.000000e+00 : f32
    %226 = vector.broadcast %cst_90 : f32 to vector<10x64xf32>
    %227 = arith.addf %226, %225 : vector<10x64xf32>
    %cst_91 = arith.constant 5.000000e-01 : f32
    %228 = vector.broadcast %cst_91 : f32 to vector<10x64xf32>
    %229 = arith.mulf %228, %227 : vector<10x64xf32>
    %230 = arith.mulf %217, %229 : vector<10x64xf32>
    %c0_92 = arith.constant 0 : index
    %c0_93 = arith.constant 0 : index
    %c0_94 = arith.constant 0 : index
    %231 = vector.load %arg13[%c0_92, %c0_93, %c0_94] : memref<2x64x32xf32, #tpu.memory_space<vmem>>, vector<1x64x32xf32>
    %232 = vector.shape_cast %231 : vector<1x64x32xf32> to vector<64x32xf32>
    %cst_95 = arith.constant dense<0.000000e+00> : vector<10x32xf32>
    %233 = tpu.matmul %230, %232, %cst_95 {dimension_numbers = #tpu.dot_dimension_numbers<[1], [0], [0], [1], [0, 0, 1, 1], [], []>} : vector<10x64xf32>, vector<64x32xf32>, vector<10x32xf32> -> vector<10x32xf32>
    %234 = arith.addf %184, %233 : vector<10x32xf32>
    %c0_96 = arith.constant 0 : index
    %c0_97 = arith.constant 0 : index
    %c0_98 = arith.constant 0 : index
    %235 = vector.load %arg14[%c0_96, %c0_97, %c0_98] : memref<2x1x32xf32, #tpu.memory_space<vmem>>, vector<1x1x32xf32>
    %236 = vector.shape_cast %235 : vector<1x1x32xf32> to vector<1x32xf32>
    %237 = vector.broadcast %236 : vector<1x32xf32> to vector<10x32xf32>
    %238 = arith.addf %234, %237 : vector<10x32xf32>
    %c1 = arith.constant 1 : index
    %c0_99 = arith.constant 0 : index
    %c0_100 = arith.constant 0 : index
    %239 = vector.load %arg3[%c1, %c0_99, %c0_100] : memref<2x1x32xf32, #tpu.memory_space<vmem>>, vector<1x1x32xf32>
    %240 = vector.shape_cast %239 : vector<1x1x32xf32> to vector<1x32xf32>
    %c1_101 = arith.constant 1 : index
    %c0_102 = arith.constant 0 : index
    %c0_103 = arith.constant 0 : index
    %241 = vector.load %arg4[%c1_101, %c0_102, %c0_103] : memref<2x1x32xf32, #tpu.memory_space<vmem>>, vector<1x1x32xf32>
    %242 = vector.shape_cast %241 : vector<1x1x32xf32> to vector<1x32xf32>
    %cst_104 = arith.constant dense<0.000000e+00> : vector<10xf32>
    %243 = vector.multi_reduction <add>, %238, %cst_104 [1] : vector<10x32xf32> to vector<10xf32>
    %244 = vector.shape_cast %243 : vector<10xf32> to vector<10x1xf32>
    %cst_105 = arith.constant 3.200000e+01 : f32
    %245 = vector.broadcast %cst_105 : f32 to vector<10x1xf32>
    %246 = arith.divf %244, %245 : vector<10x1xf32>
    %247 = arith.mulf %238, %238 : vector<10x32xf32>
    %cst_106 = arith.constant dense<0.000000e+00> : vector<10xf32>
    %248 = vector.multi_reduction <add>, %247, %cst_106 [1] : vector<10x32xf32> to vector<10xf32>
    %249 = vector.shape_cast %248 : vector<10xf32> to vector<10x1xf32>
    %cst_107 = arith.constant 3.200000e+01 : f32
    %250 = vector.broadcast %cst_107 : f32 to vector<10x1xf32>
    %251 = arith.divf %249, %250 : vector<10x1xf32>
    %252 = arith.mulf %246, %246 : vector<10x1xf32>
    %253 = arith.subf %251, %252 : vector<10x1xf32>
    %254 = vector.broadcast %246 : vector<10x1xf32> to vector<10x32xf32>
    %255 = arith.subf %238, %254 : vector<10x32xf32>
    %cst_108 = arith.constant 9.99999997E-7 : f32
    %256 = vector.broadcast %cst_108 : f32 to vector<10x1xf32>
    %257 = arith.addf %253, %256 : vector<10x1xf32>
    %258 = math.rsqrt %257 : vector<10x1xf32>
    %259 = vector.broadcast %258 : vector<10x1xf32> to vector<10x32xf32>
    %260 = arith.mulf %255, %259 : vector<10x32xf32>
    %261 = vector.broadcast %240 : vector<1x32xf32> to vector<10x32xf32>
    %262 = arith.mulf %260, %261 : vector<10x32xf32>
    %263 = vector.broadcast %242 : vector<1x32xf32> to vector<10x32xf32>
    %264 = arith.addf %262, %263 : vector<10x32xf32>
    %c1_109 = arith.constant 1 : index
    %c0_110 = arith.constant 0 : index
    %c0_111 = arith.constant 0 : index
    %265 = vector.load %arg5[%c1_109, %c0_110, %c0_111] : memref<2x32x96xf32, #tpu.memory_space<vmem>>, vector<1x32x96xf32>
    %266 = vector.shape_cast %265 : vector<1x32x96xf32> to vector<32x96xf32>
    %cst_112 = arith.constant dense<0.000000e+00> : vector<10x96xf32>
    %267 = tpu.matmul %264, %266, %cst_112 {dimension_numbers = #tpu.dot_dimension_numbers<[1], [0], [0], [1], [0, 0, 1, 1], [], []>} : vector<10x32xf32>, vector<32x96xf32>, vector<10x96xf32> -> vector<10x96xf32>
    %c1_113 = arith.constant 1 : index
    %c0_114 = arith.constant 0 : index
    %c0_115 = arith.constant 0 : index
    %268 = vector.load %arg6[%c1_113, %c0_114, %c0_115] : memref<2x1x96xf32, #tpu.memory_space<vmem>>, vector<1x1x96xf32>
    %269 = vector.shape_cast %268 : vector<1x1x96xf32> to vector<1x96xf32>
    %270 = vector.broadcast %269 : vector<1x96xf32> to vector<10x96xf32>
    %271 = arith.addf %267, %270 : vector<10x96xf32>
    %272 = vector.extract_strided_slice %271 {offsets = [0, 0], sizes = [5, 8], strides = [1, 1]} : vector<10x96xf32> to vector<5x8xf32>
    %273 = vector.extract_strided_slice %271 {offsets = [0, 32], sizes = [5, 8], strides = [1, 1]} : vector<10x96xf32> to vector<5x8xf32>
    %274 = vector.extract_strided_slice %271 {offsets = [0, 64], sizes = [5, 8], strides = [1, 1]} : vector<10x96xf32> to vector<5x8xf32>
    "tpu.trace_start"() <{level = 10 : i32, message = "qd,kd->qk"}> : () -> ()
    %cst_116 = arith.constant dense<0.000000e+00> : vector<5x5xf32>
    %275 = tpu.matmul %272, %273, %cst_116 {dimension_numbers = #tpu.dot_dimension_numbers<[1], [1], [0], [0], [0, 0, 1, 0], [], []>} : vector<5x8xf32>, vector<5x8xf32>, vector<5x5xf32> -> vector<5x5xf32>
    "tpu.trace_stop"() : () -> ()
    %cst_117 = arith.constant 0.353553385 : f32
    %276 = vector.broadcast %cst_117 : f32 to vector<5x5xf32>
    %277 = arith.mulf %275, %276 : vector<5x5xf32>
    %cst_118 = arith.constant dense<0xFF800000> : vector<5xf32>
    %278 = vector.multi_reduction <maximumf>, %277, %cst_118 [1] : vector<5x5xf32> to vector<5xf32>
    %279 = vector.shape_cast %278 : vector<5xf32> to vector<5x1xf32>
    %280 = vector.broadcast %279 : vector<5x1xf32> to vector<5x5xf32>
    %281 = arith.subf %277, %280 : vector<5x5xf32>
    %282 = math.exp %281 : vector<5x5xf32>
    %cst_119 = arith.constant dense<0.000000e+00> : vector<5xf32>
    %283 = vector.multi_reduction <add>, %282, %cst_119 [1] : vector<5x5xf32> to vector<5xf32>
    %284 = vector.shape_cast %283 : vector<5xf32> to vector<5x1xf32>
    %285 = tpu.reciprocal %284 {approx = true} : vector<5x1xf32> -> vector<5x1xf32>
    %286 = vector.broadcast %285 : vector<5x1xf32> to vector<5x5xf32>
    %287 = arith.mulf %282, %286 : vector<5x5xf32>
    %cst_120 = arith.constant dense<0.000000e+00> : vector<5x8xf32>
    %288 = tpu.matmul %287, %274, %cst_120 {dimension_numbers = #tpu.dot_dimension_numbers<[1], [0], [0], [1], [0, 0, 1, 1], [], []>} : vector<5x5xf32>, vector<5x8xf32>, vector<5x8xf32> -> vector<5x8xf32>
    %289 = vector.extract_strided_slice %271 {offsets = [0, 8], sizes = [5, 8], strides = [1, 1]} : vector<10x96xf32> to vector<5x8xf32>
    %290 = vector.extract_strided_slice %271 {offsets = [0, 40], sizes = [5, 8], strides = [1, 1]} : vector<10x96xf32> to vector<5x8xf32>
    %291 = vector.extract_strided_slice %271 {offsets = [0, 72], sizes = [5, 8], strides = [1, 1]} : vector<10x96xf32> to vector<5x8xf32>
    "tpu.trace_start"() <{level = 10 : i32, message = "qd,kd->qk"}> : () -> ()
    %cst_121 = arith.constant dense<0.000000e+00> : vector<5x5xf32>
    %292 = tpu.matmul %289, %290, %cst_121 {dimension_numbers = #tpu.dot_dimension_numbers<[1], [1], [0], [0], [0, 0, 1, 0], [], []>} : vector<5x8xf32>, vector<5x8xf32>, vector<5x5xf32> -> vector<5x5xf32>
    "tpu.trace_stop"() : () -> ()
    %cst_122 = arith.constant 0.353553385 : f32
    %293 = vector.broadcast %cst_122 : f32 to vector<5x5xf32>
    %294 = arith.mulf %292, %293 : vector<5x5xf32>
    %cst_123 = arith.constant dense<0xFF800000> : vector<5xf32>
    %295 = vector.multi_reduction <maximumf>, %294, %cst_123 [1] : vector<5x5xf32> to vector<5xf32>
    %296 = vector.shape_cast %295 : vector<5xf32> to vector<5x1xf32>
    %297 = vector.broadcast %296 : vector<5x1xf32> to vector<5x5xf32>
    %298 = arith.subf %294, %297 : vector<5x5xf32>
    %299 = math.exp %298 : vector<5x5xf32>
    %cst_124 = arith.constant dense<0.000000e+00> : vector<5xf32>
    %300 = vector.multi_reduction <add>, %299, %cst_124 [1] : vector<5x5xf32> to vector<5xf32>
    %301 = vector.shape_cast %300 : vector<5xf32> to vector<5x1xf32>
    %302 = tpu.reciprocal %301 {approx = true} : vector<5x1xf32> -> vector<5x1xf32>
    %303 = vector.broadcast %302 : vector<5x1xf32> to vector<5x5xf32>
    %304 = arith.mulf %299, %303 : vector<5x5xf32>
    %cst_125 = arith.constant dense<0.000000e+00> : vector<5x8xf32>
    %305 = tpu.matmul %304, %291, %cst_125 {dimension_numbers = #tpu.dot_dimension_numbers<[1], [0], [0], [1], [0, 0, 1, 1], [], []>} : vector<5x5xf32>, vector<5x8xf32>, vector<5x8xf32> -> vector<5x8xf32>
    %306 = vector.extract_strided_slice %271 {offsets = [0, 16], sizes = [5, 8], strides = [1, 1]} : vector<10x96xf32> to vector<5x8xf32>
    %307 = vector.extract_strided_slice %271 {offsets = [0, 48], sizes = [5, 8], strides = [1, 1]} : vector<10x96xf32> to vector<5x8xf32>
    %308 = vector.extract_strided_slice %271 {offsets = [0, 80], sizes = [5, 8], strides = [1, 1]} : vector<10x96xf32> to vector<5x8xf32>
    "tpu.trace_start"() <{level = 10 : i32, message = "qd,kd->qk"}> : () -> ()
    %cst_126 = arith.constant dense<0.000000e+00> : vector<5x5xf32>
    %309 = tpu.matmul %306, %307, %cst_126 {dimension_numbers = #tpu.dot_dimension_numbers<[1], [1], [0], [0], [0, 0, 1, 0], [], []>} : vector<5x8xf32>, vector<5x8xf32>, vector<5x5xf32> -> vector<5x5xf32>
    "tpu.trace_stop"() : () -> ()
    %cst_127 = arith.constant 0.353553385 : f32
    %310 = vector.broadcast %cst_127 : f32 to vector<5x5xf32>
    %311 = arith.mulf %309, %310 : vector<5x5xf32>
    %cst_128 = arith.constant dense<0xFF800000> : vector<5xf32>
    %312 = vector.multi_reduction <maximumf>, %311, %cst_128 [1] : vector<5x5xf32> to vector<5xf32>
    %313 = vector.shape_cast %312 : vector<5xf32> to vector<5x1xf32>
    %314 = vector.broadcast %313 : vector<5x1xf32> to vector<5x5xf32>
    %315 = arith.subf %311, %314 : vector<5x5xf32>
    %316 = math.exp %315 : vector<5x5xf32>
    %cst_129 = arith.constant dense<0.000000e+00> : vector<5xf32>
    %317 = vector.multi_reduction <add>, %316, %cst_129 [1] : vector<5x5xf32> to vector<5xf32>
    %318 = vector.shape_cast %317 : vector<5xf32> to vector<5x1xf32>
    %319 = tpu.reciprocal %318 {approx = true} : vector<5x1xf32> -> vector<5x1xf32>
    %320 = vector.broadcast %319 : vector<5x1xf32> to vector<5x5xf32>
    %321 = arith.mulf %316, %320 : vector<5x5xf32>
    %cst_130 = arith.constant dense<0.000000e+00> : vector<5x8xf32>
    %322 = tpu.matmul %321, %308, %cst_130 {dimension_numbers = #tpu.dot_dimension_numbers<[1], [0], [0], [1], [0, 0, 1, 1], [], []>} : vector<5x5xf32>, vector<5x8xf32>, vector<5x8xf32> -> vector<5x8xf32>
    %323 = vector.extract_strided_slice %271 {offsets = [0, 24], sizes = [5, 8], strides = [1, 1]} : vector<10x96xf32> to vector<5x8xf32>
    %324 = vector.extract_strided_slice %271 {offsets = [0, 56], sizes = [5, 8], strides = [1, 1]} : vector<10x96xf32> to vector<5x8xf32>
    %325 = vector.extract_strided_slice %271 {offsets = [0, 88], sizes = [5, 8], strides = [1, 1]} : vector<10x96xf32> to vector<5x8xf32>
    "tpu.trace_start"() <{level = 10 : i32, message = "qd,kd->qk"}> : () -> ()
    %cst_131 = arith.constant dense<0.000000e+00> : vector<5x5xf32>
    %326 = tpu.matmul %323, %324, %cst_131 {dimension_numbers = #tpu.dot_dimension_numbers<[1], [1], [0], [0], [0, 0, 1, 0], [], []>} : vector<5x8xf32>, vector<5x8xf32>, vector<5x5xf32> -> vector<5x5xf32>
    "tpu.trace_stop"() : () -> ()
    %cst_132 = arith.constant 0.353553385 : f32
    %327 = vector.broadcast %cst_132 : f32 to vector<5x5xf32>
    %328 = arith.mulf %326, %327 : vector<5x5xf32>
    %cst_133 = arith.constant dense<0xFF800000> : vector<5xf32>
    %329 = vector.multi_reduction <maximumf>, %328, %cst_133 [1] : vector<5x5xf32> to vector<5xf32>
    %330 = vector.shape_cast %329 : vector<5xf32> to vector<5x1xf32>
    %331 = vector.broadcast %330 : vector<5x1xf32> to vector<5x5xf32>
    %332 = arith.subf %328, %331 : vector<5x5xf32>
    %333 = math.exp %332 : vector<5x5xf32>
    %cst_134 = arith.constant dense<0.000000e+00> : vector<5xf32>
    %334 = vector.multi_reduction <add>, %333, %cst_134 [1] : vector<5x5xf32> to vector<5xf32>
    %335 = vector.shape_cast %334 : vector<5xf32> to vector<5x1xf32>
    %336 = tpu.reciprocal %335 {approx = true} : vector<5x1xf32> -> vector<5x1xf32>
    %337 = vector.broadcast %336 : vector<5x1xf32> to vector<5x5xf32>
    %338 = arith.mulf %333, %337 : vector<5x5xf32>
    %cst_135 = arith.constant dense<0.000000e+00> : vector<5x8xf32>
    %339 = tpu.matmul %338, %325, %cst_135 {dimension_numbers = #tpu.dot_dimension_numbers<[1], [0], [0], [1], [0, 0, 1, 1], [], []>} : vector<5x5xf32>, vector<5x8xf32>, vector<5x8xf32> -> vector<5x8xf32>
    %340 = tpu.concatenate %288, %305, %322, %339 in 1 : vector<5x8xf32>, vector<5x8xf32>, vector<5x8xf32>, vector<5x8xf32> -> vector<5x32xf32>
    %341 = vector.extract_strided_slice %271 {offsets = [5, 0], sizes = [5, 8], strides = [1, 1]} : vector<10x96xf32> to vector<5x8xf32>
    %342 = vector.extract_strided_slice %271 {offsets = [5, 32], sizes = [5, 8], strides = [1, 1]} : vector<10x96xf32> to vector<5x8xf32>
    %343 = vector.extract_strided_slice %271 {offsets = [5, 64], sizes = [5, 8], strides = [1, 1]} : vector<10x96xf32> to vector<5x8xf32>
    "tpu.trace_start"() <{level = 10 : i32, message = "qd,kd->qk"}> : () -> ()
    %cst_136 = arith.constant dense<0.000000e+00> : vector<5x5xf32>
    %344 = tpu.matmul %341, %342, %cst_136 {dimension_numbers = #tpu.dot_dimension_numbers<[1], [1], [0], [0], [0, 0, 1, 0], [], []>} : vector<5x8xf32>, vector<5x8xf32>, vector<5x5xf32> -> vector<5x5xf32>
    "tpu.trace_stop"() : () -> ()
    %cst_137 = arith.constant 0.353553385 : f32
    %345 = vector.broadcast %cst_137 : f32 to vector<5x5xf32>
    %346 = arith.mulf %344, %345 : vector<5x5xf32>
    %cst_138 = arith.constant dense<0xFF800000> : vector<5xf32>
    %347 = vector.multi_reduction <maximumf>, %346, %cst_138 [1] : vector<5x5xf32> to vector<5xf32>
    %348 = vector.shape_cast %347 : vector<5xf32> to vector<5x1xf32>
    %349 = vector.broadcast %348 : vector<5x1xf32> to vector<5x5xf32>
    %350 = arith.subf %346, %349 : vector<5x5xf32>
    %351 = math.exp %350 : vector<5x5xf32>
    %cst_139 = arith.constant dense<0.000000e+00> : vector<5xf32>
    %352 = vector.multi_reduction <add>, %351, %cst_139 [1] : vector<5x5xf32> to vector<5xf32>
    %353 = vector.shape_cast %352 : vector<5xf32> to vector<5x1xf32>
    %354 = tpu.reciprocal %353 {approx = true} : vector<5x1xf32> -> vector<5x1xf32>
    %355 = vector.broadcast %354 : vector<5x1xf32> to vector<5x5xf32>
    %356 = arith.mulf %351, %355 : vector<5x5xf32>
    %cst_140 = arith.constant dense<0.000000e+00> : vector<5x8xf32>
    %357 = tpu.matmul %356, %343, %cst_140 {dimension_numbers = #tpu.dot_dimension_numbers<[1], [0], [0], [1], [0, 0, 1, 1], [], []>} : vector<5x5xf32>, vector<5x8xf32>, vector<5x8xf32> -> vector<5x8xf32>
    %358 = vector.extract_strided_slice %271 {offsets = [5, 8], sizes = [5, 8], strides = [1, 1]} : vector<10x96xf32> to vector<5x8xf32>
    %359 = vector.extract_strided_slice %271 {offsets = [5, 40], sizes = [5, 8], strides = [1, 1]} : vector<10x96xf32> to vector<5x8xf32>
    %360 = vector.extract_strided_slice %271 {offsets = [5, 72], sizes = [5, 8], strides = [1, 1]} : vector<10x96xf32> to vector<5x8xf32>
    "tpu.trace_start"() <{level = 10 : i32, message = "qd,kd->qk"}> : () -> ()
    %cst_141 = arith.constant dense<0.000000e+00> : vector<5x5xf32>
    %361 = tpu.matmul %358, %359, %cst_141 {dimension_numbers = #tpu.dot_dimension_numbers<[1], [1], [0], [0], [0, 0, 1, 0], [], []>} : vector<5x8xf32>, vector<5x8xf32>, vector<5x5xf32> -> vector<5x5xf32>
    "tpu.trace_stop"() : () -> ()
    %cst_142 = arith.constant 0.353553385 : f32
    %362 = vector.broadcast %cst_142 : f32 to vector<5x5xf32>
    %363 = arith.mulf %361, %362 : vector<5x5xf32>
    %cst_143 = arith.constant dense<0xFF800000> : vector<5xf32>
    %364 = vector.multi_reduction <maximumf>, %363, %cst_143 [1] : vector<5x5xf32> to vector<5xf32>
    %365 = vector.shape_cast %364 : vector<5xf32> to vector<5x1xf32>
    %366 = vector.broadcast %365 : vector<5x1xf32> to vector<5x5xf32>
    %367 = arith.subf %363, %366 : vector<5x5xf32>
    %368 = math.exp %367 : vector<5x5xf32>
    %cst_144 = arith.constant dense<0.000000e+00> : vector<5xf32>
    %369 = vector.multi_reduction <add>, %368, %cst_144 [1] : vector<5x5xf32> to vector<5xf32>
    %370 = vector.shape_cast %369 : vector<5xf32> to vector<5x1xf32>
    %371 = tpu.reciprocal %370 {approx = true} : vector<5x1xf32> -> vector<5x1xf32>
    %372 = vector.broadcast %371 : vector<5x1xf32> to vector<5x5xf32>
    %373 = arith.mulf %368, %372 : vector<5x5xf32>
    %cst_145 = arith.constant dense<0.000000e+00> : vector<5x8xf32>
    %374 = tpu.matmul %373, %360, %cst_145 {dimension_numbers = #tpu.dot_dimension_numbers<[1], [0], [0], [1], [0, 0, 1, 1], [], []>} : vector<5x5xf32>, vector<5x8xf32>, vector<5x8xf32> -> vector<5x8xf32>
    %375 = vector.extract_strided_slice %271 {offsets = [5, 16], sizes = [5, 8], strides = [1, 1]} : vector<10x96xf32> to vector<5x8xf32>
    %376 = vector.extract_strided_slice %271 {offsets = [5, 48], sizes = [5, 8], strides = [1, 1]} : vector<10x96xf32> to vector<5x8xf32>
    %377 = vector.extract_strided_slice %271 {offsets = [5, 80], sizes = [5, 8], strides = [1, 1]} : vector<10x96xf32> to vector<5x8xf32>
    "tpu.trace_start"() <{level = 10 : i32, message = "qd,kd->qk"}> : () -> ()
    %cst_146 = arith.constant dense<0.000000e+00> : vector<5x5xf32>
    %378 = tpu.matmul %375, %376, %cst_146 {dimension_numbers = #tpu.dot_dimension_numbers<[1], [1], [0], [0], [0, 0, 1, 0], [], []>} : vector<5x8xf32>, vector<5x8xf32>, vector<5x5xf32> -> vector<5x5xf32>
    "tpu.trace_stop"() : () -> ()
    %cst_147 = arith.constant 0.353553385 : f32
    %379 = vector.broadcast %cst_147 : f32 to vector<5x5xf32>
    %380 = arith.mulf %378, %379 : vector<5x5xf32>
    %cst_148 = arith.constant dense<0xFF800000> : vector<5xf32>
    %381 = vector.multi_reduction <maximumf>, %380, %cst_148 [1] : vector<5x5xf32> to vector<5xf32>
    %382 = vector.shape_cast %381 : vector<5xf32> to vector<5x1xf32>
    %383 = vector.broadcast %382 : vector<5x1xf32> to vector<5x5xf32>
    %384 = arith.subf %380, %383 : vector<5x5xf32>
    %385 = math.exp %384 : vector<5x5xf32>
    %cst_149 = arith.constant dense<0.000000e+00> : vector<5xf32>
    %386 = vector.multi_reduction <add>, %385, %cst_149 [1] : vector<5x5xf32> to vector<5xf32>
    %387 = vector.shape_cast %386 : vector<5xf32> to vector<5x1xf32>
    %388 = tpu.reciprocal %387 {approx = true} : vector<5x1xf32> -> vector<5x1xf32>
    %389 = vector.broadcast %388 : vector<5x1xf32> to vector<5x5xf32>
    %390 = arith.mulf %385, %389 : vector<5x5xf32>
    %cst_150 = arith.constant dense<0.000000e+00> : vector<5x8xf32>
    %391 = tpu.matmul %390, %377, %cst_150 {dimension_numbers = #tpu.dot_dimension_numbers<[1], [0], [0], [1], [0, 0, 1, 1], [], []>} : vector<5x5xf32>, vector<5x8xf32>, vector<5x8xf32> -> vector<5x8xf32>
    %392 = vector.extract_strided_slice %271 {offsets = [5, 24], sizes = [5, 8], strides = [1, 1]} : vector<10x96xf32> to vector<5x8xf32>
    %393 = vector.extract_strided_slice %271 {offsets = [5, 56], sizes = [5, 8], strides = [1, 1]} : vector<10x96xf32> to vector<5x8xf32>
    %394 = vector.extract_strided_slice %271 {offsets = [5, 88], sizes = [5, 8], strides = [1, 1]} : vector<10x96xf32> to vector<5x8xf32>
    "tpu.trace_start"() <{level = 10 : i32, message = "qd,kd->qk"}> : () -> ()
    %cst_151 = arith.constant dense<0.000000e+00> : vector<5x5xf32>
    %395 = tpu.matmul %392, %393, %cst_151 {dimension_numbers = #tpu.dot_dimension_numbers<[1], [1], [0], [0], [0, 0, 1, 0], [], []>} : vector<5x8xf32>, vector<5x8xf32>, vector<5x5xf32> -> vector<5x5xf32>
    "tpu.trace_stop"() : () -> ()
    %cst_152 = arith.constant 0.353553385 : f32
    %396 = vector.broadcast %cst_152 : f32 to vector<5x5xf32>
    %397 = arith.mulf %395, %396 : vector<5x5xf32>
    %cst_153 = arith.constant dense<0xFF800000> : vector<5xf32>
    %398 = vector.multi_reduction <maximumf>, %397, %cst_153 [1] : vector<5x5xf32> to vector<5xf32>
    %399 = vector.shape_cast %398 : vector<5xf32> to vector<5x1xf32>
    %400 = vector.broadcast %399 : vector<5x1xf32> to vector<5x5xf32>
    %401 = arith.subf %397, %400 : vector<5x5xf32>
    %402 = math.exp %401 : vector<5x5xf32>
    %cst_154 = arith.constant dense<0.000000e+00> : vector<5xf32>
    %403 = vector.multi_reduction <add>, %402, %cst_154 [1] : vector<5x5xf32> to vector<5xf32>
    %404 = vector.shape_cast %403 : vector<5xf32> to vector<5x1xf32>
    %405 = tpu.reciprocal %404 {approx = true} : vector<5x1xf32> -> vector<5x1xf32>
    %406 = vector.broadcast %405 : vector<5x1xf32> to vector<5x5xf32>
    %407 = arith.mulf %402, %406 : vector<5x5xf32>
    %cst_155 = arith.constant dense<0.000000e+00> : vector<5x8xf32>
    %408 = tpu.matmul %407, %394, %cst_155 {dimension_numbers = #tpu.dot_dimension_numbers<[1], [0], [0], [1], [0, 0, 1, 1], [], []>} : vector<5x5xf32>, vector<5x8xf32>, vector<5x8xf32> -> vector<5x8xf32>
    %409 = tpu.concatenate %357, %374, %391, %408 in 1 : vector<5x8xf32>, vector<5x8xf32>, vector<5x8xf32>, vector<5x8xf32> -> vector<5x32xf32>
    %410 = tpu.concatenate %340, %409 in 0 : vector<5x32xf32>, vector<5x32xf32> -> vector<10x32xf32>
    %c1_156 = arith.constant 1 : index
    %c0_157 = arith.constant 0 : index
    %c0_158 = arith.constant 0 : index
    %411 = vector.load %arg7[%c1_156, %c0_157, %c0_158] : memref<2x32x32xf32, #tpu.memory_space<vmem>>, vector<1x32x32xf32>
    %412 = vector.shape_cast %411 : vector<1x32x32xf32> to vector<32x32xf32>
    %cst_159 = arith.constant dense<0.000000e+00> : vector<10x32xf32>
    %413 = tpu.matmul %410, %412, %cst_159 {dimension_numbers = #tpu.dot_dimension_numbers<[1], [0], [0], [1], [0, 0, 1, 1], [], []>} : vector<10x32xf32>, vector<32x32xf32>, vector<10x32xf32> -> vector<10x32xf32>
    %414 = arith.addf %238, %413 : vector<10x32xf32>
    %c1_160 = arith.constant 1 : index
    %c0_161 = arith.constant 0 : index
    %c0_162 = arith.constant 0 : index
    %415 = vector.load %arg8[%c1_160, %c0_161, %c0_162] : memref<2x1x32xf32, #tpu.memory_space<vmem>>, vector<1x1x32xf32>
    %416 = vector.shape_cast %415 : vector<1x1x32xf32> to vector<1x32xf32>
    %417 = vector.broadcast %416 : vector<1x32xf32> to vector<10x32xf32>
    %418 = arith.addf %414, %417 : vector<10x32xf32>
    %c1_163 = arith.constant 1 : index
    %c0_164 = arith.constant 0 : index
    %c0_165 = arith.constant 0 : index
    %419 = vector.load %arg9[%c1_163, %c0_164, %c0_165] : memref<2x1x32xf32, #tpu.memory_space<vmem>>, vector<1x1x32xf32>
    %420 = vector.shape_cast %419 : vector<1x1x32xf32> to vector<1x32xf32>
    %c1_166 = arith.constant 1 : index
    %c0_167 = arith.constant 0 : index
    %c0_168 = arith.constant 0 : index
    %421 = vector.load %arg10[%c1_166, %c0_167, %c0_168] : memref<2x1x32xf32, #tpu.memory_space<vmem>>, vector<1x1x32xf32>
    %422 = vector.shape_cast %421 : vector<1x1x32xf32> to vector<1x32xf32>
    %cst_169 = arith.constant dense<0.000000e+00> : vector<10xf32>
    %423 = vector.multi_reduction <add>, %418, %cst_169 [1] : vector<10x32xf32> to vector<10xf32>
    %424 = vector.shape_cast %423 : vector<10xf32> to vector<10x1xf32>
    %cst_170 = arith.constant 3.200000e+01 : f32
    %425 = vector.broadcast %cst_170 : f32 to vector<10x1xf32>
    %426 = arith.divf %424, %425 : vector<10x1xf32>
    %427 = arith.mulf %418, %418 : vector<10x32xf32>
    %cst_171 = arith.constant dense<0.000000e+00> : vector<10xf32>
    %428 = vector.multi_reduction <add>, %427, %cst_171 [1] : vector<10x32xf32> to vector<10xf32>
    %429 = vector.shape_cast %428 : vector<10xf32> to vector<10x1xf32>
    %cst_172 = arith.constant 3.200000e+01 : f32
    %430 = vector.broadcast %cst_172 : f32 to vector<10x1xf32>
    %431 = arith.divf %429, %430 : vector<10x1xf32>
    %432 = arith.mulf %426, %426 : vector<10x1xf32>
    %433 = arith.subf %431, %432 : vector<10x1xf32>
    %434 = vector.broadcast %426 : vector<10x1xf32> to vector<10x32xf32>
    %435 = arith.subf %418, %434 : vector<10x32xf32>
    %cst_173 = arith.constant 9.99999997E-7 : f32
    %436 = vector.broadcast %cst_173 : f32 to vector<10x1xf32>
    %437 = arith.addf %433, %436 : vector<10x1xf32>
    %438 = math.rsqrt %437 : vector<10x1xf32>
    %439 = vector.broadcast %438 : vector<10x1xf32> to vector<10x32xf32>
    %440 = arith.mulf %435, %439 : vector<10x32xf32>
    %441 = vector.broadcast %420 : vector<1x32xf32> to vector<10x32xf32>
    %442 = arith.mulf %440, %441 : vector<10x32xf32>
    %443 = vector.broadcast %422 : vector<1x32xf32> to vector<10x32xf32>
    %444 = arith.addf %442, %443 : vector<10x32xf32>
    %c1_174 = arith.constant 1 : index
    %c0_175 = arith.constant 0 : index
    %c0_176 = arith.constant 0 : index
    %445 = vector.load %arg11[%c1_174, %c0_175, %c0_176] : memref<2x32x64xf32, #tpu.memory_space<vmem>>, vector<1x32x64xf32>
    %446 = vector.shape_cast %445 : vector<1x32x64xf32> to vector<32x64xf32>
    %cst_177 = arith.constant dense<0.000000e+00> : vector<10x64xf32>
    %447 = tpu.matmul %444, %446, %cst_177 {dimension_numbers = #tpu.dot_dimension_numbers<[1], [0], [0], [1], [0, 0, 1, 1], [], []>} : vector<10x32xf32>, vector<32x64xf32>, vector<10x64xf32> -> vector<10x64xf32>
    %c1_178 = arith.constant 1 : index
    %c0_179 = arith.constant 0 : index
    %c0_180 = arith.constant 0 : index
    %448 = vector.load %arg12[%c1_178, %c0_179, %c0_180] : memref<2x1x64xf32, #tpu.memory_space<vmem>>, vector<1x1x64xf32>
    %449 = vector.shape_cast %448 : vector<1x1x64xf32> to vector<1x64xf32>
    %450 = vector.broadcast %449 : vector<1x64xf32> to vector<10x64xf32>
    %451 = arith.addf %447, %450 : vector<10x64xf32>
    %452 = arith.mulf %451, %451 : vector<10x64xf32>
    %453 = arith.mulf %451, %452 : vector<10x64xf32>
    %cst_181 = arith.constant 4.471500e-02 : f32
    %454 = vector.broadcast %cst_181 : f32 to vector<10x64xf32>
    %455 = arith.mulf %454, %453 : vector<10x64xf32>
    %456 = arith.addf %451, %455 : vector<10x64xf32>
    %cst_182 = arith.constant 0.797884583 : f32
    %457 = vector.broadcast %cst_182 : f32 to vector<10x64xf32>
    %458 = arith.mulf %457, %456 : vector<10x64xf32>
    %459 = math.tanh %458 : vector<10x64xf32>
    %cst_183 = arith.constant 1.000000e+00 : f32
    %460 = vector.broadcast %cst_183 : f32 to vector<10x64xf32>
    %461 = arith.addf %460, %459 : vector<10x64xf32>
    %cst_184 = arith.constant 5.000000e-01 : f32
    %462 = vector.broadcast %cst_184 : f32 to vector<10x64xf32>
    %463 = arith.mulf %462, %461 : vector<10x64xf32>
    %464 = arith.mulf %451, %463 : vector<10x64xf32>
    %c1_185 = arith.constant 1 : index
    %c0_186 = arith.constant 0 : index
    %c0_187 = arith.constant 0 : index
    %465 = vector.load %arg13[%c1_185, %c0_186, %c0_187] : memref<2x64x32xf32, #tpu.memory_space<vmem>>, vector<1x64x32xf32>
    %466 = vector.shape_cast %465 : vector<1x64x32xf32> to vector<64x32xf32>
    %cst_188 = arith.constant dense<0.000000e+00> : vector<10x32xf32>
    %467 = tpu.matmul %464, %466, %cst_188 {dimension_numbers = #tpu.dot_dimension_numbers<[1], [0], [0], [1], [0, 0, 1, 1], [], []>} : vector<10x64xf32>, vector<64x32xf32>, vector<10x32xf32> -> vector<10x32xf32>
    %468 = arith.addf %418, %467 : vector<10x32xf32>
    %c1_189 = arith.constant 1 : index
    %c0_190 = arith.constant 0 : index
    %c0_191 = arith.constant 0 : index
    %469 = vector.load %arg14[%c1_189, %c0_190, %c0_191] : memref<2x1x32xf32, #tpu.memory_space<vmem>>, vector<1x1x32xf32>
    %470 = vector.shape_cast %469 : vector<1x1x32xf32> to vector<1x32xf32>
    %471 = vector.broadcast %470 : vector<1x32xf32> to vector<10x32xf32>
    %472 = arith.addf %468, %471 : vector<10x32xf32>
    %473 = vector.extract_strided_slice %472 {offsets = [0, 0], sizes = [1, 32], strides = [1, 1]} : vector<10x32xf32> to vector<1x32xf32>
    %474 = vector.extract_strided_slice %472 {offsets = [5, 0], sizes = [1, 32], strides = [1, 1]} : vector<10x32xf32> to vector<1x32xf32>
    %475 = tpu.concatenate %473, %474 in 0 : vector<1x32xf32>, vector<1x32xf32> -> vector<2x32xf32>
    %c0_192 = arith.constant 0 : index
    %c0_193 = arith.constant 0 : index
    %476 = vector.load %arg15[%c0_192, %c0_193] : memref<1x32xf32, #tpu.memory_space<vmem>>, vector<1x32xf32>
    %c0_194 = arith.constant 0 : index
    %c0_195 = arith.constant 0 : index
    %477 = vector.load %arg16[%c0_194, %c0_195] : memref<1x32xf32, #tpu.memory_space<vmem>>, vector<1x32xf32>
    %cst_196 = arith.constant dense<0.000000e+00> : vector<2xf32>
    %478 = vector.multi_reduction <add>, %475, %cst_196 [1] : vector<2x32xf32> to vector<2xf32>
    %479 = vector.shape_cast %478 : vector<2xf32> to vector<2x1xf32>
    %cst_197 = arith.constant 3.200000e+01 : f32
    %480 = vector.broadcast %cst_197 : f32 to vector<2x1xf32>
    %481 = arith.divf %479, %480 : vector<2x1xf32>
    %482 = arith.mulf %475, %475 : vector<2x32xf32>
    %cst_198 = arith.constant dense<0.000000e+00> : vector<2xf32>
    %483 = vector.multi_reduction <add>, %482, %cst_198 [1] : vector<2x32xf32> to vector<2xf32>
    %484 = vector.shape_cast %483 : vector<2xf32> to vector<2x1xf32>
    %cst_199 = arith.constant 3.200000e+01 : f32
    %485 = vector.broadcast %cst_199 : f32 to vector<2x1xf32>
    %486 = arith.divf %484, %485 : vector<2x1xf32>
    %487 = arith.mulf %481, %481 : vector<2x1xf32>
    %488 = arith.subf %486, %487 : vector<2x1xf32>
    %489 = vector.broadcast %481 : vector<2x1xf32> to vector<2x32xf32>
    %490 = arith.subf %475, %489 : vector<2x32xf32>
    %cst_200 = arith.constant 9.99999997E-7 : f32
    %491 = vector.broadcast %cst_200 : f32 to vector<2x1xf32>
    %492 = arith.addf %488, %491 : vector<2x1xf32>
    %493 = math.rsqrt %492 : vector<2x1xf32>
    %494 = vector.broadcast %493 : vector<2x1xf32> to vector<2x32xf32>
    %495 = arith.mulf %490, %494 : vector<2x32xf32>
    %496 = vector.broadcast %476 : vector<1x32xf32> to vector<2x32xf32>
    %497 = arith.mulf %495, %496 : vector<2x32xf32>
    %498 = vector.broadcast %477 : vector<1x32xf32> to vector<2x32xf32>
    %499 = arith.addf %497, %498 : vector<2x32xf32>
    %c0_201 = arith.constant 0 : index
    %c0_202 = arith.constant 0 : index
    %500 = vector.load %arg17[%c0_201, %c0_202] : memref<32x128xf32, #tpu.memory_space<vmem>>, vector<32x128xf32>
    %cst_203 = arith.constant dense<0.000000e+00> : vector<2x128xf32>
    %501 = tpu.matmul %499, %500, %cst_203 {dimension_numbers = #tpu.dot_dimension_numbers<[1], [0], [0], [1], [0, 0, 1, 1], [], []>} : vector<2x32xf32>, vector<32x128xf32>, vector<2x128xf32> -> vector<2x128xf32>
    %c0_204 = arith.constant 0 : index
    %c0_205 = arith.constant 0 : index
    %502 = vector.load %arg18[%c0_204, %c0_205] : memref<1x128xf32, #tpu.memory_space<vmem>>, vector<1x128xf32>
    %503 = vector.broadcast %502 : vector<1x128xf32> to vector<2x128xf32>
    %504 = arith.addf %501, %503 : vector<2x128xf32>
    %c0_206 = arith.constant 0 : index
    %c0_207 = arith.constant 0 : index
    %505 = vector.load %arg19[%c0_206, %c0_207] : memref<2x128xf32, #tpu.memory_space<vmem>>, vector<2x128xf32>
    tpu.vector_store %arg19[%c0_206, %c0_207], %504 {strides = array<i32>} : memref<2x128xf32, #tpu.memory_space<vmem>>, vector<2x128xf32>,
    return
  }
}

</mosaic_0001>

<bundles_post_ra>
// kernel: vit_forward_pallas.1
= control target key start
LH: loop header
LB: loop body
LE: loop exit
PB: predicated region body
PF: predicated region fallthrough
CT: control target
= control target key end

     0   :  { %s6328_s0 = inlined_call_operand.vmem [shape: f32[10,768], index: 0, kind: input, shape index: {}]   ;;  %s6329_s1 = inlined_call_operand.vmem [shape: f32[10,32], index: 1, kind: input, shape index: {}]   ;;  %s6330_s2 = inlined_call_operand.vmem [shape: f32[768,32], index: 2, kind: input, shape index: {}]   ;;  %s6331_s3 = inlined_call_operand.vmem [shape: f32[2,1,32], index: 3, kind: input, shape index: {}, may-alias: {3,9}]   ;;  %s6332_s4 = inlined_call_operand.vmem [shape: f32[2,1,32], index: 4, kind: input, shape index: {}, may-alias: {4,8,10,14}]   ;;  %s6333_s5 = inlined_call_operand.vmem [shape: f32[2,32,96], index: 5, kind: input, shape index: {}]   ;;  %s6334_s6 = inlined_call_operand.vmem [shape: f32[2,1,96], index: 6, kind: input, shape index: {}]   ;;  %s6335_s7 = inlined_call_operand.vmem [shape: f32[2,32,32], index: 7, kind: input, shape index: {}]   ;;  %s6336_s8 = inlined_call_operand.vmem [shape: f32[2,1,32], index: 8, kind: input, shape index: {}, may-alias: {4,8,10,14}]   ;;  %s6337_s9 = inlined_call_operand.vmem [shape: f32[2,1,32], index: 9, kind: input, shape index: {}, may-alias: {3,9}]   ;;  %s6338_s10 = inlined_call_operand.vmem [shape: f32[2,1,32], index: 10, kind: input, shape index: {}, may-alias: {4,8,10,14}]   ;;  %s6339_s11 = inlined_call_operand.vmem [shape: f32[2,32,64], index: 11, kind: input, shape index: {}]   ;;  %s6340_s12 = inlined_call_operand.vmem [shape: f32[2,1,64], index: 12, kind: input, shape index: {}]   ;;  %s6341_s13 = inlined_call_operand.vmem [shape: f32[2,64,32], index: 13, kind: input, shape index: {}]   ;;  %s6342_s14 = inlined_call_operand.vmem [shape: f32[2,1,32], index: 14, kind: input, shape index: {}, may-alias: {4,8,10,14}]   ;;  %s6343_s15 = inlined_call_operand.vmem [shape: f32[1,32], index: 15, kind: input, shape index: {}]   ;;  %s6344_s16 = inlined_call_operand.vmem [shape: f32[1,32], index: 16, kind: input, shape index: {}]   ;;  %s6345_s17 = inlined_call_operand.vmem [shape: f32[32,128], index: 17, kind: input, shape index: {}]   ;;  %s6346_s18 = inlined_call_operand.vmem [shape: f32[1,128], index: 18, kind: input, shape index: {}]   ;;  %s6347_s19 = inlined_call_operand.hbm [shape: f32[2,128], index: 19, kind: output, shape index: {}]  }
   0x1   :  { %6368 = sst [smem:[#allocation5_spill]] %s6328_s0 }
   0x2   :  { %6369 = sst [smem:[#allocation6_spill]] %s6329_s1 }
   0x3   :  { %6370 = sst [smem:[#allocation7_spill]] %s6330_s2 }
   0x4   :  { %6371 = sst [smem:[#allocation8_spill]] %s6331_s3 }
   0x5   :  { %s6372_s20 = sld [smem:[#allocation7_spill]]  ;;  %s6373_s0 = sld [smem:[#allocation5_spill]] }
   0xb   :  { %v93_v0 = vld [vmem:[%s6372_s20 + $0x80] sm:$0xff]  ;;  %v94_v1 = vld [vmem:[%s6372_s20 + $0x88] sm:$0xff]  ;;  %v95_v11 = vld [vmem:[%s6372_s20 + $0x90] sm:$0xff] }
   0xc   :  { %v125_v2 = vld [vmem:[%s6372_s20 + $0x180] sm:$0xff]  ;;  %v4925_v3 = vpack.c.bf16 %v94_v1, %v93_v0  ;;  %v126_v4 = vld [vmem:[%s6372_s20 + $0x188] sm:$0xff]  ;;  %v96_v13 = vld [vmem:[%s6372_s20 + $0x98] sm:$0xff] }
   0xd   :  { %v77_v5 = vld [vmem:[%s6372_s20] sm:$0xff]  ;;  %v78_v6 = vld [vmem:[%s6372_s20 + $0x8] sm:$0xff]  ;;  %v4957_v7 = vpack.c.bf16 %v126_v4, %v125_v2  ;;  %v127_v14 = vld [vmem:[%s6372_s20 + $0x190] sm:$0xff]  ;;  %v4929_v16 = vpack.c.bf16 %v96_v13, %v95_v11 }
   0xe   :  { %v4927_v8 = vpack.c.bf16 %v78_v6, %v77_v5  ;;  %v109_v9 = vld [vmem:[%s6372_s20 + $0x100] sm:$0xff]  ;;  %v110_v10 = vld [vmem:[%s6372_s20 + $0x108] sm:$0xff]  ;;  %4926 = vmatprep.subr.bf16.mxu0 %v4925_v3  ;;  %v128_v15 = vld [vmem:[%s6372_s20 + $0x198] sm:$0xff] }
   0xf   :  { %v4959_v12 = vpack.c.bf16 %v110_v10, %v109_v9  ;;  %4958 = vmatprep.subr.bf16.mxu1 %v4957_v7  ;;  %v4961_v17 = vpack.c.bf16 %v128_v15, %v127_v14  ;;  %v79_v18 = vld [vmem:[%s6372_s20 + $0x10] sm:$0xff]  ;;  %v80_v19 = vld [vmem:[%s6372_s20 + $0x18] sm:$0xff]  ;;  %v97_v23 = vld [vmem:[%s6372_s20 + $0xa0] sm:$0xff] }
  0x10   :  { %4928 = vmatpush3.bf16.msra.mxu0 %v4927_v8  ;;  %v111_v20 = vld [vmem:[%s6372_s20 + $0x110] sm:$0xff]  ;;  %v4931_v21 = vpack.c.bf16 %v80_v19, %v79_v18  ;;  %v112_v22 = vld [vmem:[%s6372_s20 + $0x118] sm:$0xff]  ;;  %v98_v24 = vld [vmem:[%s6372_s20 + $0xa8] sm:$0xff] }
  0x11   :  { %4960 = vmatpush3.bf16.msra.mxu1 %v4959_v12  ;;  %4930 = vmatprep.subr.bf16.mxu0 %v4929_v16  ;;  %v4963_v25 = vpack.c.bf16 %v112_v22, %v111_v20  ;;  %v4933_v26 = vpack.c.bf16 %v98_v24, %v97_v23  ;;  %v129_v27 = vld [vmem:[%s6372_s20 + $0x1a0] sm:$0xff]  ;;  %v130_v28 = vld [vmem:[%s6372_s20 + $0x1a8] sm:$0xff]  ;;  %v99_v35 = vld [vmem:[%s6372_s20 + $0xb0] sm:$0xff] }
  0x12   :  { %4962 = vmatprep.subr.bf16.mxu1 %v4961_v17  ;;  %v81_v29 = vld [vmem:[%s6372_s20 + $0x20] sm:$0xff]  ;;  %v4965_v30 = vpack.c.bf16 %v130_v28, %v129_v27  ;;  %v82_v31 = vld [vmem:[%s6372_s20 + $0x28] sm:$0xff]  ;;  %v100_v36 = vld [vmem:[%s6372_s20 + $0xb8] sm:$0xff] }
  0x13   :  { %v113_v32 = vld [vmem:[%s6372_s20 + $0x120] sm:$0xff]  ;;  %v114_v33 = vld [vmem:[%s6372_s20 + $0x128] sm:$0xff]  ;;  %v4935_v34 = vpack.c.bf16 %v82_v31, %v81_v29  ;;  %v131_v37 = vld [vmem:[%s6372_s20 + $0x1b0] sm:$0xff]  ;;  %v4937_v39 = vpack.c.bf16 %v100_v36, %v99_v35 }
  0x14   :  { %4932 = vmatpush3.bf16.msra.mxu0 %v4931_v21  ;;  %v4967_v38 = vpack.c.bf16 %v114_v33, %v113_v32  ;;  %v132_v40 = vld [vmem:[%s6372_s20 + $0x1b8] sm:$0xff]  ;;  %v83_v41 = vld [vmem:[%s6372_s20 + $0x30] sm:$0xff]  ;;  %v101_v46 = vld [vmem:[%s6372_s20 + $0xc0] sm:$0xff] }
  0x15   :  { %4964 = vmatpush3.bf16.msra.mxu1 %v4963_v25  ;;  %4934 = vmatprep.subr.bf16.mxu0 %v4933_v26  ;;  %v84_v42 = vld [vmem:[%s6372_s20 + $0x38] sm:$0xff]  ;;  %v4969_v43 = vpack.c.bf16 %v132_v40, %v131_v37  ;;  %v115_v44 = vld [vmem:[%s6372_s20 + $0x130] sm:$0xff]  ;;  %v102_v47 = vld [vmem:[%s6372_s20 + $0xc8] sm:$0xff] }
  0x16   :  { %4966 = vmatprep.subr.bf16.mxu1 %v4965_v30  ;;  %v116_v45 = vld [vmem:[%s6372_s20 + $0x138] sm:$0xff]  ;;  %v133_v48 = vld [vmem:[%s6372_s20 + $0x1c0] sm:$0xff]  ;;  %v134_v49 = vld [vmem:[%s6372_s20 + $0x1c8] sm:$0xff]  ;;  %v4939_v50 = vpack.c.bf16 %v84_v42, %v83_v41  ;;  %v4941_v52 = vpack.c.bf16 %v102_v47, %v101_v46 }
  0x17   :  { %v4971_v51 = vpack.c.bf16 %v116_v45, %v115_v44  ;;  %v85_v53 = vld [vmem:[%s6372_s20 + $0x40] sm:$0xff]  ;;  %v86_v54 = vld [vmem:[%s6372_s20 + $0x48] sm:$0xff]  ;;  %v4973_v56 = vpack.c.bf16 %v134_v49, %v133_v48  ;;  %v103_v58 = vld [vmem:[%s6372_s20 + $0xd0] sm:$0xff] }
  0x18   :  { %4936 = vmatpush3.bf16.msra.mxu0 %v4935_v34  ;;  %v117_v55 = vld [vmem:[%s6372_s20 + $0x140] sm:$0xff]  ;;  %v118_v57 = vld [vmem:[%s6372_s20 + $0x148] sm:$0xff]  ;;  %v104_v59 = vld [vmem:[%s6372_s20 + $0xd8] sm:$0xff]  ;;  %v4943_v62 = vpack.c.bf16 %v86_v54, %v85_v53 }
  0x19   :  { %4968 = vmatpush3.bf16.msra.mxu1 %v4967_v38  ;;  %4938 = vmatprep.subr.bf16.mxu0 %v4937_v39  ;;  %v135_v60 = vld [vmem:[%s6372_s20 + $0x1d0] sm:$0xff]  ;;  %v136_v61 = vld [vmem:[%s6372_s20 + $0x1d8] sm:$0xff]  ;;  %v4975_v63 = vpack.c.bf16 %v118_v57, %v117_v55  ;;  %v4945_v0 = vpack.c.bf16 %v104_v59, %v103_v58  ;;  %v105_v6 = vld [vmem:[%s6372_s20 + $0xe0] sm:$0xff] }
  0x1a   :  { %4970 = vmatprep.subr.bf16.mxu1 %v4969_v43  ;;  %v87_v1 = vld [vmem:[%s6372_s20 + $0x50] sm:$0xff]  ;;  %v88_v2 = vld [vmem:[%s6372_s20 + $0x58] sm:$0xff]  ;;  %v4977_v4 = vpack.c.bf16 %v136_v61, %v135_v60  ;;  %v106_v7 = vld [vmem:[%s6372_s20 + $0xe8] sm:$0xff] }
  0x1b   :  { %v119_v3 = vld [vmem:[%s6372_s20 + $0x150] sm:$0xff]  ;;  %v120_v5 = vld [vmem:[%s6372_s20 + $0x158] sm:$0xff]  ;;  %v137_v8 = vld [vmem:[%s6372_s20 + $0x1e0] sm:$0xff]  ;;  %v4947_v10 = vpack.c.bf16 %v88_v2, %v87_v1  ;;  %v4949_v14 = vpack.c.bf16 %v106_v7, %v105_v6 }
  0x1c   :  { %4940 = vmatpush3.bf16.msra.mxu0 %v4939_v50  ;;  %v138_v9 = vld [vmem:[%s6372_s20 + $0x1e8] sm:$0xff]  ;;  %v89_v11 = vld [vmem:[%s6372_s20 + $0x60] sm:$0xff]  ;;  %v4979_v13 = vpack.c.bf16 %v120_v5, %v119_v3  ;;  %v68_v17 = vld [vmem:[%s6373_s0 + $0x18] sm:$0xff] }
  0x1d   :  { %4972 = vmatpush3.bf16.msra.mxu1 %v4971_v51  ;;  %4942 = vmatprep.subr.bf16.mxu0 %v4941_v52  ;;  %v90_v12 = vld [vmem:[%s6372_s20 + $0x68] sm:$0xff]  ;;  %v121_v15 = vld [vmem:[%s6372_s20 + $0x160] sm:$0xff]  ;;  %v4981_v18 = vpack.c.bf16 %v138_v9, %v137_v8  ;;  %v107_v20 = vld [vmem:[%s6372_s20 + $0xf0] sm:$0xff] }
  0x1e   :  { %4974 = vmatprep.subr.bf16.mxu1 %v4973_v56  ;;  %v66_v16 = vld [vmem:[%s6373_s0 + $0x8] sm:$0xff]  ;;  %v108_v21 = vld [vmem:[%s6372_s20 + $0xf8] sm:$0xff]  ;;  %v139_v22 = vld [vmem:[%s6372_s20 + $0x1f0] sm:$0xff]  ;;  %312 = vmatprep.mubr.f32.mxu1 %v68_v17  ;;  %v4951_v24 = vpack.c.bf16 %v90_v12, %v89_v11 }
  0x1f   :  { %v122_v19 = vld [vmem:[%s6372_s20 + $0x168] sm:$0xff]  ;;  %237 = vmatprep.mubr.f32.mxu0 %v66_v16  ;;  %v140_v23 = vld [vmem:[%s6372_s20 + $0x1f8] sm:$0xff]  ;;  %v4953_v26 = vpack.c.bf16 %v108_v21, %v107_v20  ;;  %v91_v27 = vld [vmem:[%s6372_s20 + $0x70] sm:$0xff] }
  0x20   :  { %4944 = vmatpush3.bf16.msra.mxu0 %v4943_v62  ;;  %v4983_v25 = vpack.c.bf16 %v122_v19, %v121_v15  ;;  %v92_v28 = vld [vmem:[%s6372_s20 + $0x78] sm:$0xff]  ;;  %v123_v29 = vld [vmem:[%s6372_s20 + $0x170] sm:$0xff]  ;;  %v4985_v30 = vpack.c.bf16 %v140_v23, %v139_v22  ;;  %v157_v32 = vld [vmem:[%s6372_s20 + $0x280] sm:$0xff] }
  0x21   :  { %4976 = vmatpush3.bf16.msra.mxu1 %v4975_v63  ;;  %4946 = vmatprep.subr.bf16.mxu0 %v4945_v0  ;;  %v124_v31 = vld [vmem:[%s6372_s20 + $0x178] sm:$0xff]  ;;  %v158_v33 = vld [vmem:[%s6372_s20 + $0x288] sm:$0xff]  ;;  %v4955_v34 = vpack.c.bf16 %v92_v28, %v91_v27  ;;  %v141_v37 = vld [vmem:[%s6372_s20 + $0x200] sm:$0xff] }
  0x22   :  { %4978 = vmatprep.subr.bf16.mxu1 %v4977_v4  ;;  %v4987_v35 = vpack.c.bf16 %v124_v31, %v123_v29  ;;  %v4989_v36 = vpack.c.bf16 %v158_v33, %v157_v32  ;;  %v142_v38 = vld [vmem:[%s6372_s20 + $0x208] sm:$0xff]  ;;  %v159_v39 = vld [vmem:[%s6372_s20 + $0x290] sm:$0xff]  ;;  %v160_v40 = vld [vmem:[%s6372_s20 + $0x298] sm:$0xff] }
  0x23   :  { %v65_v41 = vld [vmem:[%s6373_s0] sm:$0xff]  ;;  %v4991_v42 = vpack.c.bf16 %v142_v38, %v141_v37  ;;  %v67_v43 = vld [vmem:[%s6373_s0 + $0x10] sm:$0xff]  ;;  %v4993_v44 = vpack.c.bf16 %v160_v40, %v159_v39  ;;  %v144_v46 = vld [vmem:[%s6372_s20 + $0x218] sm:$0xff] }
  0x24   :  { %4948 = vmatpush3.bf16.msra.mxu0 %v4947_v10  ;;  %v143_v45 = vld [vmem:[%s6372_s20 + $0x210] sm:$0xff]  ;;  %v161_v47 = vld [vmem:[%s6372_s20 + $0x2a0] sm:$0xff]  ;;  %v162_v48 = vld [vmem:[%s6372_s20 + $0x2a8] sm:$0xff] }
  0x25   :  { %4980 = vmatpush3.bf16.msra.mxu1 %v4979_v13  ;;  %4950 = vmatprep.subr.bf16.mxu0 %v4949_v14  ;;  %v72_v49 = vld [vmem:[%s6373_s0 + $0x38] sm:$0x3]  ;;  %v74_v50 = vld [vmem:[%s6373_s0 + $0x48] sm:$0x3]  ;;  %v4995_v51 = vpack.c.bf16 %v144_v46, %v143_v45  ;;  %v71_v52 = vld [vmem:[%s6373_s0 + $0x30] sm:$0x3] }
  0x26   :  { %4982 = vmatprep.subr.bf16.mxu1 %v4981_v18 }
  0x28   :  { %4952 = vmatpush3.bf16.msra.mxu0 %v4951_v24 }
  0x29   :  { %4984 = vmatpush3.bf16.msra.mxu1 %v4983_v25  ;;  %4954 = vmatprep.subr.bf16.mxu0 %v4953_v26 }
  0x2a   :  { %4986 = vmatprep.subr.bf16.mxu1 %v4985_v30 }
  0x2c   :  { %4956 = vmatpush3.bf16.msra.mxu0 %v4955_v34 }
  0x2d   :  { %4988 = vmatpush3.bf16.msra.mxu1 %v4987_v35  ;;  %4990 = vmatprep.subr.bf16.mxu0 %v4989_v36 }
  0x2f   :  { %238 = vmatmul.mubr.f32.vlgmr.msra.gmra.mrb[0].mxu0 %v65_v41 }
  0x30   :  { %313 = vmatmul.mubr.f32.vlgmr.msra.gmra.mrb[0].mxu1 %v67_v43  ;;  %4992 = vmatpush3.bf16.msra.mxu0 %v4991_v42 }
  0x31   :  { %24 = vsyncpa [#allocation3], 0  ;;  %4994 = vmatprep.subr.bf16.mxu0 %v4993_v44  ;;  %v4997_v53 = vpack.c.bf16 %v162_v48, %v161_v47  ;;  %v145_v54 = vld [vmem:[%s6372_s20 + $0x220] sm:$0xff]  ;;  %v146_v55 = vld [vmem:[%s6372_s20 + $0x228] sm:$0xff]  ;;  %242 = vmatprep.mubr.f32.mxu0 %v72_v49  ;;  %s6374_s30 = sld [smem:[#allocation6_spill]]  ;;  %vm402_vm0 = vcmask 261120  }
  0x32   :  { %v73_v56 = vld [vmem:[%s6373_s0 + $0x40] sm:$0x3]  ;;  %v163_v57 = vld [vmem:[%s6372_s20 + $0x2b0] sm:$0xff]  ;;  %v164_v58 = vld [vmem:[%s6372_s20 + $0x2b8] sm:$0xff]  ;;  %317 = vmatprep.mubr.f32.mxu1 %v74_v50  ;;  %v4999_v60 = vpack.c.bf16 %v146_v55, %v145_v54  ;;  %vm406_vm1 = vcmask 254976   ;;  %vm5240_vm2 = vmmov 0  }
  0x33   :  { %v70_v59 = vld [vmem:[%s6373_s0 + $0x28] sm:$0xff]  ;;  %243 = vmatmul.mubr.f32.gmra.mrb[2].mxu0 %v71_v52  ;;  %v5001_v61 = vpack.c.bf16 %v164_v58, %v163_v57  ;;  %v147_v62 = vld [vmem:[%s6372_s20 + $0x230] sm:$0xff]  ;;  %v148_v63 = vld [vmem:[%s6372_s20 + $0x238] sm:$0xff]  ;;  %s5241_s22 = smov 96   ;;  %s5242_s2 = smov 88   ;;  %vm546_vm3 = vcmask 64512  }
  0x34   :  { %4996 = vmatpush3.bf16.msra.mxu0 %v4995_v51  ;;  %318 = vmatmul.mubr.f32.gmra.mrb[2].mxu1 %v73_v56  ;;  %v165_v0 = vld [vmem:[%s6372_s20 + $0x2c0] sm:$0xff]  ;;  %v166_v1 = vld [vmem:[%s6372_s20 + $0x2c8] sm:$0xff]  ;;  %v5003_v2 = vpack.c.bf16 %v148_v63, %v147_v62  ;;  %v167_v6 = vld [vmem:[%s6372_s20 + $0x2d0] sm:$0xff]  ;;  %vm622_vm4 = vcmask 36864   ;;  %s6358_s23 = smov 64   ;;  %vm640_vm5 = vcmask 1044480  }
  0x35   :  { %4998 = vmatprep.subr.bf16.mxu0 %v4997_v53  ;;  %387 = vmatprep.mubr.f32.mxu0 %v70_v59  ;;  %v5005_v3 = vpack.c.bf16 %v166_v1, %v165_v0  ;;  %v149_v4 = vld [vmem:[%s6372_s20 + $0x240] sm:$0xff]  ;;  %v150_v5 = vld [vmem:[%s6372_s20 + $0x248] sm:$0xff]  ;;  %v168_v7 = vld [vmem:[%s6372_s20 + $0x2d8] sm:$0xff]  ;;  %s5244_s24 = smov 120   ;;  %vm636_vm6 = vcmask 39936   ;;  %s6352_s25 = smov 56  }
  0x36   :  { %v5007_v8 = vpack.c.bf16 %v150_v5, %v149_v4  ;;  %v5009_v9 = vpack.c.bf16 %v168_v7, %v167_v6  ;;  %v151_v10 = vld [vmem:[%s6372_s20 + $0x250] sm:$0xff]  ;;  %v152_v11 = vld [vmem:[%s6372_s20 + $0x258] sm:$0xff]  ;;  %v169_v12 = vld [vmem:[%s6372_s20 + $0x2e0] sm:$0xff]  ;;  %s5246_s3 = smov 112   ;;  %s5247_s26 = smov 80   ;;  %vm1232_vm7 = vcmask 1042432  }
  0x37   :  { %v170_v13 = vld [vmem:[%s6372_s20 + $0x2e8] sm:$0xff]  ;;  %v5011_v14 = vpack.c.bf16 %v152_v11, %v151_v10  ;;  %v153_v16 = vld [vmem:[%s6372_s20 + $0x260] sm:$0xff]  ;;  %v171_v18 = vld [vmem:[%s6372_s20 + $0x2f0] sm:$0xff]  ;;  %s6360_s27 = smov 72   ;;  %s6362_s28 = smov 104   ;;  %vm1227_vm8 = vcmask 130048  }
  0x38   :  { %5000 = vmatpush3.bf16.msra.mxu0 %v4999_v60  ;;  %v5013_v15 = vpack.c.bf16 %v170_v13, %v169_v12  ;;  %v154_v17 = vld [vmem:[%s6372_s20 + $0x268] sm:$0xff]  ;;  %v172_v19 = vld [vmem:[%s6372_s20 + $0x2f8] sm:$0xff]  ;;  %v155_v22 = vld [vmem:[%s6372_s20 + $0x270] sm:$0xff]  ;;  %s6356_s29 = smov 48   ;;  %vm1229_vm9 = vcmask 195584   ;;  %vm2182_vm10 = vcmask 523264  }
  0x39   :  { %5002 = vmatprep.subr.bf16.mxu0 %v5001_v61  ;;  %v5015_v20 = vpack.c.bf16 %v154_v17, %v153_v16  ;;  %v5017_v21 = vpack.c.bf16 %v172_v19, %v171_v18  ;;  %v156_v23 = vld [vmem:[%s6372_s20 + $0x278] sm:$0xff]  ;;  %v69_v25 = vld [vmem:[%s6373_s0 + $0x20] sm:$0xff]  ;;  %v75_v27 = vld [vmem:[%s6373_s0 + $0x50] sm:$0x3]  ;;  %s6375_s20 = sld [smem:[#allocation8_spill]]  ;;  %vm4151_vm11 = vcmask 1040384  }
  0x3a   :  { %v5019_v24 = vpack.c.bf16 %v156_v23, %v155_v22  ;;  %v76_v26 = vld [vmem:[%s6373_s0 + $0x58] sm:$0x3]  ;;  %v63_v45 = vld [vmem:[%s6374_s30] sm:$0xff]  ;;  %v64_v51 = vld [vmem:[%s6374_s30 + $0x8] sm:$0x3]  ;;  %s6354_s0 = smov 40  }
  0x3b   :  { %v451_v60 = vld [vmem:[%s6333_s5] sm:$0xff]  ;;  %v452_v61 = vld [vmem:[%s6333_s5 + $0x8] sm:$0xff]  ;;  %v453_v62 = vld [vmem:[%s6333_s5 + $0x10] sm:$0xff]  ;;  %s5252_s30 = smov 8  }
  0x3c   :  { %5004 = vmatpush3.bf16.msra.mxu0 %v5003_v2  ;;  %v5021_v63 = vpack.c.bf16 %v452_v61, %v451_v60  ;;  %v454_v0 = vld [vmem:[%s6333_s5 + $0x18] sm:$0xff] }
  0x3d   :  { %5006 = vmatprep.subr.bf16.mxu0 %v5005_v3  ;;  %v5025_v1 = vpack.c.bf16 %v454_v0, %v453_v62 }
  0x3e   :  { %5022 = vmatprep.subr.bf16.mxu1 %v5021_v63 }
  0x3f   :  { %5024 = vmatpush3.bf16.msra.mxu1 %v5021_v63  ;;  %v4283_v18 = vld [vmem:[%s6375_s20] ss:$0 sm:$0xff] }
  0x40   :  { %5008 = vmatpush3.bf16.msra.mxu0 %v5007_v8  ;;  %5026 = vmatprep.subr.bf16.mxu1 %v5025_v1 }
  0x41   :  { %5010 = vmatprep.subr.bf16.mxu0 %v5009_v9 }
  0x43   :  { %5028 = vmatpush3.bf16.msra.mxu1 %v5025_v1 }
  0x44   :  { %5012 = vmatpush3.bf16.msra.mxu0 %v5011_v14 }
  0x45   :  { %5014 = vmatprep.subr.bf16.mxu0 %v5013_v15 }
  0x48   :  { %5016 = vmatpush3.bf16.msra.mxu0 %v5015_v20  ;;  %v4284_v20 = vld [vmem:[%s6332_s4] ss:$0 sm:$0xff] }
  0x49   :  { %5018 = vmatprep.subr.bf16.mxu0 %v5017_v21 }
  0x4c   :  { %5020 = vmatpush3.bf16.msra.mxu0 %v5019_v24 }
  0x4f   :  { %388 = vmatmul.mubr.f32.vlgmr.msra.gmra.mrb[4].mxu0 %v69_v25 }
  0x50   :  { %392 = vmatprep.mubr.f32.mxu0 %v76_v26 }
  0x53   :  { %393 = vmatmul.mubr.f32.gmra.mrb[6].mxu0 %v75_v27 }
 0x102   :  { %v4443_v28 = vpop.f32.mrb[0].mxu0 }
 0x103   :  { %v4481_v29 = vpop.f32.mrb[0].mxu1  ;;  %v4444_v30 = vpop.f32.mrb[1].mxu0 }
 0x104   :  { %v4445_v31 = vadd.f32 %v4444_v30, %v4443_v28  ;;  %v4482_v32 = vpop.f32.mrb[1].mxu1  ;;  %v5239_v28 = vmov 0.0  }
 0x105   :  { %v4483_v33 = vadd.f32 %v4482_v32, %v4481_v29  ;;  %4661 = vmatprep.subr.mxu1 %v5239_v28  ;;  %4696 = vmatprep.subr.mxu0 %v5239_v28  ;;  %v4285_v29 = vld [vmem:[%s6334_s6] ss:$0 sm:$0xff] }
 0x106   :  { %v4446_v34 = vpop.f32.mrb[2].mxu0  ;;  %4698 = vmatprep.mubr.msk.f32.mxu0 %vm5240_vm2, %v5239_v28 }
 0x107   :  { %v315_v35 = vadd.f32 %v4483_v33, %v4445_v31  ;;  %v4484_v36 = vpop.f32.mrb[2].mxu1  ;;  %v4447_v37 = vpop.f32.mrb[3].mxu0 }
 0x108   :  { %v4448_v38 = vadd.f32 %v4447_v37, %v4446_v34  ;;  %v4485_v39 = vpop.f32.mrb[3].mxu1 }
 0x109   :  { %v4486_v40 = vadd.f32 %v4485_v39, %v4484_v36 }
 0x10b   :  { %v320_v41 = vadd.f32 %v4486_v40, %v4448_v38 }
 0x122   :  { %v4519_v42 = vpop.f32.mrb[4].mxu0 }
 0x123   :  { %v4520_v43 = vpop.f32.mrb[5].mxu0 }
 0x124   :  { %v4521_v44 = vadd.f32 %v4520_v43, %v4519_v42 }
 0x126   :  { %v390_v46 = vadd.f32 %v4521_v44, %v315_v35  ;;  %v4522_v47 = vpop.f32.mrb[6].mxu0 }
 0x127   :  { %v4523_v48 = vpop.f32.mrb[7].mxu0 }
 0x128   :  { %v5684_v49 = vadd.f32 %v390_v46, %v63_v45  ;;  %v4524_v50 = vadd.f32 %v4523_v48, %v4522_v47 }
 0x12a   :  { %v395_v52 = vadd.f32 %v4524_v50, %v320_v41  ;;  %v403_v53 = vsel %vm402_vm0, %v5684_v49, 0.0  ;;  %v413_v54 = vmul.f32 %v5684_v49, %v5684_v49 }
 0x12b   :  { %404 = vadd.xlane.f32.xlu0 %v403_v53 }
 0x12c   :  { %v5693_v55 = vadd.f32 %v395_v52, %v64_v51  ;;  %v415_v56 = vsel %vm402_vm0, %v413_v54, 0.0 }
 0x12d   :  { %416 = vadd.xlane.f32.xlu1 %v415_v56 }
 0x12e   :  { %v407_v57 = vsel %vm406_vm1, %v5693_v55, 0.0  ;;  %v414_v58 = vmul.f32 %v5693_v55, %v5693_v55 }
 0x12f   :  { %408 = vadd.xlane.f32.xlu0 %v407_v57 }
 0x130   :  { %v418_v59 = vsel %vm406_vm1, %v414_v58, 0.0 }
 0x131   :  { %419 = vadd.xlane.f32.xlu1 %v418_v59 }
 0x1b8   :  { %v405_v2 = vpop.xlane.xlu0 %404 }
 0x1b9   :  { %v411_v3 = vmul.f32 0.03125, %v405_v2 }
 0x1ba   :  { %v417_v4 = vpop.xlane.xlu1 %416 }
 0x1bb   :  { %v423_v5 = vmul.f32 %v411_v3, %v411_v3  ;;  %v421_v6 = vmul.f32 0.03125, %v417_v4  ;;  %v427_v16 = vsub.f32 %v5684_v49, %v411_v3 }
 0x1bc   :  { %v409_v7 = vpop.xlane.xlu0 %408 }
 0x1bd   :  { %v425_v8 = vsub.f32 %v421_v6, %v423_v5  ;;  %v412_v9 = vmul.f32 0.03125, %v409_v7 }
 0x1be   :  { %v420_v10 = vpop.xlane.xlu1 %419 }
 0x1bf   :  { %v429_v11 = vadd.f32 1e-06, %v425_v8  ;;  %v424_v12 = vmul.f32 %v412_v9, %v412_v9  ;;  %v422_v13 = vmul.f32 0.03125, %v420_v10  ;;  %v428_v21 = vsub.f32 %v5693_v55, %v412_v9 }
 0x1c1   :  { %5125 = vrsqrt.f32 %v429_v11  ;;  %v426_v14 = vsub.f32 %v422_v13, %v424_v12 }
 0x1c3   :  { %v430_v15 = vadd.f32 1e-06, %v426_v14 }
 0x1c5   :  { %5127 = vrsqrt.f32 %v430_v15 }
 0x1cb   :  { %v5126_v17 = vpop.eup %5125 }
 0x1cc   :  { %v433_v19 = vmul.f32 %v5126_v17, %v427_v16 }
 0x1ce   :  { %v441_v22 = vmul.f32 %v4283_v18, %v433_v19 }
 0x1cf   :  { %v5128_v23 = vpop.eup %5127 }
 0x1d0   :  { %v434_v24 = vmul.f32 %v5128_v23, %v428_v21  ;;  %v449_v25 = vadd.f32 %v4284_v20, %v441_v22 }
 0x1d2   :  { %v442_v26 = vmul.f32 %v4283_v18, %v434_v24  ;;  %4658 = vmatprep.mubr.msk.f32.mxu1 %vm402_vm0, %v449_v25 }
 0x1d4   :  { %v450_v27 = vadd.f32 %v4284_v20, %v442_v26 }
 0x1d6   :  { %4659 = vmatmul.mubr.msk.f32.vlgmr.msra.gmra.mrb[4].mxu1 %vm402_vm0, %v450_v27 }
 0x1d7   :  { %4663 = vmatprep.mubr.msk.f32.mxu1 %vm5240_vm2, %v5239_v28 }
 0x2a9   :  { %v4660_v30 = vpop.f32.mrb[4].mxu1 }
 0x2aa   :  { %v5732_v31 = vadd.f32 %v4660_v30, %v4285_v29  ;;  %v534_v32 = vpop.f32.mrb[5].mxu1 }
 0x2ab   :  { %v5734_v33 = vadd.f32 %v4285_v29, %v534_v32 }
 0x2ac   :  { %v1234_v11 = vrot.slane %v5732_v31, 5 }
 0x2ad   :  { %544 = vrot.lane.b32.xlu0 %v5734_v33, %s5241_s22  ;;  %v1233_v12 = vrot.slane %v5734_v33, 5 }
 0x2af   :  { %v5792_v13 = vsel %vm1232_vm7, %v1233_v12, %v1234_v11 }
 0x2b1   :  { %715 = vrot.lane.b32.xlu0 %v5734_v33, %s5242_s2 }
 0x31f   :  { %v545_v34 = vpop.permute.xlu0 %544 }
 0x320   :  { %4662 = vmatpush3.xpose.msk.msra.mxu1 %vm546_vm3, %v545_v34 }
 0x321   :  { %4666 = vmatprep.subr.mxu1 %v5239_v28 }
 0x323   :  { %4664 = vmatmul.mubr.msk.f32.vlgmr.msra.gmra.mrb[6].mxu1 %vm546_vm3, %v5734_v33  ;;  %v716_v48 = vpop.permute.xlu0 %715 }
 0x324   :  { %4668 = vmatprep.mubr.msk.f32.mxu1 %vm5240_vm2, %v5239_v28 }
 0x3f6   :  { %v617_v35 = vpop.f32.mrb[6].mxu1 }
 0x3f7   :  { %v621_v36 = vmul.f32 0.35355338, %v617_v35  ;;  %v4665_v37 = vpop.f32.mrb[7].mxu1 }
 0x3f9   :  { %v623_v38 = vsel %vm622_vm4, %v621_v36, -inf }
 0x3fa   :  { %624 = vmax.xlane.f32.xlu1 %v623_v38 }
 0x40b   :  { %634 = vrot.lane.b32.xlu1 %v5734_v33, %s6358_s23 }
 0x487   :  { %v625_v39 = vpop.xlane.xlu1 %624 }
 0x488   :  { %v626_v40 = vsub.f32 %v621_v36, %v625_v39 }
 0x48a   :  { %v627_v41 = vmul.f32 1.442695, %v626_v40 }
 0x48b   :  { %v635_v42 = vpop.permute.xlu1 %634 }
 0x48c   :  { %5129 = vpow2.f32 %v627_v41  ;;  %4667 = vmatpush3.msk.msra.mxu1 %vm640_vm5, %v635_v42 }
 0x48d   :  { %4671 = vmatprep.subr.mxu1 %v5239_v28 }
 0x496   :  { %v5130_v43 = vpop.eup %5129 }
 0x497   :  { %v629_v44 = vsel %vm622_vm4, %v5130_v43, 0.0 }
 0x498   :  { %630 = vadd.xlane.f32.xlu1 %v629_v44 }
 0x4a9   :  { %713 = vrot.lane.b32.xlu1 %v5734_v33, %s5244_s24 }
 0x525   :  { %v631_v45 = vpop.xlane.xlu1 %630 }
 0x526   :  { %5131 = vrcp.f32 %v631_v45 }
 0x529   :  { %v714_v50 = vpop.permute.xlu1 %713 }
 0x530   :  { %v5132_v46 = vpop.eup %5131 }
 0x531   :  { %v633_v47 = vmul.f32 %v5132_v46, %v5130_v43 }
 0x533   :  { %4669 = vmatmul.mubr.msk.f32.vlgmr.msra.gmra.mrb[8].mxu1 %vm636_vm6, %v633_v47 }
 0x534   :  { %4672 = vmatpush3.xpose.msk.msra.mxu1 %vm546_vm3, %v716_v48  ;;  %4673 = vmatprep.mubr.msk.f32.mxu1 %vm5240_vm2, %v5239_v28 }
 0x535   :  { %4676 = vmatprep.subr.mxu1 %v5239_v28 }
 0x537   :  { %4674 = vmatmul.mubr.msk.f32.vlgmr.msra.gmra.mrb[10].mxu1 %vm546_vm3, %v714_v50 }
 0x538   :  { %4678 = vmatprep.mubr.msk.f32.mxu1 %vm5240_vm2, %v5239_v28 }
 0x606   :  { %v5762_v51 = vpop.f32.mrb[8].mxu1 }
 0x607   :  { %v4670_v52 = vpop.f32.mrb[9].mxu1 }
 0x60a   :  { %v787_v53 = vpop.f32.mrb[10].mxu1 }
 0x60b   :  { %v791_v54 = vmul.f32 0.35355338, %v787_v53  ;;  %v4675_v56 = vpop.f32.mrb[11].mxu1 }
 0x60d   :  { %v792_v57 = vsel %vm622_vm4, %v791_v54, -inf }
 0x60e   :  { %793 = vmax.xlane.f32.xlu0 %v792_v57 }
 0x624   :  { %803 = vrot.lane.b32.xlu0 %v5734_v33, %s6352_s25 }
 0x628   :  { %880 = vrot.lane.b32.xlu0 %v5734_v33, %s5246_s3 }
 0x69b   :  { %v794_v58 = vpop.xlane.xlu0 %793 }
 0x69c   :  { %v795_v59 = vsub.f32 %v791_v54, %v794_v58 }
 0x69e   :  { %v796_v60 = vmul.f32 1.442695, %v795_v59 }
 0x69f   :  { %v804_v61 = vpop.permute.xlu0 %803 }
 0x6a0   :  { %5133 = vpow2.f32 %v796_v60  ;;  %4677 = vmatpush3.msk.msra.mxu1 %vm640_vm5, %v804_v61 }
 0x6a1   :  { %4681 = vmatprep.subr.mxu1 %v5239_v28 }
 0x6a3   :  { %v881_v4 = vpop.permute.xlu0 %880 }
 0x6aa   :  { %v5134_v62 = vpop.eup %5133 }
 0x6ab   :  { %v798_v63 = vsel %vm622_vm4, %v5134_v62, 0.0 }
 0x6ac   :  { %799 = vadd.xlane.f32.xlu1 %v798_v63 }
 0x6bd   :  { %882 = vrot.lane.b32.xlu1 %v5734_v33, %s5247_s26 }
 0x739   :  { %v800_v0 = vpop.xlane.xlu1 %799 }
 0x73a   :  { %5135 = vrcp.f32 %v800_v0 }
 0x73d   :  { %v883_v3 = vpop.permute.xlu1 %882 }
 0x744   :  { %v5136_v1 = vpop.eup %5135 }
 0x745   :  { %v802_v2 = vmul.f32 %v5136_v1, %v5134_v62 }
 0x747   :  { %4679 = vmatmul.mubr.msk.f32.vlgmr.msra.gmra.mrb[12].mxu1 %vm636_vm6, %v802_v2 }
 0x748   :  { %4682 = vmatpush3.xpose.msk.msra.mxu1 %vm546_vm3, %v883_v3  ;;  %4683 = vmatprep.mubr.msk.f32.mxu1 %vm5240_vm2, %v5239_v28 }
 0x749   :  { %4686 = vmatprep.subr.mxu1 %v5239_v28 }
 0x74b   :  { %4684 = vmatmul.mubr.msk.f32.vlgmr.msra.gmra.mrb[14].mxu1 %vm546_vm3, %v881_v4 }
 0x74c   :  { %4688 = vmatprep.mubr.msk.f32.mxu1 %vm5240_vm2, %v5239_v28 }
 0x81a   :  { %v5782_v5 = vpop.f32.mrb[12].mxu1 }
 0x81b   :  { %v4680_v6 = vpop.f32.mrb[13].mxu1 }
 0x81e   :  { %v954_v7 = vpop.f32.mrb[14].mxu1 }
 0x81f   :  { %v958_v8 = vmul.f32 0.35355338, %v954_v7  ;;  %v4685_v9 = vpop.f32.mrb[15].mxu1 }
 0x821   :  { %v959_v10 = vsel %vm622_vm4, %v958_v8, -inf }
 0x822   :  { %960 = vmax.xlane.f32.xlu1 %v959_v10 }
 0x833   :  { %1049 = vrot.lane.b32.xlu1 %v5734_v33, %s6360_s27 }
 0x837   :  { %1047 = vrot.lane.b32.xlu1 %v5734_v33, %s6362_s28 }
 0x83b   :  { %1403 = vrot.lane.b32.xlu1 %v5792_v13, %s5242_s2 }
 0x83f   :  { %1570 = vrot.lane.b32.xlu1 %v5792_v13, %s5247_s26 }
 0x843   :  { %1737 = vrot.lane.b32.xlu1 %v5792_v13, %s6360_s27 }
 0x8af   :  { %v961_v14 = vpop.xlane.xlu1 %960 }
 0x8b0   :  { %v962_v15 = vsub.f32 %v958_v8, %v961_v14 }
 0x8b2   :  { %v963_v16 = vmul.f32 1.442695, %v962_v15 }
 0x8b3   :  { %v1050_v21 = vpop.permute.xlu1 %1049 }
 0x8b4   :  { %5137 = vpow2.f32 %v963_v16 }
 0x8b7   :  { %v1048_v23 = vpop.permute.xlu1 %1047 }
 0x8bb   :  { %v1404_v26 = vpop.permute.xlu1 %1403 }
 0x8be   :  { %v5138_v17 = vpop.eup %5137 }
 0x8bf   :  { %v965_v18 = vsel %vm622_vm4, %v5138_v17, 0.0  ;;  %v1571_v29 = vpop.permute.xlu1 %1570 }
 0x8c0   :  { %966 = vadd.xlane.f32.xlu0 %v965_v18 }
 0x8c3   :  { %v1738_v31 = vpop.permute.xlu1 %1737 }
 0x8d6   :  { %970 = vrot.lane.b32.xlu0 %v5734_v33, %s6356_s29 }
 0x8da   :  { %1236 = vrot.lane.b32.xlu0 %v5792_v13, %s5241_s22 }
 0x8de   :  { %1401 = vrot.lane.b32.xlu0 %v5792_v13, %s5244_s24 }
 0x8e2   :  { %1568 = vrot.lane.b32.xlu0 %v5792_v13, %s5246_s3 }
 0x8e6   :  { %1735 = vrot.lane.b32.xlu0 %v5792_v13, %s6362_s28 }
 0x94d   :  { %v967_v19 = vpop.xlane.xlu0 %966 }
 0x94e   :  { %5139 = vrcp.f32 %v967_v19 }
 0x951   :  { %v971_v20 = vpop.permute.xlu0 %970 }
 0x952   :  { %4687 = vmatpush3.msk.msra.mxu1 %vm640_vm5, %v971_v20 }
 0x953   :  { %4691 = vmatprep.subr.mxu1 %v5239_v28 }
 0x955   :  { %v1237_v25 = vpop.permute.xlu0 %1236 }
 0x958   :  { %v5140_v22 = vpop.eup %5139 }
 0x959   :  { %v969_v24 = vmul.f32 %v5140_v22, %v5138_v17  ;;  %v1402_v27 = vpop.permute.xlu0 %1401 }
 0x95b   :  { %4689 = vmatmul.mubr.msk.f32.vlgmr.msra.gmra.mrb[16].mxu1 %vm636_vm6, %v969_v24 }
 0x95c   :  { %4692 = vmatpush3.xpose.msk.msra.mxu1 %vm546_vm3, %v1050_v21  ;;  %4693 = vmatprep.mubr.msk.f32.mxu1 %vm5240_vm2, %v5239_v28 }
 0x95d   :  { %4701 = vmatprep.subr.mxu1 %v5239_v28  ;;  %v1569_v30 = vpop.permute.xlu0 %1568 }
 0x95f   :  { %4694 = vmatmul.mubr.msk.f32.vlgmr.msra.gmra.mrb[18].mxu1 %vm546_vm3, %v1048_v23 }
 0x960   :  { %4702 = vmatpush3.xpose.msk.msra.mxu1 %vm546_vm3, %v1237_v25  ;;  %4703 = vmatprep.mubr.msk.f32.mxu1 %vm5240_vm2, %v5239_v28 }
 0x961   :  { %4711 = vmatprep.subr.mxu1 %v5239_v28  ;;  %v1736_v32 = vpop.permute.xlu0 %1735 }
 0x963   :  { %4704 = vmatmul.mubr.msk.f32.vlgmr.msra.gmra.mrb[20].mxu1 %vm546_vm3, %v5792_v13 }
 0x964   :  { %4712 = vmatpush3.xpose.msk.msra.mxu1 %vm546_vm3, %v1404_v26  ;;  %4713 = vmatprep.mubr.msk.f32.mxu1 %vm5240_vm2, %v5239_v28 }
 0x965   :  { %4721 = vmatprep.subr.mxu1 %v5239_v28 }
 0x967   :  { %4714 = vmatmul.mubr.msk.f32.vlgmr.msra.gmra.mrb[22].mxu1 %vm546_vm3, %v1402_v27 }
 0x968   :  { %4722 = vmatpush3.xpose.msk.msra.mxu1 %vm546_vm3, %v1571_v29  ;;  %4723 = vmatprep.mubr.msk.f32.mxu1 %vm5240_vm2, %v5239_v28 }
 0x969   :  { %4731 = vmatprep.subr.mxu1 %v5239_v28 }
 0x96b   :  { %4724 = vmatmul.mubr.msk.f32.vlgmr.msra.gmra.mrb[24].mxu1 %vm546_vm3, %v1569_v30 }
 0x96c   :  { %4732 = vmatpush3.xpose.msk.msra.mxu1 %vm546_vm3, %v1738_v31  ;;  %4733 = vmatprep.mubr.msk.f32.mxu1 %vm5240_vm2, %v5239_v28 }
 0x96f   :  { %4734 = vmatmul.mubr.msk.f32.vlgmr.msra.gmra.mrb[26].mxu1 %vm546_vm3, %v1736_v32 }
 0xa2e   :  { %v5839_v34 = vpop.f32.mrb[16].mxu1 }
 0xa2f   :  { %v4690_v35 = vpop.f32.mrb[17].mxu1 }
 0xa32   :  { %v1121_v36 = vpop.f32.mrb[18].mxu1 }
 0xa33   :  { %v1125_v37 = vmul.f32 0.35355338, %v1121_v36  ;;  %v4695_v38 = vpop.f32.mrb[19].mxu1 }
 0xa35   :  { %v1126_v39 = vsel %vm622_vm4, %v1125_v37, -inf }
 0xa36   :  { %1127 = vmax.xlane.f32.xlu1 %v1126_v39  ;;  %v1308_v40 = vpop.f32.mrb[20].mxu1 }
 0xa37   :  { %v1312_v41 = vmul.f32 0.35355338, %v1308_v40  ;;  %v4705_v42 = vpop.f32.mrb[21].mxu1 }
 0xa39   :  { %v1313_v43 = vsel %vm622_vm4, %v1312_v41, -inf }
 0xa3a   :  { %1314 = vmax.xlane.f32.xlu0 %v1313_v43  ;;  %v1475_v44 = vpop.f32.mrb[22].mxu1 }
 0xa3b   :  { %v1479_v45 = vmul.f32 0.35355338, %v1475_v44  ;;  %v4715_v46 = vpop.f32.mrb[23].mxu1  ;;  %v1921_v44 = vld [vmem:[%s6335_s7] sm:$0xff] }
 0xa3d   :  { %v1480_v47 = vsel %vm622_vm4, %v1479_v45, -inf }
 0xa3e   :  { %1481 = vmax.xlane.f32.xlu0 %v1480_v47  ;;  %v1642_v48 = vpop.f32.mrb[24].mxu1 }
 0xa3f   :  { %v1646_v50 = vmul.f32 0.35355338, %v1642_v48  ;;  %v4725_v52 = vpop.f32.mrb[25].mxu1 }
 0xa40   :  { %v1924_v52 = vld [vmem:[%s6335_s7 + $0x18] sm:$0xff] }
 0xa41   :  { %v1647_v53 = vsel %vm622_vm4, %v1646_v50, -inf }
 0xa42   :  { %1648 = vmax.xlane.f32.xlu0 %v1647_v53  ;;  %v1809_v54 = vpop.f32.mrb[26].mxu1 }
 0xa43   :  { %v1813_v56 = vmul.f32 0.35355338, %v1809_v54  ;;  %v4735_v57 = vpop.f32.mrb[27].mxu1 }
 0xa45   :  { %v1814_v58 = vsel %vm622_vm4, %v1813_v56, -inf }
 0xa46   :  { %1815 = vmax.xlane.f32.xlu1 %v1814_v58 }
 0xa57   :  { %1137 = vrot.lane.b32.xlu1 %v5734_v33, %s6354_s0 }
 0xac3   :  { %v1128_v59 = vpop.xlane.xlu1 %1127 }
 0xac4   :  { %v1129_v60 = vsub.f32 %v1125_v37, %v1128_v59 }
 0xac6   :  { %v1130_v61 = vmul.f32 1.442695, %v1129_v60 }
 0xac7   :  { %v1315_v62 = vpop.xlane.xlu0 %1314 }
 0xac8   :  { %5141 = vpow2.f32 %v1130_v61  ;;  %v1316_v63 = vsub.f32 %v1312_v41, %v1315_v62 }
 0xaca   :  { %v1317_v0 = vmul.f32 1.442695, %v1316_v63 }
 0xacb   :  { %v1482_v1 = vpop.xlane.xlu0 %1481 }
 0xacc   :  { %5143 = vpow2.f32 %v1317_v0  ;;  %v1483_v2 = vsub.f32 %v1479_v45, %v1482_v1  ;;  %v1922_v45 = vld [vmem:[%s6335_s7 + $0x8] sm:$0xff] }
 0xacd   :  { %v5029_v46 = vpack.c.bf16 %v1922_v45, %v1921_v44  ;;  %v4323_v44 = vld [vmem:[%s6337_s9] ss:$0 sm:$0xff] }
 0xace   :  { %v1484_v3 = vmul.f32 1.442695, %v1483_v2 }
 0xacf   :  { %v1649_v4 = vpop.xlane.xlu0 %1648  ;;  %5030 = vmatprep.subr.bf16.mxu1 %v5029_v46 }
 0xad0   :  { %5145 = vpow2.f32 %v1484_v3  ;;  %v1650_v6 = vsub.f32 %v1646_v50, %v1649_v4  ;;  %5032 = vmatpush3.bf16.msra.mxu1 %v5029_v46  ;;  %v1923_v50 = vld [vmem:[%s6335_s7 + $0x10] sm:$0xff]  ;;  %v4324_v46 = vld [vmem:[%s6338_s10] ss:$0 sm:$0xff] }
 0xad1   :  { %v5033_v53 = vpack.c.bf16 %v1924_v52, %v1923_v50 }
 0xad2   :  { %v5142_v7 = vpop.eup %5141  ;;  %v1651_v8 = vmul.f32 1.442695, %v1650_v6 }
 0xad3   :  { %v1816_v9 = vpop.xlane.xlu1 %1815  ;;  %v1132_v10 = vsel %vm622_vm4, %v5142_v7, 0.0  ;;  %5034 = vmatprep.subr.bf16.mxu1 %v5033_v53 }
 0xad4   :  { %5147 = vpow2.f32 %v1651_v8  ;;  %v1817_v33 = vsub.f32 %v1813_v56, %v1816_v9  ;;  %1133 = vadd.xlane.f32.xlu0 %v1132_v10  ;;  %5036 = vmatpush3.bf16.msra.mxu1 %v5033_v53 }
 0xad6   :  { %v5144_v11 = vpop.eup %5143  ;;  %v1818_v12 = vmul.f32 1.442695, %v1817_v33 }
 0xad7   :  { %v1138_v14 = vpop.permute.xlu1 %1137  ;;  %v1319_v15 = vsel %vm622_vm4, %v5144_v11, 0.0 }
 0xad8   :  { %5149 = vpow2.f32 %v1818_v12  ;;  %4697 = vmatpush3.msk.msra.mxu0 %vm640_vm5, %v1138_v14  ;;  %1320 = vadd.xlane.f32.xlu1 %v1319_v15 }
 0xad9   :  { %4706 = vmatprep.subr.mxu0 %v5239_v28 }
 0xada   :  { %v5146_v16 = vpop.eup %5145 }
 0xadb   :  { %v1486_v17 = vsel %vm622_vm4, %v5146_v16, 0.0 }
 0xadc   :  { %1487 = vadd.xlane.f32.xlu0 %v1486_v17 }
 0xade   :  { %v5148_v18 = vpop.eup %5147 }
 0xadf   :  { %v1653_v19 = vsel %vm622_vm4, %v5148_v18, 0.0 }
 0xae0   :  { %1654 = vadd.xlane.f32.xlu1 %v1653_v19 }
 0xae2   :  { %v5150_v20 = vpop.eup %5149 }
 0xae3   :  { %v1820_v21 = vsel %vm622_vm4, %v5150_v20, 0.0 }
 0xae4   :  { %1821 = vadd.xlane.f32.xlu0 %v1820_v21  ;;  %v2064_v21 = vld [vmem:[%s6339_s11] sm:$0xff] }
 0xaf1   :  { %1491 = vrot.lane.b32.xlu1 %v5792_v13, %s6352_s25  ;;  %s6366_s25 = smov 16  }
 0xaf5   :  { %1658 = vrot.lane.b32.xlu1 %v5792_v13, %s6356_s29  ;;  %s6382_s29 = smov 16  }
 0xaf9   :  { %1825 = vrot.lane.b32.xlu1 %v5792_v13, %s6354_s0  ;;  %s6383_s0 = smov 24  }
 0xafa   :  { %1324 = vrot.lane.b32.xlu0 %v5792_v13, %s6358_s23  ;;  %s6364_s23 = smov 24  }
 0xafe   :  { %1215 = vrot.lane.b32.xlu0 %v5782_v5, %s5252_s30 }
 0xb61   :  { %v1134_v22 = vpop.xlane.xlu0 %1133 }
 0xb62   :  { %5151 = vrcp.f32 %v1134_v22  ;;  %v2065_v22 = vld [vmem:[%s6339_s11 + $0x8] sm:$0xff] }
 0xb65   :  { %v1321_v23 = vpop.xlane.xlu1 %1320 }
 0xb66   :  { %5153 = vrcp.f32 %v1321_v23  ;;  %v2066_v23 = vld [vmem:[%s6339_s11 + $0x10] sm:$0xff] }
 0xb69   :  { %v1488_v24 = vpop.xlane.xlu0 %1487 }
 0xb6a   :  { %5155 = vrcp.f32 %v1488_v24  ;;  %v5037_v24 = vpack.c.bf16 %v2065_v22, %v2064_v21 }
 0xb6c   :  { %v5152_v25 = vpop.eup %5151 }
 0xb6d   :  { %v1136_v26 = vmul.f32 %v5152_v25, %v5142_v7  ;;  %v1655_v27 = vpop.xlane.xlu1 %1654  ;;  %v2067_v25 = vld [vmem:[%s6339_s11 + $0x18] sm:$0xff] }
 0xb6e   :  { %5157 = vrcp.f32 %v1655_v27 }
 0xb6f   :  { %4699 = vmatmul.mubr.msk.f32.vlgmr.msra.gmra.mrb[8].mxu0 %vm636_vm6, %v1136_v26  ;;  %v5041_v26 = vpack.c.bf16 %v2067_v25, %v2066_v23 }
 0xb70   :  { %4708 = vmatprep.mubr.msk.f32.mxu0 %vm5240_vm2, %v5239_v28  ;;  %v5154_v29 = vpop.eup %5153 }
 0xb71   :  { %v1822_v13 = vpop.xlane.xlu0 %1821  ;;  %v1492_v30 = vpop.permute.xlu1 %1491  ;;  %v1323_v5 = vmul.f32 %v5154_v29, %v5144_v11  ;;  %v4322_v11 = vld [vmem:[%s6336_s8] ss:$0 sm:$0xff] }
 0xb72   :  { %5159 = vrcp.f32 %v1822_v13 }
 0xb74   :  { %v5156_v32 = vpop.eup %5155 }
 0xb75   :  { %v1325_v31 = vpop.permute.xlu0 %1324  ;;  %v1490_v35 = vmul.f32 %v5156_v32, %v5146_v16  ;;  %v1659_v36 = vpop.permute.xlu1 %1658 }
 0xb76   :  { %4707 = vmatpush3.msk.msra.mxu0 %vm640_vm5, %v1325_v31 }
 0xb77   :  { %4709 = vmatmul.mubr.msk.f32.vlgmr.msra.gmra.mrb[10].mxu0 %vm636_vm6, %v1323_v5  ;;  %4716 = vmatprep.subr.mxu0 %v5239_v28 }
 0xb78   :  { %4717 = vmatpush3.msk.msra.mxu0 %vm640_vm5, %v1492_v30  ;;  %4718 = vmatprep.mubr.msk.f32.mxu0 %vm5240_vm2, %v5239_v28  ;;  %v5158_v37 = vpop.eup %5157 }
 0xb79   :  { %4726 = vmatprep.subr.mxu0 %v5239_v28  ;;  %v1657_v38 = vmul.f32 %v5158_v37, %v5148_v18  ;;  %v1826_v40 = vpop.permute.xlu1 %1825  ;;  %v1216_v61 = vpop.permute.xlu0 %1215 }
 0xb7a   :  { %v1226_v4 = vsel %vm546_vm3, %v5762_v51, %v1216_v61  ;;  %v2177_v61 = vld [vmem:[%s6341_s13 + $0x18] sm:$0xff] }
 0xb7b   :  { %4719 = vmatmul.mubr.msk.f32.vlgmr.msra.gmra.mrb[12].mxu0 %vm636_vm6, %v1490_v35 }
 0xb7c   :  { %4727 = vmatpush3.msk.msra.mxu0 %vm640_vm5, %v1659_v36  ;;  %4728 = vmatprep.mubr.msk.f32.mxu0 %vm5240_vm2, %v5239_v28  ;;  %v5160_v39 = vpop.eup %5159 }
 0xb7d   :  { %4736 = vmatprep.subr.mxu0 %v5239_v28  ;;  %v1824_v41 = vmul.f32 %v5160_v39, %v5150_v20 }
 0xb7f   :  { %4729 = vmatmul.mubr.msk.f32.vlgmr.msra.gmra.mrb[14].mxu0 %vm636_vm6, %v1657_v38 }
 0xb80   :  { %4737 = vmatpush3.msk.msra.mxu0 %vm640_vm5, %v1826_v40  ;;  %4738 = vmatprep.mubr.msk.f32.mxu0 %vm5240_vm2, %v5239_v28 }
 0xb81   :  { %5038 = vmatprep.subr.bf16.mxu0 %v5037_v24 }
 0xb83   :  { %4739 = vmatmul.mubr.msk.f32.vlgmr.msra.gmra.mrb[16].mxu0 %vm636_vm6, %v1824_v41 }
 0xb84   :  { %5040 = vmatpush3.bf16.msra.mxu0 %v5037_v24 }
 0xb85   :  { %5042 = vmatprep.subr.bf16.mxu0 %v5041_v26 }
 0xb88   :  { %5044 = vmatpush3.bf16.msra.mxu0 %v5041_v26 }
 0xc42   :  { %v1210_v42 = vpop.f32.mrb[8].mxu0 }
 0xc43   :  { %v4700_v43 = vpop.f32.mrb[9].mxu0 }
 0xc4a   :  { %v1397_v47 = vpop.f32.mrb[10].mxu0 }
 0xc4b   :  { %v4710_v48 = vpop.f32.mrb[11].mxu0 }
 0xc4e   :  { %v1564_v54 = vpop.f32.mrb[12].mxu0 }
 0xc4f   :  { %1903 = vrot.lane.b32.xlu0 %v1564_v54, %s5252_s30  ;;  %v4720_v56 = vpop.f32.mrb[13].mxu0 }
 0xc52   :  { %v1731_v57 = vpop.f32.mrb[14].mxu0 }
 0xc53   :  { %1219 = vrot.lane.b32.xlu0 %v5839_v34, %s6366_s25  ;;  %1907 = vrot.lane.b32.xlu1 %v1731_v57, %s6366_s25  ;;  %v4730_v58 = vpop.f32.mrb[15].mxu0  ;;  %v2174_v57 = vld [vmem:[%s6341_s13] sm:$0xff] }
 0xc54   :  { %v2175_v58 = vld [vmem:[%s6341_s13 + $0x8] sm:$0xff] }
 0xc56   :  { %v1898_v59 = vpop.f32.mrb[16].mxu0 }
 0xc57   :  { %1911 = vrot.lane.b32.xlu1 %v1898_v59, %s6364_s23  ;;  %v4740_v60 = vpop.f32.mrb[17].mxu0  ;;  %v5045_v59 = vpack.c.bf16 %v2175_v58, %v2174_v57 }
 0xc58   :  { %v2176_v60 = vld [vmem:[%s6341_s13 + $0x10] sm:$0xff] }
 0xc59   :  { %5046 = vmatprep.subr.bf16.mxu1 %v5045_v59 }
 0xc5b   :  { %1223 = vrot.lane.b32.xlu1 %v1210_v42, %s6364_s23 }
 0xcc1   :  { %v1904_v62 = vpop.permute.xlu0 %1903 }
 0xcc2   :  { %v1914_v0 = vsel %vm546_vm3, %v1397_v47, %v1904_v62  ;;  %v5049_v62 = vpack.c.bf16 %v2177_v61, %v2176_v60 }
 0xcc5   :  { %v1908_v63 = vpop.permute.xlu1 %1907  ;;  %v1220_v2 = vpop.permute.xlu0 %1219 }
 0xcc6   :  { %v1915_v1 = vsel %vm1227_vm8, %v1914_v0, %v1908_v63  ;;  %v1228_v6 = vsel %vm1227_vm8, %v1226_v4, %v1220_v2  ;;  %v2178_v63 = vld [vmem:[%s6341_s13 + $0x20] sm:$0xff]  ;;  %v2179_v0 = vld [vmem:[%s6341_s13 + $0x28] sm:$0xff]  ;;  %v2181_v2 = vld [vmem:[%s6341_s13 + $0x38] sm:$0xff] }
 0xcc7   :  { %v4325_v4 = vld [vmem:[%s6340_s12] ss:$0 sm:$0xff] }
 0xcc9   :  { %v1912_v34 = vpop.permute.xlu1 %1911 }
 0xcca   :  { %v1916_v3 = vsel %vm1229_vm9, %v1915_v1, %v1912_v34  ;;  %v5053_v1 = vpack.c.bf16 %v2179_v0, %v2178_v63  ;;  %v2180_v34 = vld [vmem:[%s6341_s13 + $0x30] sm:$0xff] }
 0xccb   :  { %v1918_v7 = vrot.slane %v1916_v3, 3  ;;  %v5057_v3 = vpack.c.bf16 %v2181_v2, %v2180_v34 }
 0xccd   :  { %v1224_v8 = vpop.permute.xlu1 %1223 }
 0xcce   :  { %v1230_v9 = vsel %vm1229_vm9, %v1228_v6, %v1224_v8 }
 0xccf   :  { %v1920_v10 = vsel %vm640_vm5, %v1230_v9, %v1918_v7 }
 0xcd0   :  { %4749 = vmatprep.mubr.msk.f32.mxu1 %vm402_vm0, %v1920_v10 }
 0xcd1   :  { %4750 = vmatmul.mubr.msk.f32.vlgmr.msra.gmra.mrb[28].mxu1 %vm402_vm0, %v1918_v7 }
 0xcd2   :  { %5048 = vmatpush3.bf16.msra.mxu1 %v5045_v59 }
 0xcd3   :  { %5050 = vmatprep.subr.bf16.mxu1 %v5049_v62 }
 0xcd6   :  { %5052 = vmatpush3.bf16.msra.mxu1 %v5049_v62 }
 0xcd7   :  { %5054 = vmatprep.subr.bf16.mxu1 %v5053_v1 }
 0xcda   :  { %5056 = vmatpush3.bf16.msra.mxu1 %v5053_v1  ;;  %v4333_v1 = vld [vmem:[%s6375_s20 + $0x1] ss:$0 sm:$0xff] }
 0xcdb   :  { %5058 = vmatprep.subr.bf16.mxu1 %v5057_v3 }
 0xcde   :  { %5060 = vmatpush3.bf16.msra.mxu1 %v5057_v3 }
 0xcdf   :  { %4803 = vmatprep.subr.mxu1 %v5239_v28 }
 0xda4   :  { %v4751_v33 = vpop.f32.mrb[28].mxu1 }
 0xda5   :  { %v2006_v12 = vadd.f32 %v4751_v33, %v5693_v55  ;;  %v1996_v51 = vpop.f32.mrb[29].mxu1 }
 0xda6   :  { %v2005_v14 = vadd.f32 %v1996_v51, %v5684_v49 }
 0xda7   :  { %v5918_v15 = vadd.f32 %v4322_v11, %v2006_v12 }
 0xda8   :  { %v5920_v16 = vadd.f32 %v4322_v11, %v2005_v14 }
 0xda9   :  { %v2021_v17 = vsel %vm406_vm1, %v5918_v15, 0.0  ;;  %v2027_v49 = vmul.f32 %v5918_v15, %v5918_v15 }
 0xdaa   :  { %2022 = vadd.xlane.f32.xlu1 %v2021_v17  ;;  %v2018_v18 = vsel %vm402_vm0, %v5920_v16, 0.0  ;;  %v2026_v19 = vmul.f32 %v5920_v16, %v5920_v16 }
 0xdab   :  { %2019 = vadd.xlane.f32.xlu0 %v2018_v18  ;;  %v2031_v20 = vsel %vm406_vm1, %v2027_v49, 0.0 }
 0xdac   :  { %v2028_v55 = vsel %vm402_vm0, %v2026_v19, 0.0 }
 0xdaf   :  { %2029 = vadd.xlane.f32.xlu0 %v2028_v55 }
 0xdb3   :  { %2032 = vadd.xlane.f32.xlu0 %v2031_v20 }
 0xe37   :  { %v2023_v29 = vpop.xlane.xlu1 %2022 }
 0xe38   :  { %v2020_v27 = vpop.xlane.xlu0 %2019  ;;  %v2025_v5 = vmul.f32 0.03125, %v2023_v29 }
 0xe39   :  { %v2024_v13 = vmul.f32 0.03125, %v2020_v27 }
 0xe3a   :  { %v2037_v37 = vmul.f32 %v2025_v5, %v2025_v5  ;;  %v2041_v47 = vsub.f32 %v5918_v15, %v2025_v5 }
 0xe3b   :  { %v2036_v31 = vmul.f32 %v2024_v13, %v2024_v13  ;;  %v2040_v42 = vsub.f32 %v5920_v16, %v2024_v13  ;;  %v4330_v13 = vld [vmem:[%s6342_s14] ss:$0 sm:$0xff] }
 0xe3c   :  { %v2030_v30 = vpop.xlane.xlu0 %2029 }
 0xe3d   :  { %v2034_v32 = vmul.f32 0.03125, %v2030_v30 }
 0xe3f   :  { %v2038_v35 = vsub.f32 %v2034_v32, %v2036_v31 }
 0xe40   :  { %v2033_v36 = vpop.xlane.xlu0 %2032 }
 0xe41   :  { %v2042_v38 = vadd.f32 1e-06, %v2038_v35  ;;  %v2035_v39 = vmul.f32 0.03125, %v2033_v36 }
 0xe43   :  { %5161 = vrsqrt.f32 %v2042_v38  ;;  %v2039_v40 = vsub.f32 %v2035_v39, %v2037_v37  ;;  %v4335_v39 = vld [vmem:[%s6333_s5 + $0x20] sm:$0xff] }
 0xe45   :  { %v2043_v41 = vadd.f32 1e-06, %v2039_v40  ;;  %v4336_v40 = vld [vmem:[%s6333_s5 + $0x28] sm:$0xff] }
 0xe47   :  { %5163 = vrsqrt.f32 %v2043_v41  ;;  %v4337_v41 = vld [vmem:[%s6333_s5 + $0x30] sm:$0xff] }
 0xe4d   :  { %v5162_v43 = vpop.eup %5161 }
 0xe4e   :  { %v2046_v45 = vmul.f32 %v5162_v43, %v2040_v42  ;;  %v5061_v42 = vpack.c.bf16 %v4336_v40, %v4335_v39  ;;  %v4338_v43 = vld [vmem:[%s6333_s5 + $0x38] sm:$0xff] }
 0xe50   :  { %v2054_v48 = vmul.f32 %v4323_v44, %v2046_v45  ;;  %5062 = vmatprep.subr.bf16.mxu0 %v5061_v42 }
 0xe51   :  { %v5164_v50 = vpop.eup %5163 }
 0xe52   :  { %v2047_v52 = vmul.f32 %v5164_v50, %v2041_v47  ;;  %v2062_v53 = vadd.f32 %v4324_v46, %v2054_v48 }
 0xe54   :  { %v2055_v54 = vmul.f32 %v4323_v44, %v2047_v52  ;;  %4760 = vmatprep.mubr.msk.f32.mxu0 %vm402_vm0, %v2062_v53  ;;  %v5065_v44 = vpack.c.bf16 %v4338_v43, %v4337_v41 }
 0xe56   :  { %v2063_v56 = vadd.f32 %v4324_v46, %v2055_v54 }
 0xe58   :  { %4761 = vmatmul.mubr.msk.f32.vlgmr.msra.gmra.mrb[18].mxu0 %vm402_vm0, %v2063_v56 }
 0xe59   :  { %5064 = vmatpush3.bf16.msra.mxu0 %v5061_v42 }
 0xe5a   :  { %5066 = vmatprep.subr.bf16.mxu0 %v5065_v44 }
 0xe5d   :  { %5068 = vmatpush3.bf16.msra.mxu0 %v5065_v44 }
 0xe5e   :  { %4793 = vmatprep.subr.mxu0 %v5239_v28 }
 0xf2b   :  { %v4762_v6 = vpop.f32.mrb[18].mxu0 }
 0xf2c   :  { %v2153_v7 = vadd.f32 %v4762_v6, %v4325_v4  ;;  %v2147_v8 = vpop.f32.mrb[19].mxu0 }
 0xf2d   :  { %v2148_v9 = vadd.f32 %v4325_v4, %v2147_v8  ;;  %v4334_v4 = vld [vmem:[%s6332_s4 + $0x1] ss:$0 sm:$0xff]  ;;  %s6376_s4 = smov 104  }
 0xf2e   :  { %v2157_v10 = vmul.f32 %v2153_v7, %v2153_v7 }
 0xf2f   :  { %v2156_v33 = vmul.f32 %v2148_v9, %v2148_v9 }
 0xf30   :  { %v2159_v11 = vmul.f32 %v2157_v10, %v2153_v7  ;;  %v4340_v10 = vld [vmem:[%s6334_s6 + $0x1] ss:$0 sm:$0xff]  ;;  %s6377_s6 = smov 72  }
 0xf31   :  { %v2158_v12 = vmul.f32 %v2156_v33, %v2148_v9 }
 0xf32   :  { %v2161_v51 = vmul.f32 0.044715, %v2159_v11 }
 0xf33   :  { %v2160_v14 = vmul.f32 0.044715, %v2158_v12 }
 0xf34   :  { %v2163_v17 = vadd.f32 %v2161_v51, %v2153_v7 }
 0xf35   :  { %v2162_v18 = vadd.f32 %v2160_v14, %v2148_v9 }
 0xf36   :  { %v2165_v19 = vmul.f32 0.7978846, %v2163_v17 }
 0xf37   :  { %v2164_v55 = vmul.f32 0.7978846, %v2162_v18 }
 0xf38   :  { %5165 = vtanh.f32 %v2165_v19 }
 0xf39   :  { %5167 = vtanh.f32 %v2164_v55 }
 0xf42   :  { %v5166_v49 = vpop.eup %5165 }
 0xf43   :  { %v5168_v20 = vpop.eup %5167  ;;  %v2169_v21 = vadd.f32 1.0, %v5166_v49 }
 0xf44   :  { %v2168_v22 = vadd.f32 1.0, %v5168_v20 }
 0xf45   :  { %v2171_v23 = vmul.f32 0.5, %v2169_v21 }
 0xf46   :  { %v2170_v24 = vmul.f32 0.5, %v2168_v22 }
 0xf47   :  { %v2173_v26 = vmul.f32 %v2171_v23, %v2153_v7 }
 0xf48   :  { %v2172_v25 = vmul.f32 %v2170_v24, %v2148_v9 }
 0xf4a   :  { %4779 = vmatprep.mubr.msk.f32.mxu1 %vm2182_vm10, %v2172_v25 }
 0xf4b   :  { %4780 = vmatmul.mubr.msk.f32.vlgmr.msra.gmra.mrb[30].mxu1 %vm2182_vm10, %v2173_v26 }
 0xf4c   :  { %4805 = vmatprep.mubr.msk.f32.mxu1 %vm5240_vm2, %v5239_v28 }
0x101e   :  { %v4781_v27 = vpop.f32.mrb[30].mxu1 }
0x101f   :  { %v2265_v29 = vadd.f32 %v4781_v27, %v5918_v15  ;;  %v2255_v30 = vpop.f32.mrb[31].mxu1 }
0x1020   :  { %v2264_v5 = vadd.f32 %v2255_v30, %v5920_v16 }
0x1021   :  { %v5991_v31 = vadd.f32 %v4330_v13, %v2265_v29 }
0x1022   :  { %v5993_v32 = vadd.f32 %v4330_v13, %v2264_v5 }
0x1023   :  { %v2282_v35 = vsel %vm406_vm1, %v5991_v31, 0.0  ;;  %v2288_v36 = vmul.f32 %v5991_v31, %v5991_v31 }
0x1024   :  { %2283 = vadd.xlane.f32.xlu1 %v2282_v35  ;;  %v2279_v37 = vsel %vm402_vm0, %v5993_v32, 0.0  ;;  %v2287_v15 = vmul.f32 %v5993_v32, %v5993_v32 }
0x1025   :  { %2280 = vadd.xlane.f32.xlu0 %v2279_v37  ;;  %v2292_v16 = vsel %vm406_vm1, %v2288_v36, 0.0 }
0x1026   :  { %v2289_v38 = vsel %vm402_vm0, %v2287_v15, 0.0 }
0x1028   :  { %2293 = vadd.xlane.f32.xlu1 %v2292_v16 }
0x1029   :  { %2290 = vadd.xlane.f32.xlu0 %v2289_v38 }
0x10b1   :  { %v2284_v45 = vpop.xlane.xlu1 %2283 }
0x10b2   :  { %v2286_v46 = vmul.f32 0.03125, %v2284_v45  ;;  %v2281_v47 = vpop.xlane.xlu0 %2280 }
0x10b3   :  { %v2285_v48 = vmul.f32 0.03125, %v2281_v47 }
0x10b4   :  { %v2298_v52 = vmul.f32 %v2286_v46, %v2286_v46  ;;  %v2302_v62 = vsub.f32 %v5991_v31, %v2286_v46 }
0x10b5   :  { %v2294_v50 = vpop.xlane.xlu1 %2293  ;;  %v2297_v56 = vmul.f32 %v2285_v48, %v2285_v48  ;;  %v2301_v0 = vsub.f32 %v5993_v32, %v2285_v48 }
0x10b6   :  { %v2296_v53 = vmul.f32 0.03125, %v2294_v50  ;;  %v2291_v54 = vpop.xlane.xlu0 %2290 }
0x10b7   :  { %v2295_v57 = vmul.f32 0.03125, %v2291_v54 }
0x10b8   :  { %v2300_v58 = vsub.f32 %v2296_v53, %v2298_v52 }
0x10b9   :  { %v2299_v59 = vsub.f32 %v2295_v57, %v2297_v56 }
0x10ba   :  { %v2304_v60 = vadd.f32 1e-06, %v2300_v58 }
0x10bb   :  { %v2303_v61 = vadd.f32 1e-06, %v2299_v59 }
0x10bc   :  { %5169 = vrsqrt.f32 %v2304_v60 }
0x10bd   :  { %5171 = vrsqrt.f32 %v2303_v61 }
0x10c6   :  { %v5170_v63 = vpop.eup %5169 }
0x10c7   :  { %v5172_v34 = vpop.eup %5171  ;;  %v2308_v2 = vmul.f32 %v5170_v63, %v2302_v62 }
0x10c8   :  { %v2307_v3 = vmul.f32 %v5172_v34, %v2301_v0 }
0x10c9   :  { %v2316_v6 = vmul.f32 %v4333_v1, %v2308_v2 }
0x10ca   :  { %v2315_v7 = vmul.f32 %v4333_v1, %v2307_v3 }
0x10cb   :  { %v2324_v9 = vadd.f32 %v4334_v4, %v2316_v6 }
0x10cc   :  { %v2323_v8 = vadd.f32 %v4334_v4, %v2315_v7 }
0x10ce   :  { %4790 = vmatprep.mubr.msk.f32.mxu0 %vm402_vm0, %v2323_v8 }
0x10cf   :  { %4791 = vmatmul.mubr.msk.f32.vlgmr.msra.gmra.mrb[20].mxu0 %vm402_vm0, %v2324_v9 }
0x10d0   :  { %4795 = vmatprep.mubr.msk.f32.mxu0 %vm5240_vm2, %v5239_v28 }
0x11a2   :  { %v4792_v33 = vpop.f32.mrb[20].mxu0 }
0x11a3   :  { %v2410_v11 = vpop.f32.mrb[21].mxu0  ;;  %v2416_v51 = vadd.f32 %v4792_v33, %v4340_v10 }
0x11a4   :  { %v6033_v12 = vadd.f32 %v4340_v10, %v2410_v11 }
0x11a5   :  { %v3103_v14 = vrot.slane %v2416_v51, 5 }
0x11a6   :  { %2587 = vrot.lane.b32.xlu1 %v6033_v12, %s5242_s2  ;;  %2420 = vrot.lane.b32.xlu0 %v6033_v12, %s5241_s22  ;;  %v3102_v17 = vrot.slane %v6033_v12, 5 }
0x11a8   :  { %v6049_v18 = vsel %vm1232_vm7, %v3102_v17, %v3103_v14 }
0x11aa   :  { %2585 = vrot.lane.b32.xlu1 %v6033_v12, %s5244_s24  ;;  %2752 = vrot.lane.b32.xlu0 %v6033_v12, %s5246_s3 }
0x11ae   :  { %2754 = vrot.lane.b32.xlu1 %v6033_v12, %s5247_s26  ;;  %2919 = vrot.lane.b32.xlu0 %v6033_v12, %s6376_s4 }
0x11b2   :  { %2921 = vrot.lane.b32.xlu1 %v6033_v12, %s6377_s6  ;;  %3272 = vrot.lane.b32.xlu0 %v6049_v18, %s5242_s2  ;;  %s6379_s2 = smov 48  }
0x11b6   :  { %3439 = vrot.lane.b32.xlu0 %v6049_v18, %s5247_s26  ;;  %3105 = vrot.lane.b32.xlu1 %v6049_v18, %s5241_s22  ;;  %s6378_s22 = smov 64  }
0x11ba   :  { %3606 = vrot.lane.b32.xlu0 %v6049_v18, %s6377_s6  ;;  %3270 = vrot.lane.b32.xlu1 %v6049_v18, %s5244_s24  ;;  %s6380_s24 = smov 40  }
0x11be   :  { %3437 = vrot.lane.b32.xlu1 %v6049_v18, %s5246_s3  ;;  %s6381_s3 = smov 56  }
0x11c2   :  { %3604 = vrot.lane.b32.xlu1 %v6049_v18, %s6376_s4 }
0x1218   :  { %v2588_v19 = vpop.permute.xlu1 %2587  ;;  %v2421_v55 = vpop.permute.xlu0 %2420 }
0x1219   :  { %4794 = vmatpush3.xpose.msk.msra.mxu0 %vm546_vm3, %v2421_v55  ;;  %4804 = vmatpush3.xpose.msk.msra.mxu1 %vm546_vm3, %v2588_v19 }
0x121a   :  { %4813 = vmatprep.subr.mxu1 %v5239_v28  ;;  %4798 = vmatprep.subr.mxu0 %v5239_v28 }
0x121c   :  { %v2586_v49 = vpop.permute.xlu1 %2585  ;;  %4796 = vmatmul.mubr.msk.f32.vlgmr.msra.gmra.mrb[22].mxu0 %vm546_vm3, %v6033_v12  ;;  %v2753_v20 = vpop.permute.xlu0 %2752 }
0x121d   :  { %4806 = vmatmul.mubr.msk.f32.vlgmr.msra.gmra.mrb[32].mxu1 %vm546_vm3, %v2586_v49  ;;  %4800 = vmatprep.mubr.msk.f32.mxu0 %vm5240_vm2, %v5239_v28 }
0x121e   :  { %4815 = vmatprep.mubr.msk.f32.mxu1 %vm5240_vm2, %v5239_v28 }
0x1220   :  { %v2755_v21 = vpop.permute.xlu1 %2754  ;;  %v2920_v22 = vpop.permute.xlu0 %2919 }
0x1221   :  { %4814 = vmatpush3.xpose.msk.msra.mxu1 %vm546_vm3, %v2755_v21 }
0x1222   :  { %4823 = vmatprep.subr.mxu1 %v5239_v28 }
0x1224   :  { %v2922_v23 = vpop.permute.xlu1 %2921  ;;  %4816 = vmatmul.mubr.msk.f32.vlgmr.msra.gmra.mrb[34].mxu1 %vm546_vm3, %v2753_v20  ;;  %v3273_v24 = vpop.permute.xlu0 %3272 }
0x1225   :  { %4824 = vmatpush3.xpose.msk.msra.mxu1 %vm546_vm3, %v2922_v23  ;;  %4825 = vmatprep.mubr.msk.f32.mxu1 %vm5240_vm2, %v5239_v28 }
0x1226   :  { %4833 = vmatprep.subr.mxu1 %v5239_v28 }
0x1228   :  { %4826 = vmatmul.mubr.msk.f32.vlgmr.msra.gmra.mrb[36].mxu1 %vm546_vm3, %v2920_v22  ;;  %v3106_v25 = vpop.permute.xlu1 %3105  ;;  %v3440_v27 = vpop.permute.xlu0 %3439 }
0x1229   :  { %4834 = vmatpush3.xpose.msk.msra.mxu1 %vm546_vm3, %v3106_v25  ;;  %4835 = vmatprep.mubr.msk.f32.mxu1 %vm5240_vm2, %v5239_v28 }
0x122a   :  { %4843 = vmatprep.subr.mxu1 %v5239_v28 }
0x122c   :  { %4836 = vmatmul.mubr.msk.f32.vlgmr.msra.gmra.mrb[38].mxu1 %vm546_vm3, %v6049_v18  ;;  %v3271_v26 = vpop.permute.xlu1 %3270  ;;  %v3607_v29 = vpop.permute.xlu0 %3606 }
0x122d   :  { %4844 = vmatpush3.xpose.msk.msra.mxu1 %vm546_vm3, %v3273_v24  ;;  %4845 = vmatprep.mubr.msk.f32.mxu1 %vm5240_vm2, %v5239_v28 }
0x122e   :  { %4853 = vmatprep.subr.mxu1 %v5239_v28 }
0x1230   :  { %4846 = vmatmul.mubr.msk.f32.vlgmr.msra.gmra.mrb[40].mxu1 %vm546_vm3, %v3271_v26  ;;  %v3438_v13 = vpop.permute.xlu1 %3437 }
0x1231   :  { %4854 = vmatpush3.xpose.msk.msra.mxu1 %vm546_vm3, %v3440_v27  ;;  %4855 = vmatprep.mubr.msk.f32.mxu1 %vm5240_vm2, %v5239_v28 }
0x1232   :  { %4863 = vmatprep.subr.mxu1 %v5239_v28 }
0x1234   :  { %4856 = vmatmul.mubr.msk.f32.vlgmr.msra.gmra.mrb[42].mxu1 %vm546_vm3, %v3438_v13  ;;  %v3605_v30 = vpop.permute.xlu1 %3604 }
0x1235   :  { %4864 = vmatpush3.xpose.msk.msra.mxu1 %vm546_vm3, %v3607_v29  ;;  %4865 = vmatprep.mubr.msk.f32.mxu1 %vm5240_vm2, %v5239_v28 }
0x1238   :  { %4866 = vmatmul.mubr.msk.f32.vlgmr.msra.gmra.mrb[44].mxu1 %vm546_vm3, %v3605_v30 }
0x12ef   :  { %v2492_v5 = vpop.f32.mrb[22].mxu0 }
0x12f0   :  { %v2496_v35 = vmul.f32 0.35355338, %v2492_v5  ;;  %v4797_v36 = vpop.f32.mrb[23].mxu0  ;;  %v2659_v37 = vpop.f32.mrb[32].mxu1 }
0x12f1   :  { %v2663_v15 = vmul.f32 0.35355338, %v2659_v37  ;;  %v4807_v16 = vpop.f32.mrb[33].mxu1 }
0x12f2   :  { %v2497_v38 = vsel %vm622_vm4, %v2496_v35, -inf }
0x12f3   :  { %2498 = vmax.xlane.f32.xlu0 %v2497_v38  ;;  %v2664_v39 = vsel %vm622_vm4, %v2663_v15, -inf }
0x12f4   :  { %2665 = vmax.xlane.f32.xlu1 %v2664_v39 }
0x12f7   :  { %v2826_v40 = vpop.f32.mrb[34].mxu1 }
0x12f8   :  { %v6108_v41 = vmul.f32 0.35355338, %v2826_v40  ;;  %v4817_v42 = vpop.f32.mrb[35].mxu1 }
0x12fa   :  { %v2831_v43 = vsel %vm622_vm4, %v6108_v41, -inf }
0x12fb   :  { %v2993_v44 = vpop.f32.mrb[36].mxu1  ;;  %2832 = vmax.xlane.f32.xlu0 %v2831_v43 }
0x12fc   :  { %v2997_v45 = vmul.f32 0.35355338, %v2993_v44  ;;  %v4827_v46 = vpop.f32.mrb[37].mxu1 }
0x12fe   :  { %v2998_v47 = vsel %vm622_vm4, %v2997_v45, -inf }
0x12ff   :  { %2999 = vmax.xlane.f32.xlu0 %v2998_v47  ;;  %v3177_v48 = vpop.f32.mrb[38].mxu1 }
0x1300   :  { %v3181_v50 = vmul.f32 0.35355338, %v3177_v48  ;;  %v4837_v52 = vpop.f32.mrb[39].mxu1 }
0x1302   :  { %v3182_v53 = vsel %vm622_vm4, %v3181_v50, -inf }
0x1303   :  { %3183 = vmax.xlane.f32.xlu0 %v3182_v53  ;;  %v3344_v54 = vpop.f32.mrb[40].mxu1 }
0x1304   :  { %v3348_v56 = vmul.f32 0.35355338, %v3344_v54  ;;  %v4847_v57 = vpop.f32.mrb[41].mxu1 }
0x1306   :  { %v3349_v58 = vsel %vm622_vm4, %v3348_v56, -inf }
0x1307   :  { %3350 = vmax.xlane.f32.xlu1 %v3349_v58  ;;  %v3511_v59 = vpop.f32.mrb[42].mxu1 }
0x1308   :  { %v3515_v60 = vmul.f32 0.35355338, %v3511_v59  ;;  %v4857_v61 = vpop.f32.mrb[43].mxu1 }
0x130a   :  { %v3516_v62 = vsel %vm622_vm4, %v3515_v60, -inf }
0x130b   :  { %3517 = vmax.xlane.f32.xlu0 %v3516_v62  ;;  %v3678_v63 = vpop.f32.mrb[44].mxu1 }
0x130c   :  { %v4867_v0 = vpop.f32.mrb[45].mxu1  ;;  %v3682_v1 = vmul.f32 0.35355338, %v3678_v63 }
0x130e   :  { %v3683_v34 = vsel %vm622_vm4, %v3682_v1, -inf }
0x1318   :  { %2508 = vrot.lane.b32.xlu1 %v6033_v12, %s6378_s22 }
0x133c   :  { %3684 = vmax.xlane.f32.xlu1 %v3683_v34 }
0x134d   :  { %2842 = vrot.lane.b32.xlu1 %v6033_v12, %s6379_s2 }
0x1351   :  { %3009 = vrot.lane.b32.xlu1 %v6033_v12, %s6380_s24 }
0x1355   :  { %3193 = vrot.lane.b32.xlu1 %v6049_v18, %s6378_s22 }
0x1380   :  { %v2499_v2 = vpop.xlane.xlu0 %2498 }
0x1381   :  { %v2500_v3 = vsub.f32 %v2496_v35, %v2499_v2  ;;  %v2666_v4 = vpop.xlane.xlu1 %2665 }
0x1382   :  { %v2667_v6 = vsub.f32 %v2663_v15, %v2666_v4 }
0x1383   :  { %v2501_v7 = vmul.f32 1.442695, %v2500_v3 }
0x1384   :  { %v2668_v8 = vmul.f32 1.442695, %v2667_v6 }
0x1385   :  { %5173 = vpow2.f32 %v2501_v7 }
0x1386   :  { %5175 = vpow2.f32 %v2668_v8 }
0x1388   :  { %v2833_v9 = vpop.xlane.xlu0 %2832 }
0x1389   :  { %v2834_v22 = vsub.f32 %v6108_v41, %v2833_v9 }
0x138b   :  { %v2835_v24 = vmul.f32 1.442695, %v2834_v22  ;;  %v4375_v22 = vld [vmem:[%s6335_s7 + $0x20] sm:$0xff] }
0x138c   :  { %v3000_v10 = vpop.xlane.xlu0 %2999 }
0x138d   :  { %v3001_v33 = vsub.f32 %v2997_v45, %v3000_v10 }
0x138f   :  { %v5174_v11 = vpop.eup %5173  ;;  %v3002_v51 = vmul.f32 1.442695, %v3001_v33 }
0x1390   :  { %v6125_v14 = vpop.eup %5175  ;;  %v2503_v17 = vsel %vm622_vm4, %v5174_v11, 0.0  ;;  %v3184_v23 = vpop.xlane.xlu0 %3183 }
0x1391   :  { %5177 = vpow2.f32 %v3002_v51  ;;  %2504 = vadd.xlane.f32.xlu0 %v2503_v17  ;;  %v2670_v19 = vsel %vm622_vm4, %v6125_v14, 0.0  ;;  %v3185_v25 = vsub.f32 %v3181_v50, %v3184_v23  ;;  %v4376_v23 = vld [vmem:[%s6335_s7 + $0x28] sm:$0xff] }
0x1392   :  { %2671 = vadd.xlane.f32.xlu1 %v2670_v19  ;;  %5179 = vpow2.f32 %v2835_v24 }
0x1393   :  { %v3186_v27 = vmul.f32 1.442695, %v3185_v25  ;;  %v5069_v25 = vpack.c.bf16 %v4376_v23, %v4375_v22  ;;  %v4385_v23 = vld [vmem:[%s6337_s9 + $0x1] ss:$0 sm:$0xff] }
0x1394   :  { %v3351_v55 = vpop.xlane.xlu1 %3350 }
0x1395   :  { %5181 = vpow2.f32 %v3186_v27  ;;  %v3352_v29 = vsub.f32 %v3348_v56, %v3351_v55  ;;  %5070 = vmatprep.subr.bf16.mxu1 %v5069_v25 }
0x1396   :  { %5072 = vmatpush3.bf16.msra.mxu1 %v5069_v25  ;;  %v4386_v25 = vld [vmem:[%s6338_s10 + $0x1] ss:$0 sm:$0xff] }
0x1397   :  { %v3353_v5 = vmul.f32 1.442695, %v3352_v29  ;;  %v4378_v29 = vld [vmem:[%s6335_s7 + $0x38] sm:$0xff] }
0x1398   :  { %v2509_v49 = vpop.permute.xlu1 %2508  ;;  %v3518_v26 = vpop.xlane.xlu0 %3517 }
0x1399   :  { %4799 = vmatpush3.msk.msra.mxu0 %vm640_vm5, %v2509_v49  ;;  %v3519_v13 = vsub.f32 %v3515_v60, %v3518_v26 }
0x139a   :  { %4808 = vmatprep.subr.mxu0 %v5239_v28 }
0x139b   :  { %v6132_v20 = vpop.eup %5177  ;;  %v3520_v30 = vmul.f32 1.442695, %v3519_v13  ;;  %v4377_v13 = vld [vmem:[%s6335_s7 + $0x30] sm:$0xff] }
0x139c   :  { %v3004_v21 = vsel %vm622_vm4, %v6132_v20, 0.0  ;;  %v5180_v35 = vpop.eup %5179 }
0x139d   :  { %3005 = vadd.xlane.f32.xlu1 %v3004_v21  ;;  %5183 = vpow2.f32 %v3520_v30  ;;  %v5073_v30 = vpack.c.bf16 %v4378_v29, %v4377_v13 }
0x139e   :  { %5185 = vpow2.f32 %v3353_v5 }
0x139f   :  { %v5182_v36 = vpop.eup %5181  ;;  %5074 = vmatprep.subr.bf16.mxu1 %v5073_v30 }
0x13a0   :  { %v3188_v15 = vsel %vm622_vm4, %v5182_v36, 0.0  ;;  %5076 = vmatpush3.bf16.msra.mxu1 %v5073_v30 }
0x13a7   :  { %2675 = vrot.lane.b32.xlu0 %v6033_v12, %s6381_s3  ;;  %v2837_v12 = vsel %vm622_vm4, %v5180_v35, 0.0  ;;  %v6143_v16 = vpop.eup %5183 }
0x13a8   :  { %v3522_v40 = vsel %vm622_vm4, %v6143_v16, 0.0  ;;  %v5186_v41 = vpop.eup %5185 }
0x13a9   :  { %v3355_v42 = vsel %vm622_vm4, %v5186_v41, 0.0 }
0x13ae   :  { %3360 = vrot.lane.b32.xlu1 %v6049_v18, %s6381_s3 }
0x13c6   :  { %2838 = vadd.xlane.f32.xlu0 %v2837_v12 }
0x13c9   :  { %v3685_v37 = vpop.xlane.xlu1 %3684 }
0x13ca   :  { %v3686_v38 = vsub.f32 %v3682_v1, %v3685_v37  ;;  %3189 = vadd.xlane.f32.xlu0 %v3188_v15 }
0x13cc   :  { %v3687_v39 = vmul.f32 1.442695, %v3686_v38 }
0x13cd   :  { %v2843_v45 = vpop.permute.xlu1 %2842 }
0x13ce   :  { %5187 = vpow2.f32 %v3687_v39  ;;  %3523 = vadd.xlane.f32.xlu0 %v3522_v40 }
0x13d1   :  { %v3010_v46 = vpop.permute.xlu1 %3009 }
0x13d2   :  { %3356 = vadd.xlane.f32.xlu1 %v3355_v42 }
0x13d5   :  { %v3194_v47 = vpop.permute.xlu1 %3193 }
0x13d8   :  { %v6148_v43 = vpop.eup %5187 }
0x13d9   :  { %v3689_v44 = vsel %vm622_vm4, %v6148_v43, 0.0 }
0x13da   :  { %3690 = vadd.xlane.f32.xlu0 %v3689_v44 }
0x13e3   :  { %3694 = vrot.lane.b32.xlu1 %v6049_v18, %s6380_s24 }
0x13f0   :  { %3527 = vrot.lane.b32.xlu0 %v6049_v18, %s6379_s2 }
0x141e   :  { %v2505_v48 = vpop.xlane.xlu0 %2504 }
0x141f   :  { %5189 = vrcp.f32 %v2505_v48  ;;  %v2672_v50 = vpop.xlane.xlu1 %2671 }
0x1420   :  { %5191 = vrcp.f32 %v2672_v50 }
0x1422   :  { %v2676_v56 = vpop.permute.xlu0 %2675 }
0x1429   :  { %v5190_v52 = vpop.eup %5189 }
0x142a   :  { %v2507_v53 = vmul.f32 %v5190_v52, %v5174_v11  ;;  %v5192_v54 = vpop.eup %5191  ;;  %v3006_v57 = vpop.xlane.xlu1 %3005 }
0x142b   :  { %v2674_v18 = vmul.f32 %v5192_v54, %v6125_v14  ;;  %v4382_v54 = vld [vmem:[%s6336_s8 + $0x1] ss:$0 sm:$0xff] }
0x142c   :  { %4801 = vmatmul.mubr.msk.f32.vlgmr.msra.gmra.mrb[24].mxu0 %vm636_vm6, %v2507_v53 }
0x142d   :  { %4809 = vmatpush3.msk.msra.mxu0 %vm640_vm5, %v2676_v56  ;;  %4810 = vmatprep.mubr.msk.f32.mxu0 %vm5240_vm2, %v5239_v28 }
0x142e   :  { %4818 = vmatprep.subr.mxu0 %v5239_v28  ;;  %v3361_v60 = vpop.permute.xlu1 %3360 }
0x1430   :  { %4811 = vmatmul.mubr.msk.f32.vlgmr.msra.gmra.mrb[26].mxu0 %vm636_vm6, %v2674_v18 }
0x1431   :  { %4819 = vmatpush3.msk.msra.mxu0 %vm640_vm5, %v2843_v45  ;;  %4820 = vmatprep.mubr.msk.f32.mxu0 %vm5240_vm2, %v5239_v28 }
0x1432   :  { %4828 = vmatprep.subr.mxu0 %v5239_v28 }
0x1453   :  { %v2839_v58 = vpop.xlane.xlu0 %2838 }
0x1454   :  { %5193 = vrcp.f32 %v2839_v58 }
0x1455   :  { %5195 = vrcp.f32 %v3006_v57 }
0x1457   :  { %v3190_v59 = vpop.xlane.xlu0 %3189 }
0x1458   :  { %5197 = vrcp.f32 %v3190_v59 }
0x145b   :  { %v3524_v63 = vpop.xlane.xlu0 %3523 }
0x145e   :  { %v5194_v61 = vpop.eup %5193 }
0x145f   :  { %v2841_v62 = vmul.f32 %v5194_v61, %v5180_v35  ;;  %v3357_v0 = vpop.xlane.xlu1 %3356  ;;  %v5196_v1 = vpop.eup %5195 }
0x1460   :  { %5199 = vrcp.f32 %v3357_v0  ;;  %v3008_v34 = vmul.f32 %v5196_v1, %v6132_v20  ;;  %v4388_v1 = vld [vmem:[%s6339_s11 + $0x28] sm:$0xff] }
0x1461   :  { %4821 = vmatmul.mubr.msk.f32.vlgmr.msra.gmra.mrb[28].mxu0 %vm636_vm6, %v2841_v62  ;;  %5201 = vrcp.f32 %v3524_v63 }
0x1462   :  { %4829 = vmatpush3.msk.msra.mxu0 %vm640_vm5, %v3010_v46  ;;  %4830 = vmatprep.mubr.msk.f32.mxu0 %vm5240_vm2, %v5239_v28  ;;  %v5198_v2 = vpop.eup %5197 }
0x1463   :  { %4838 = vmatprep.subr.mxu0 %v5239_v28  ;;  %v3192_v3 = vmul.f32 %v5198_v2, %v5182_v36  ;;  %v3695_v33 = vpop.permute.xlu1 %3694 }
0x1465   :  { %4831 = vmatmul.mubr.msk.f32.vlgmr.msra.gmra.mrb[30].mxu0 %vm636_vm6, %v3008_v34  ;;  %v4389_v34 = vld [vmem:[%s6339_s11 + $0x30] sm:$0xff] }
0x1466   :  { %4839 = vmatpush3.msk.msra.mxu0 %vm640_vm5, %v3194_v47  ;;  %4840 = vmatprep.mubr.msk.f32.mxu0 %vm5240_vm2, %v5239_v28 }
0x1467   :  { %v3691_v4 = vpop.xlane.xlu0 %3690  ;;  %4848 = vmatprep.subr.mxu0 %v5239_v28 }
0x1468   :  { %5203 = vrcp.f32 %v3691_v4 }
0x1469   :  { %4841 = vmatmul.mubr.msk.f32.vlgmr.msra.gmra.mrb[32].mxu0 %vm636_vm6, %v3192_v3  ;;  %v4390_v3 = vld [vmem:[%s6339_s11 + $0x38] sm:$0xff] }
0x146a   :  { %v5200_v6 = vpop.eup %5199  ;;  %4849 = vmatpush3.msk.msra.mxu0 %vm640_vm5, %v3361_v60  ;;  %4850 = vmatprep.mubr.msk.f32.mxu0 %vm5240_vm2, %v5239_v28  ;;  %v5081_v4 = vpack.c.bf16 %v4390_v3, %v4389_v34 }
0x146b   :  { %v3359_v7 = vmul.f32 %v5200_v6, %v5186_v41  ;;  %v3528_v8 = vpop.permute.xlu0 %3527  ;;  %4858 = vmatprep.subr.mxu0 %v5239_v28  ;;  %v5202_v9 = vpop.eup %5201 }
0x146c   :  { %v3526_v10 = vmul.f32 %v5202_v9, %v6143_v16 }
0x146d   :  { %4851 = vmatmul.mubr.msk.f32.vlgmr.msra.gmra.mrb[34].mxu0 %vm636_vm6, %v3359_v7 }
0x146e   :  { %4859 = vmatpush3.msk.msra.mxu0 %vm640_vm5, %v3528_v8  ;;  %4860 = vmatprep.mubr.msk.f32.mxu0 %vm5240_vm2, %v5239_v28 }
0x146f   :  { %4868 = vmatprep.subr.mxu0 %v5239_v28 }
0x1471   :  { %4861 = vmatmul.mubr.msk.f32.vlgmr.msra.gmra.mrb[36].mxu0 %vm636_vm6, %v3526_v10 }
0x1472   :  { %v5204_v11 = vpop.eup %5203  ;;  %4869 = vmatpush3.msk.msra.mxu0 %vm640_vm5, %v3695_v33  ;;  %4870 = vmatprep.mubr.msk.f32.mxu0 %vm5240_vm2, %v5239_v28 }
0x1473   :  { %v3693_v51 = vmul.f32 %v5204_v11, %v6148_v43 }
0x1475   :  { %4871 = vmatmul.mubr.msk.f32.vlgmr.msra.gmra.mrb[38].mxu0 %vm636_vm6, %v3693_v51 }
0x14ff   :  { %v2581_v14 = vpop.f32.mrb[24].mxu0 }
0x1500   :  { %v4802_v17 = vpop.f32.mrb[25].mxu0 }
0x1503   :  { %v2748_v19 = vpop.f32.mrb[26].mxu0 }
0x1504   :  { %3087 = vrot.lane.b32.xlu0 %v2748_v19, %s5252_s30  ;;  %v4812_v55 = vpop.f32.mrb[27].mxu0 }
0x1534   :  { %v2915_v49 = vpop.f32.mrb[28].mxu0 }
0x1535   :  { %v4822_v20 = vpop.f32.mrb[29].mxu0 }
0x1538   :  { %v3082_v21 = vpop.f32.mrb[30].mxu0 }
0x1539   :  { %v4832_v24 = vpop.f32.mrb[31].mxu0 }
0x153c   :  { %v3266_v26 = vpop.f32.mrb[32].mxu0 }
0x153d   :  { %v4842_v27 = vpop.f32.mrb[33].mxu0 }
0x1540   :  { %v3433_v5 = vpop.f32.mrb[34].mxu0 }
0x1541   :  { %3772 = vrot.lane.b32.xlu0 %v3433_v5, %s5252_s30  ;;  %v4852_v35 = vpop.f32.mrb[35].mxu0 }
0x1544   :  { %v3600_v12 = vpop.f32.mrb[36].mxu0 }
0x1545   :  { %3091 = vrot.lane.b32.xlu0 %v2915_v49, %s6382_s29  ;;  %3776 = vrot.lane.b32.xlu1 %v3600_v12, %s6382_s29  ;;  %v4862_v36 = vpop.f32.mrb[37].mxu0  ;;  %v4395_v12 = vld [vmem:[%s6341_s13 + $0x40] sm:$0xff]  ;;  %s5256_s29 = smov [#allocation2]  }
0x1546   :  { %v4396_v36 = vld [vmem:[%s6341_s13 + $0x48] sm:$0xff] }
0x1548   :  { %v3767_v37 = vpop.f32.mrb[38].mxu0 }
0x1549   :  { %3780 = vrot.lane.b32.xlu1 %v3767_v37, %s6383_s0  ;;  %v4872_v15 = vpop.f32.mrb[39].mxu0  ;;  %v5085_v37 = vpack.c.bf16 %v4396_v36, %v4395_v12 }
0x154a   :  { %v4397_v15 = vld [vmem:[%s6341_s13 + $0x50] sm:$0xff] }
0x154b   :  { %5086 = vmatprep.subr.bf16.mxu1 %v5085_v37 }
0x154d   :  { %3095 = vrot.lane.b32.xlu1 %v3082_v21, %s6383_s0  ;;  %s4275_s0 = sshll.u32 %s5256_s29, 4  ;;  %s4276_s0 = int_to_ptr.vmem [resolvable:$true] %s4275_s0 }
0x154e   :  { %p5220_p1 = scmp.lt.s32.totalorder %s4276_s0, %s4276_s0 }
0x1576   :  { %v3088_v16 = vpop.permute.xlu0 %3087 }
0x1577   :  { %v3098_v45 = vsel %vm546_vm3, %v2581_v14, %v3088_v16  ;;  %v4398_v16 = vld [vmem:[%s6341_s13 + $0x58] sm:$0xff] }
0x15b3   :  { %v3773_v38 = vpop.permute.xlu0 %3772 }
0x15b4   :  { %v3783_v40 = vsel %vm546_vm3, %v3266_v26, %v3773_v38  ;;  %v4399_v38 = vld [vmem:[%s6341_s13 + $0x60] sm:$0xff] }
0x15b7   :  { %v3777_v39 = vpop.permute.xlu1 %3776  ;;  %v3092_v43 = vpop.permute.xlu0 %3091 }
0x15b8   :  { %v3784_v41 = vsel %vm1227_vm8, %v3783_v40, %v3777_v39  ;;  %v3099_v46 = vsel %vm1227_vm8, %v3098_v45, %v3092_v43  ;;  %v4400_v39 = vld [vmem:[%s6341_s13 + $0x68] sm:$0xff] }
0x15b9   :  { %v5093_v40 = vpack.c.bf16 %v4400_v39, %v4399_v38 }
0x15bb   :  { %v3781_v42 = vpop.permute.xlu1 %3780 }
0x15bc   :  { %v3785_v44 = vsel %vm1229_vm9, %v3784_v41, %v3781_v42  ;;  %v4401_v41 = vld [vmem:[%s6341_s13 + $0x70] sm:$0xff]  ;;  %v4402_v42 = vld [vmem:[%s6341_s13 + $0x78] sm:$0xff] }
0x15bd   :  { %v3787_v47 = vrot.slane %v3785_v44, 3  ;;  %v5097_v43 = vpack.c.bf16 %v4402_v42, %v4401_v41  ;;  %v4392_v44 = vld [vmem:[%s6340_s12 + $0x1] ss:$0 sm:$0xff] }
0x15bf   :  { %v3096_v48 = vpop.permute.xlu1 %3095 }
0x15c0   :  { %v3100_v50 = vsel %vm1229_vm9, %v3099_v46, %v3096_v48 }
0x15c1   :  { %v3789_v52 = vsel %vm640_vm5, %v3100_v50, %v3787_v47 }
0x15c2   :  { %4881 = vmatprep.mubr.msk.f32.mxu1 %vm402_vm0, %v3789_v52 }
0x15c3   :  { %4882 = vmatmul.mubr.msk.f32.vlgmr.msra.gmra.mrb[46].mxu1 %vm402_vm0, %v3787_v47 }
0x15c4   :  { %5088 = vmatpush3.bf16.msra.mxu1 %v5085_v37  ;;  %v4409_v37 = vld [vmem:[%s6346_s18] ss:$0 sm:$0xff] }
0x1696   :  { %v4883_v53 = vpop.f32.mrb[46].mxu1 }
0x1697   :  { %v3876_v56 = vadd.f32 %v4883_v53, %v5991_v31  ;;  %v3866_v18 = vpop.f32.mrb[47].mxu1 }
0x1698   :  { %v3875_v57 = vadd.f32 %v3866_v18, %v5993_v32  ;;  %v4387_v32 = vld [vmem:[%s6339_s11 + $0x20] sm:$0xff] }
0x1699   :  { %v3886_v58 = vadd.f32 %v4382_v54, %v3876_v56  ;;  %v5077_v2 = vpack.c.bf16 %v4388_v1, %v4387_v32 }
0x169a   :  { %v6227_v59 = vadd.f32 %v4382_v54, %v3875_v57 }
0x169b   :  { %v3894_v60 = vsel %vm406_vm1, %v3886_v58, 0.0  ;;  %v3900_v0 = vmul.f32 %v3886_v58, %v3886_v58  ;;  %5078 = vmatprep.subr.bf16.mxu0 %v5077_v2 }
0x169c   :  { %3895 = vadd.xlane.f32.xlu1 %v3894_v60  ;;  %v3891_v61 = vsel %vm402_vm0, %v6227_v59, 0.0  ;;  %v3899_v62 = vmul.f32 %v6227_v59, %v6227_v59  ;;  %5080 = vmatpush3.bf16.msra.mxu0 %v5077_v2 }
0x169d   :  { %3892 = vadd.xlane.f32.xlu0 %v3891_v61  ;;  %v3904_v31 = vsel %vm406_vm1, %v3900_v0, 0.0  ;;  %5082 = vmatprep.subr.bf16.mxu0 %v5081_v4 }
0x169e   :  { %v3901_v63 = vsel %vm402_vm0, %v3899_v62, 0.0 }
0x16a0   :  { %5084 = vmatpush3.bf16.msra.mxu0 %v5081_v4 }
0x16a1   :  { %3902 = vadd.xlane.f32.xlu0 %v3901_v63 }
0x16a5   :  { %3905 = vadd.xlane.f32.xlu0 %v3904_v31 }
0x1729   :  { %v3896_v8 = vpop.xlane.xlu1 %3895 }
0x172a   :  { %v3893_v6 = vpop.xlane.xlu0 %3892  ;;  %v3898_v10 = vmul.f32 0.03125, %v3896_v8 }
0x172b   :  { %v3897_v7 = vmul.f32 0.03125, %v3893_v6  ;;  %v4406_v6 = vld [vmem:[%s6342_s14 + $0x1] ss:$0 sm:$0xff] }
0x172c   :  { %v3910_v17 = vmul.f32 %v3898_v10, %v3898_v10  ;;  %v3914_v26 = vsub.f32 %v3886_v58, %v3898_v10 }
0x172d   :  { %v3909_v33 = vmul.f32 %v3897_v7, %v3897_v7  ;;  %v3913_v21 = vsub.f32 %v6227_v59, %v3897_v7 }
0x172e   :  { %v3903_v9 = vpop.xlane.xlu0 %3902 }
0x172f   :  { %v3907_v11 = vmul.f32 0.03125, %v3903_v9 }
0x1731   :  { %v3911_v51 = vsub.f32 %v3907_v11, %v3909_v33 }
0x1732   :  { %v3906_v14 = vpop.xlane.xlu0 %3905 }
0x1733   :  { %v3915_v19 = vadd.f32 1e-06, %v3911_v51  ;;  %v3908_v55 = vmul.f32 0.03125, %v3906_v14  ;;  %v4184_v14 = vld [vmem:[%s6345_s17] sm:$0xff] }
0x1735   :  { %5205 = vrsqrt.f32 %v3915_v19  ;;  %v3912_v49 = vsub.f32 %v3908_v55, %v3910_v17  ;;  %v4185_v17 = vld [vmem:[%s6345_s17 + $0x8] sm:$0xff]  ;;  %v5255_v19 = vmov 0.0|0.0   ;;  %v4186_v55 = vld [vmem:[%s6345_s17 + $0x10] sm:$0xff] }
0x1736   :  { %5101 = vmatprep.subr.bf16.mxu0 %v5255_v19 }
0x1737   :  { %v3916_v20 = vadd.f32 1e-06, %v3912_v49  ;;  %v4187_v49 = vld [vmem:[%s6345_s17 + $0x18] sm:$0xff] }
0x1739   :  { %5207 = vrsqrt.f32 %v3916_v20  ;;  %v5105_v20 = vpack.c.bf16 %v4187_v49, %v4186_v55 }
0x173f   :  { %v5206_v22 = vpop.eup %5205 }
0x1740   :  { %v3919_v24 = vmul.f32 %v5206_v22, %v3913_v21 }
0x1742   :  { %v3927_v27 = vmul.f32 %v4385_v23, %v3919_v24 }
0x1743   :  { %v5208_v13 = vpop.eup %5207 }
0x1744   :  { %v3920_v29 = vmul.f32 %v5208_v13, %v3914_v26  ;;  %v3935_v30 = vadd.f32 %v4386_v25, %v3927_v27 }
0x1746   :  { %v3928_v5 = vmul.f32 %v4385_v23, %v3920_v29  ;;  %4892 = vmatprep.mubr.msk.f32.mxu0 %vm402_vm0, %v3935_v30  ;;  %v4407_v30 = vld [vmem:[%s6343_s15] ss:$0 sm:$0xff]  ;;  %s5215_s15 = scalar_lea.vmem %s4276_s0, 32 }
0x1747   :  { %p5216_p0 = scmp.ne.s32.totalorder %s4276_s0, %s5215_s15  ;;  %p5221_p2 = scmp.lt.s32.totalorder %s5215_s15, %s5215_s15 }
0x1748   :  { %v3936_v35 = vadd.f32 %v4386_v25, %v3928_v5 }
0x1749   :  { %p5222_p3 = por %p5221_p2, %p5220_p1 }
0x174a   :  { %4893 = vmatmul.mubr.msk.f32.vlgmr.msra.gmra.mrb[40].mxu0 %vm402_vm0, %v3936_v35  ;;  %v4408_v35 = vld [vmem:[%s6344_s16] ss:$0 sm:$0xff] }
0x174b   :  { %4922 = vmatprep.mubr.msk.f32.mxu0 %vm5240_vm2, %v5239_v28  ;;  %v5089_v28 = vpack.c.bf16 %v4398_v16, %v4397_v15  ;;  %p5223_p4 = pnand %p5222_p3, %p5216_p0 }
0x174d   :  { %5090 = vmatprep.subr.bf16.mxu1 %v5089_v28 }
0x174e   :  { %5092 = vmatpush3.bf16.msra.mxu1 %v5089_v28 }
0x174f   :  { %5094 = vmatprep.subr.bf16.mxu1 %v5093_v40 }
0x1752   :  { %5096 = vmatpush3.bf16.msra.mxu1 %v5093_v40 }
0x1753   :  { %5098 = vmatprep.subr.bf16.mxu1 %v5097_v43 }
0x1756   :  { %5100 = vmatpush3.bf16.msra.mxu1 %v5097_v43 }
0x181d   :  { %v4894_v45 = vpop.f32.mrb[40].mxu0 }
0x181e   :  { %v4028_v46 = vadd.f32 %v4894_v45, %v4392_v44  ;;  %v4022_v47 = vpop.f32.mrb[41].mxu0 }
0x181f   :  { %v4023_v48 = vadd.f32 %v4392_v44, %v4022_v47 }
0x1820   :  { %v4032_v50 = vmul.f32 %v4028_v46, %v4028_v46 }
0x1821   :  { %v4031_v52 = vmul.f32 %v4023_v48, %v4023_v48 }
0x1822   :  { %v4034_v53 = vmul.f32 %v4032_v50, %v4028_v46 }
0x1823   :  { %v4033_v54 = vmul.f32 %v4031_v52, %v4023_v48 }
0x1824   :  { %v4036_v56 = vmul.f32 0.044715, %v4034_v53 }
0x1825   :  { %v4035_v18 = vmul.f32 0.044715, %v4033_v54 }
0x1826   :  { %v4038_v57 = vadd.f32 %v4036_v56, %v4028_v46 }
0x1827   :  { %v4037_v58 = vadd.f32 %v4035_v18, %v4023_v48 }
0x1828   :  { %v4040_v60 = vmul.f32 0.7978846, %v4038_v57 }
0x1829   :  { %v4039_v61 = vmul.f32 0.7978846, %v4037_v58 }
0x182a   :  { %5209 = vtanh.f32 %v4040_v60 }
0x182b   :  { %5211 = vtanh.f32 %v4039_v61 }
0x1834   :  { %v5210_v62 = vpop.eup %5209 }
0x1835   :  { %v5212_v63 = vpop.eup %5211  ;;  %v4044_v0 = vadd.f32 1.0, %v5210_v62 }
0x1836   :  { %v4043_v31 = vadd.f32 1.0, %v5212_v63 }
0x1837   :  { %v4046_v32 = vmul.f32 0.5, %v4044_v0 }
0x1838   :  { %v4045_v1 = vmul.f32 0.5, %v4043_v31 }
0x1839   :  { %v4048_v2 = vmul.f32 %v4046_v32, %v4028_v46 }
0x183a   :  { %v4047_v34 = vmul.f32 %v4045_v1, %v4023_v48 }
0x183c   :  { %4911 = vmatprep.mubr.msk.f32.mxu1 %vm2182_vm10, %v4047_v34 }
0x183d   :  { %4912 = vmatmul.mubr.msk.f32.vlgmr.msra.gmra.mrb[48].mxu1 %vm2182_vm10, %v4048_v2 }
0x1910   :  { %v4913_v3 = vpop.f32.mrb[48].mxu1 }
0x1911   :  { %v4130_v4 = vpop.f32.mrb[49].mxu1 }
0x1912   :  { %v4138_v7 = vadd.f32 %v4130_v4, %v6227_v59  ;;  %v5102_v59 = vpack.c.bf16 %v4185_v17, %v4184_v14 }
0x1914   :  { %v4147_v8 = vadd.f32 %v4406_v6, %v4138_v7  ;;  %5103 = vmatpush3.bf16.msra.mxu0 %v5102_v59 }
0x1915   :  { %5104 = vmatprep.subr.bf16.mxu0 %v5255_v19 }
0x1916   :  { %v4149_v9 = vrot.slane %v4147_v8, 4 }
0x1918   :  { %v4152_v10 = vsel %vm4151_vm11, %v4147_v8, %v4149_v9  ;;  %5106 = vmatpush3.bf16.msra.mxu0 %v5105_v20 }
0x1919   :  { %v4155_v33 = vsel %vm406_vm1, %v4152_v10, 0.0  ;;  %v4159_v11 = vmul.f32 %v4152_v10, %v4152_v10 }
0x191a   :  { %4156 = vadd.xlane.f32.xlu0 %v4155_v33 }
0x191b   :  { %v4160_v51 = vsel %vm406_vm1, %v4159_v11, 0.0 }
0x191c   :  { %4161 = vadd.xlane.f32.xlu1 %v4160_v51 }
0x19a7   :  { %v4157_v21 = vpop.xlane.xlu0 %4156 }
0x19a8   :  { %v4158_v22 = vmul.f32 0.03125, %v4157_v21 }
0x19a9   :  { %v4162_v23 = vpop.xlane.xlu1 %4161 }
0x19aa   :  { %v4164_v24 = vmul.f32 %v4158_v22, %v4158_v22  ;;  %v4163_v25 = vmul.f32 0.03125, %v4162_v23  ;;  %v4166_v13 = vsub.f32 %v4152_v10, %v4158_v22 }
0x19ac   :  { %v4165_v26 = vsub.f32 %v4163_v25, %v4164_v24 }
0x19ae   :  { %v4167_v27 = vadd.f32 1e-06, %v4165_v26 }
0x19b0   :  { %5213 = vrsqrt.f32 %v4167_v27 }
0x19ba   :  { %v5214_v29 = vpop.eup %5213 }
0x19bb   :  { %v4169_v5 = vmul.f32 %v5214_v29, %v4166_v13 }
0x19bd   :  { %v4176_v12 = vmul.f32 %v4407_v30, %v4169_v5 }
0x19bf   :  { %v4183_v36 = vadd.f32 %v4408_v35, %v4176_v12 }
0x19c1   :  { %4923 = vmatmul.mubr.msk.f32.vlgmr.msra.gmra.mrb[42].mxu0 %vm402_vm0, %v4183_v36 }
0x1a94   :  { %v4264_v15 = vpop.f32.mrb[42].mxu0 }
0x1a95   :  { %v4265_v16 = vadd.f32 %v4409_v37, %v4264_v15  ;;  %v4924_v28 = vpop.f32.mrb[43].mxu0 }
0x1a97   :  { %4268 = vst [vmem:[#allocation2] sm:$0x3] %v4265_v16 }
0x1a98   :  { %5226 = shalt.err (!%p5223_p4)
}
0x1a99   :  { %s5227_s30 = scalar_lea.hbm %s6347_s19, 32 }
0x1a9a   :  { %p5228_p5 = scmp.ne.s32.totalorder %s6347_s19, %s5227_s30  ;;  %p5231_p6 = scmp.lt.u32.totalorder %s5227_s30, %s6347_s19 }
0x1a9c   :  { %p5233_p7 = pnand %p5231_p6, %p5228_p5 }
0x1a9e   :  { %5236 = shalt.err (!%p5233_p7)
}
0x1a9f   :  { %4278 = dma.vmem_to_hbm [thread:$0]  %s4276_s0, 32, %s6347_s19, [#allocation3]  }
0x1aa0   :  { %5237 = dma.done.wait [#allocation3], 32  }
0x1aa1   :  { %5238 = vsyncadd [#allocation3], 4294967264 }
0x1aa2   :  { %4282 = vsyncpa [#allocation3], 1 }

</bundles_post_ra>
